<compile_context>
chip_gen: v7x
topology: tpu7x:2x2x1
jax: 0.10.0
libtpu: 0.0.40
codegen_flags: <defaults>
</compile_context>

<pallas_src>
import jax
import jax.numpy as jnp
from jax.experimental import pallas as pl
from jax.experimental.pallas import tpu as pltpu

EPS = 1e-5
NEG_SLOPE = 0.01  # nn.LeakyReLU() default


def _bn_train(h, gamma, beta):
    # BatchNorm1d training-mode: batch mean / biased batch variance (f32).
    mean = jnp.mean(h, axis=0, keepdims=True)
    diff = h - mean
    var = jnp.mean(diff * diff, axis=0, keepdims=True)
    return diff * jax.lax.rsqrt(var + EPS) * gamma + beta


def _leaky_relu(h):
    return jnp.where(h >= 0, h, NEG_SLOPE * h)


def discriminator_kernel(x_ref, w1_ref, p1_ref, w2_ref, p2_ref, w3_ref, p3_ref, o_ref):
    # Block 1: Linear(F, 1024) -> BN -> LeakyReLU
    # x / w1 are bf16 (MXU-native), accumulate in f32, elementwise in f32.
    h = jnp.dot(x_ref[...], w1_ref[...], preferred_element_type=jnp.float32)
    h = h + p1_ref[0:1, :]
    h = _leaky_relu(_bn_train(h, p1_ref[1:2, :], p1_ref[2:3, :]))

    # Block 2: Linear(1024, 512) -> BN -> LeakyReLU (bf16 matmul, f32 accum)
    h = jnp.dot(h.astype(jnp.bfloat16), w2_ref[...],
                preferred_element_type=jnp.float32)
    h = h + p2_ref[0:1, :]
    h = _leaky_relu(_bn_train(h, p2_ref[1:2, :], p2_ref[2:3, :]))

    # Block 3: Linear(512, 32) -> BN -> LeakyReLU (small weight, kept f32)
    h = jnp.dot(h, w3_ref[...], preferred_element_type=jnp.float32)
    h = h + p3_ref[0:1, :]
    h = _leaky_relu(_bn_train(h, p3_ref[1:2, :], p3_ref[2:3, :]))

    # Head: Linear(32, 1) as VPU multiply + lane reduce (avoids a 1-lane MXU
    # matmul), then bias + sigmoid.
    w4_row = p3_ref[3:4, :]          # (1, 32)
    b4 = p3_ref[4:5, 0:1]            # (1, 1)
    z = jnp.sum(h * w4_row, axis=-1, keepdims=True) + b4
    o_ref[...] = 1.0 / (1.0 + jnp.exp(-z))


def discriminator_forward(x, params):
    """x: (B, F) float32. Returns (B,) — mirrors torch.flatten(sigmoid(model(x)))."""
    B = x.shape[0]
    x_bf16 = x.astype(jnp.bfloat16)  # cast in wrapper: halves x HBM bytes
    args = (
        x_bf16,
        params["w1"], params["p1"],
        params["w2"], params["p2"],
        params["w3"], params["p3"],
    )
    vmem = pl.BlockSpec(memory_space=pltpu.MemorySpace.VMEM)
    out = pl.pallas_call(
        discriminator_kernel,
        out_shape=jax.ShapeDtypeStruct((B, 1), jnp.float32),
        in_specs=[vmem] * len(args),
        out_specs=vmem,
    )(*args)
    return out.reshape(-1)  # torch.flatten


def init_params(key, feat_size=512):
    """Deterministic synthetic parameters matching the module's shapes.
    Linear weights are stored transposed (in, out); w1/w2 stored as bf16.
    Small per-layer vectors are packed:
      p1 = [b1; gamma1; beta1]             (3, 1024)  f32
      p2 = [b2; gamma2; beta2]             (3,  512)  f32
      p3 = [b3; gamma3; beta3; w4_row; b4] (5,   32)  f32
    """
    dims = [(feat_size, 1024), (1024, 512), (512, 32), (32, 1)]
    keys = jax.random.split(key, 8)
    raw = {}
    for idx, (din, dout) in enumerate(dims, start=1):
        kw, kb = keys[2 * (idx - 1)], keys[2 * (idx - 1) + 1]
        bound = 1.0 / jnp.sqrt(din)
        raw[f"w{idx}"] = jax.random.uniform(kw, (din, dout), jnp.float32, -bound, bound)
        raw[f"b{idx}"] = jax.random.uniform(kb, (dout,), jnp.float32, -bound, bound)

    params = {
        "w1": raw["w1"].astype(jnp.bfloat16),
        "w2": raw["w2"].astype(jnp.bfloat16),
        "w3": raw["w3"],  # f32, only 64 KiB
        "p1": jnp.stack(
            [raw["b1"], jnp.ones(1024, jnp.float32), jnp.zeros(1024, jnp.float32)]),
        "p2": jnp.stack(
            [raw["b2"], jnp.ones(512, jnp.float32), jnp.zeros(512, jnp.float32)]),
        "p3": jnp.stack(
            [raw["b3"],
             jnp.ones(32, jnp.float32),
             jnp.zeros(32, jnp.float32),
             raw["w4"].reshape(32),
             jnp.zeros(32, jnp.float32).at[0].set(raw["b4"][0])]),
    }
    return params


def reference_forward(x, params):
    """Plain-JAX reference mirroring the PyTorch forward with the same
    precision choices (bf16 storage for x/w1/w2, f32 accumulation)."""
    p1, p2, p3 = params["p1"], params["p2"], params["p3"]

    h = jnp.dot(x.astype(jnp.bfloat16), params["w1"],
                preferred_element_type=jnp.float32) + p1[0:1]
    h = _leaky_relu(_bn_train(h, p1[1:2], p1[2:3]))

    h = jnp.dot(h.astype(jnp.bfloat16), params["w2"],
                preferred_element_type=jnp.float32) + p2[0:1]
    h = _leaky_relu(_bn_train(h, p2[1:2], p2[2:3]))

    h = jnp.dot(h, params["w3"], preferred_element_type=jnp.float32) + p3[0:1]
    h = _leaky_relu(_bn_train(h, p3[1:2], p3[2:3]))

    z = jnp.sum(h * p3[3:4], axis=-1, keepdims=True) + p3[4:5, 0:1]
    return jax.nn.sigmoid(z).reshape(-1)


if __name__ == "__main__":
    B, FEAT = 8, 512  # batch must be > 1 for BatchNorm1d training-mode stats
    key = jax.random.PRNGKey(0)
    kx, kp = jax.random.split(key)
    x = jax.random.normal(kx, (B, FEAT), jnp.float32)
    params = init_params(kp, feat_size=FEAT)

    out = jax.block_until_ready(discriminator_forward(x, params))
    ref = jax.block_until_ready(reference_forward(x, params))

    assert out.shape == (B,), out.shape
    assert jnp.all(jnp.isfinite(out))
    assert jnp.allclose(out, ref, atol=2e-4, rtol=2e-4), (out, ref)
    print("KERNEL_OK")
</pallas_src>

<mosaic_0001>
module attributes {stable_mosaic.version = 11 : i64} {
  func.func @discriminator_kernel(%arg0: memref<8x512xbf16, #tpu.memory_space<vmem>>, %arg1: memref<512x1024xbf16, #tpu.memory_space<vmem>>, %arg2: memref<3x1024xf32, #tpu.memory_space<vmem>>, %arg3: memref<1024x512xbf16, #tpu.memory_space<vmem>>, %arg4: memref<3x512xf32, #tpu.memory_space<vmem>>, %arg5: memref<512x32xf32, #tpu.memory_space<vmem>>, %arg6: memref<5x32xf32, #tpu.memory_space<vmem>>, %arg7: memref<8x1xf32, #tpu.memory_space<vmem>>) attributes {dimension_semantics = [], scalar_prefetch = 0 : i64, scratch_operands = 0 : i64, tpu.core_type = #tpu.core_type<tc>} {
    %c0 = arith.constant 0 : index
    %c0_0 = arith.constant 0 : index
    %0 = vector.load %arg0[%c0, %c0_0] : memref<8x512xbf16, #tpu.memory_space<vmem>>, vector<8x512xbf16>
    %c0_1 = arith.constant 0 : index
    %c0_2 = arith.constant 0 : index
    %1 = vector.load %arg1[%c0_1, %c0_2] : memref<512x1024xbf16, #tpu.memory_space<vmem>>, vector<512x1024xbf16>
    %cst = arith.constant dense<0.000000e+00> : vector<8x1024xf32>
    %2 = tpu.matmul %0, %1, %cst {dimension_numbers = #tpu.dot_dimension_numbers<[1], [0], [0], [1], [0, 0, 1, 1], [], []>} : vector<8x512xbf16>, vector<512x1024xbf16>, vector<8x1024xf32> -> vector<8x1024xf32>
    %c0_3 = arith.constant 0 : index
    %c0_4 = arith.constant 0 : index
    %3 = vector.load %arg2[%c0_3, %c0_4] : memref<3x1024xf32, #tpu.memory_space<vmem>>, vector<1x1024xf32>
    %4 = vector.broadcast %3 : vector<1x1024xf32> to vector<8x1024xf32>
    %5 = arith.addf %2, %4 : vector<8x1024xf32>
    %c1 = arith.constant 1 : index
    %c0_5 = arith.constant 0 : index
    %6 = vector.load %arg2[%c1, %c0_5] : memref<3x1024xf32, #tpu.memory_space<vmem>>, vector<1x1024xf32>
    %c2 = arith.constant 2 : index
    %c0_6 = arith.constant 0 : index
    %7 = vector.load %arg2[%c2, %c0_6] : memref<3x1024xf32, #tpu.memory_space<vmem>>, vector<1x1024xf32>
    %cst_7 = arith.constant dense<0.000000e+00> : vector<1024xf32>
    %8 = vector.multi_reduction <add>, %5, %cst_7 [0] : vector<8x1024xf32> to vector<1024xf32>
    %9 = vector.shape_cast %8 : vector<1024xf32> to vector<1x1024xf32>
    %cst_8 = arith.constant 8.000000e+00 : f32
    %10 = vector.broadcast %cst_8 : f32 to vector<1x1024xf32>
    %11 = arith.divf %9, %10 : vector<1x1024xf32>
    %12 = vector.broadcast %11 : vector<1x1024xf32> to vector<8x1024xf32>
    %13 = arith.subf %5, %12 : vector<8x1024xf32>
    %14 = arith.mulf %13, %13 : vector<8x1024xf32>
    %cst_9 = arith.constant dense<0.000000e+00> : vector<1024xf32>
    %15 = vector.multi_reduction <add>, %14, %cst_9 [0] : vector<8x1024xf32> to vector<1024xf32>
    %16 = vector.shape_cast %15 : vector<1024xf32> to vector<1x1024xf32>
    %cst_10 = arith.constant 8.000000e+00 : f32
    %17 = vector.broadcast %cst_10 : f32 to vector<1x1024xf32>
    %18 = arith.divf %16, %17 : vector<1x1024xf32>
    %cst_11 = arith.constant 9.99999974E-6 : f32
    %19 = vector.broadcast %cst_11 : f32 to vector<1x1024xf32>
    %20 = arith.addf %18, %19 : vector<1x1024xf32>
    %21 = math.rsqrt %20 : vector<1x1024xf32>
    %22 = vector.broadcast %21 : vector<1x1024xf32> to vector<8x1024xf32>
    %23 = arith.mulf %13, %22 : vector<8x1024xf32>
    %24 = vector.broadcast %6 : vector<1x1024xf32> to vector<8x1024xf32>
    %25 = arith.mulf %23, %24 : vector<8x1024xf32>
    %26 = vector.broadcast %7 : vector<1x1024xf32> to vector<8x1024xf32>
    %27 = arith.addf %25, %26 : vector<8x1024xf32>
    %cst_12 = arith.constant 0.000000e+00 : f32
    %28 = vector.broadcast %cst_12 : f32 to vector<8x1024xf32>
    %29 = arith.cmpf oge, %27, %28 : vector<8x1024xf32>
    %cst_13 = arith.constant 0.00999999977 : f32
    %30 = vector.broadcast %cst_13 : f32 to vector<8x1024xf32>
    %31 = arith.mulf %30, %27 : vector<8x1024xf32>
    %32 = arith.select %29, %27, %31 : vector<8x1024xi1>, vector<8x1024xf32>
    %33 = arith.truncf %32 : vector<8x1024xf32> to vector<8x1024xbf16>
    %c0_14 = arith.constant 0 : index
    %c0_15 = arith.constant 0 : index
    %34 = vector.load %arg3[%c0_14, %c0_15] : memref<1024x512xbf16, #tpu.memory_space<vmem>>, vector<1024x512xbf16>
    %cst_16 = arith.constant dense<0.000000e+00> : vector<8x512xf32>
    %35 = tpu.matmul %33, %34, %cst_16 {dimension_numbers = #tpu.dot_dimension_numbers<[1], [0], [0], [1], [0, 0, 1, 1], [], []>} : vector<8x1024xbf16>, vector<1024x512xbf16>, vector<8x512xf32> -> vector<8x512xf32>
    %c0_17 = arith.constant 0 : index
    %c0_18 = arith.constant 0 : index
    %36 = vector.load %arg4[%c0_17, %c0_18] : memref<3x512xf32, #tpu.memory_space<vmem>>, vector<1x512xf32>
    %37 = vector.broadcast %36 : vector<1x512xf32> to vector<8x512xf32>
    %38 = arith.addf %35, %37 : vector<8x512xf32>
    %c1_19 = arith.constant 1 : index
    %c0_20 = arith.constant 0 : index
    %39 = vector.load %arg4[%c1_19, %c0_20] : memref<3x512xf32, #tpu.memory_space<vmem>>, vector<1x512xf32>
    %c2_21 = arith.constant 2 : index
    %c0_22 = arith.constant 0 : index
    %40 = vector.load %arg4[%c2_21, %c0_22] : memref<3x512xf32, #tpu.memory_space<vmem>>, vector<1x512xf32>
    %cst_23 = arith.constant dense<0.000000e+00> : vector<512xf32>
    %41 = vector.multi_reduction <add>, %38, %cst_23 [0] : vector<8x512xf32> to vector<512xf32>
    %42 = vector.shape_cast %41 : vector<512xf32> to vector<1x512xf32>
    %cst_24 = arith.constant 8.000000e+00 : f32
    %43 = vector.broadcast %cst_24 : f32 to vector<1x512xf32>
    %44 = arith.divf %42, %43 : vector<1x512xf32>
    %45 = vector.broadcast %44 : vector<1x512xf32> to vector<8x512xf32>
    %46 = arith.subf %38, %45 : vector<8x512xf32>
    %47 = arith.mulf %46, %46 : vector<8x512xf32>
    %cst_25 = arith.constant dense<0.000000e+00> : vector<512xf32>
    %48 = vector.multi_reduction <add>, %47, %cst_25 [0] : vector<8x512xf32> to vector<512xf32>
    %49 = vector.shape_cast %48 : vector<512xf32> to vector<1x512xf32>
    %cst_26 = arith.constant 8.000000e+00 : f32
    %50 = vector.broadcast %cst_26 : f32 to vector<1x512xf32>
    %51 = arith.divf %49, %50 : vector<1x512xf32>
    %cst_27 = arith.constant 9.99999974E-6 : f32
    %52 = vector.broadcast %cst_27 : f32 to vector<1x512xf32>
    %53 = arith.addf %51, %52 : vector<1x512xf32>
    %54 = math.rsqrt %53 : vector<1x512xf32>
    %55 = vector.broadcast %54 : vector<1x512xf32> to vector<8x512xf32>
    %56 = arith.mulf %46, %55 : vector<8x512xf32>
    %57 = vector.broadcast %39 : vector<1x512xf32> to vector<8x512xf32>
    %58 = arith.mulf %56, %57 : vector<8x512xf32>
    %59 = vector.broadcast %40 : vector<1x512xf32> to vector<8x512xf32>
    %60 = arith.addf %58, %59 : vector<8x512xf32>
    %cst_28 = arith.constant 0.000000e+00 : f32
    %61 = vector.broadcast %cst_28 : f32 to vector<8x512xf32>
    %62 = arith.cmpf oge, %60, %61 : vector<8x512xf32>
    %cst_29 = arith.constant 0.00999999977 : f32
    %63 = vector.broadcast %cst_29 : f32 to vector<8x512xf32>
    %64 = arith.mulf %63, %60 : vector<8x512xf32>
    %65 = arith.select %62, %60, %64 : vector<8x512xi1>, vector<8x512xf32>
    %c0_30 = arith.constant 0 : index
    %c0_31 = arith.constant 0 : index
    %66 = vector.load %arg5[%c0_30, %c0_31] : memref<512x32xf32, #tpu.memory_space<vmem>>, vector<512x32xf32>
    %cst_32 = arith.constant dense<0.000000e+00> : vector<8x32xf32>
    %67 = tpu.matmul %65, %66, %cst_32 {dimension_numbers = #tpu.dot_dimension_numbers<[1], [0], [0], [1], [0, 0, 1, 1], [], []>} : vector<8x512xf32>, vector<512x32xf32>, vector<8x32xf32> -> vector<8x32xf32>
    %c0_33 = arith.constant 0 : index
    %c0_34 = arith.constant 0 : index
    %68 = vector.load %arg6[%c0_33, %c0_34] : memref<5x32xf32, #tpu.memory_space<vmem>>, vector<1x32xf32>
    %69 = vector.broadcast %68 : vector<1x32xf32> to vector<8x32xf32>
    %70 = arith.addf %67, %69 : vector<8x32xf32>
    %c1_35 = arith.constant 1 : index
    %c0_36 = arith.constant 0 : index
    %71 = vector.load %arg6[%c1_35, %c0_36] : memref<5x32xf32, #tpu.memory_space<vmem>>, vector<1x32xf32>
    %c2_37 = arith.constant 2 : index
    %c0_38 = arith.constant 0 : index
    %72 = vector.load %arg6[%c2_37, %c0_38] : memref<5x32xf32, #tpu.memory_space<vmem>>, vector<1x32xf32>
    %cst_39 = arith.constant dense<0.000000e+00> : vector<32xf32>
    %73 = vector.multi_reduction <add>, %70, %cst_39 [0] : vector<8x32xf32> to vector<32xf32>
    %74 = vector.shape_cast %73 : vector<32xf32> to vector<1x32xf32>
    %cst_40 = arith.constant 8.000000e+00 : f32
    %75 = vector.broadcast %cst_40 : f32 to vector<1x32xf32>
    %76 = arith.divf %74, %75 : vector<1x32xf32>
    %77 = vector.broadcast %76 : vector<1x32xf32> to vector<8x32xf32>
    %78 = arith.subf %70, %77 : vector<8x32xf32>
    %79 = arith.mulf %78, %78 : vector<8x32xf32>
    %cst_41 = arith.constant dense<0.000000e+00> : vector<32xf32>
    %80 = vector.multi_reduction <add>, %79, %cst_41 [0] : vector<8x32xf32> to vector<32xf32>
    %81 = vector.shape_cast %80 : vector<32xf32> to vector<1x32xf32>
    %cst_42 = arith.constant 8.000000e+00 : f32
    %82 = vector.broadcast %cst_42 : f32 to vector<1x32xf32>
    %83 = arith.divf %81, %82 : vector<1x32xf32>
    %cst_43 = arith.constant 9.99999974E-6 : f32
    %84 = vector.broadcast %cst_43 : f32 to vector<1x32xf32>
    %85 = arith.addf %83, %84 : vector<1x32xf32>
    %86 = math.rsqrt %85 : vector<1x32xf32>
    %87 = vector.broadcast %86 : vector<1x32xf32> to vector<8x32xf32>
    %88 = arith.mulf %78, %87 : vector<8x32xf32>
    %89 = vector.broadcast %71 : vector<1x32xf32> to vector<8x32xf32>
    %90 = arith.mulf %88, %89 : vector<8x32xf32>
    %91 = vector.broadcast %72 : vector<1x32xf32> to vector<8x32xf32>
    %92 = arith.addf %90, %91 : vector<8x32xf32>
    %cst_44 = arith.constant 0.000000e+00 : f32
    %93 = vector.broadcast %cst_44 : f32 to vector<8x32xf32>
    %94 = arith.cmpf oge, %92, %93 : vector<8x32xf32>
    %cst_45 = arith.constant 0.00999999977 : f32
    %95 = vector.broadcast %cst_45 : f32 to vector<8x32xf32>
    %96 = arith.mulf %95, %92 : vector<8x32xf32>
    %97 = arith.select %94, %92, %96 : vector<8x32xi1>, vector<8x32xf32>
    %c3 = arith.constant 3 : index
    %c0_46 = arith.constant 0 : index
    %98 = vector.load %arg6[%c3, %c0_46] : memref<5x32xf32, #tpu.memory_space<vmem>>, vector<1x32xf32>
    %c4 = arith.constant 4 : index
    %c0_47 = arith.constant 0 : index
    %99 = vector.load %arg6[%c4, %c0_47] : memref<5x32xf32, #tpu.memory_space<vmem>>, vector<1x1xf32>
    %100 = vector.broadcast %98 : vector<1x32xf32> to vector<8x32xf32>
    %101 = arith.mulf %97, %100 : vector<8x32xf32>
    %cst_48 = arith.constant dense<0.000000e+00> : vector<8xf32>
    %102 = vector.multi_reduction <add>, %101, %cst_48 [1] : vector<8x32xf32> to vector<8xf32>
    %103 = vector.shape_cast %102 : vector<8xf32> to vector<8x1xf32>
    %104 = vector.broadcast %99 : vector<1x1xf32> to vector<8x1xf32>
    %105 = arith.addf %103, %104 : vector<8x1xf32>
    %cst_49 = arith.constant 0.000000e+00 : f32
    %106 = vector.broadcast %cst_49 : f32 to vector<8x1xf32>
    %107 = arith.subf %106, %105 : vector<8x1xf32>
    %108 = math.exp %107 : vector<8x1xf32>
    %cst_50 = arith.constant 1.000000e+00 : f32
    %109 = vector.broadcast %cst_50 : f32 to vector<8x1xf32>
    %110 = arith.addf %109, %108 : vector<8x1xf32>
    %cst_51 = arith.constant 1.000000e+00 : f32
    %111 = vector.broadcast %cst_51 : f32 to vector<8x1xf32>
    %112 = arith.divf %111, %110 : vector<8x1xf32>
    %c0_52 = arith.constant 0 : index
    %c0_53 = arith.constant 0 : index
    %113 = vector.load %arg7[%c0_52, %c0_53] : memref<8x1xf32, #tpu.memory_space<vmem>>, vector<8x1xf32>
    tpu.vector_store %arg7[%c0_52, %c0_53], %112 {strides = array<i32>} : memref<8x1xf32, #tpu.memory_space<vmem>>, vector<8x1xf32>,
    return
  }
}

</mosaic_0001>

<bundles_post_ra>
// kernel: tpu_custom_call.1
= control target key start
LH: loop header
LB: loop body
LE: loop exit
PB: predicated region body
PF: predicated region fallthrough
CT: control target
= control target key end

     0   :  { %12 = vsyncpa [#allocation3], 0  ;;  %s6233_s0 = inlined_call_operand.vmem [shape: bf16[8,512], index: 0, kind: input, shape index: {}]   ;;  %s6234_s1 = inlined_call_operand.hbm [shape: bf16[512,1024], index: 1, kind: input, shape index: {}]   ;;  %s6235_s2 = inlined_call_operand.vmem [shape: f32[3,1024], index: 2, kind: input, shape index: {}]   ;;  %s6236_s3 = inlined_call_operand.hbm [shape: bf16[1024,512], index: 3, kind: input, shape index: {}]   ;;  %s6237_s4 = inlined_call_operand.vmem [shape: f32[3,512], index: 4, kind: input, shape index: {}]   ;;  %s6238_s5 = inlined_call_operand.vmem [shape: f32[512,32], index: 5, kind: input, shape index: {}]   ;;  %s6239_s6 = inlined_call_operand.vmem [shape: f32[5,32], index: 6, kind: input, shape index: {}]   ;;  %s6240_s7 = inlined_call_operand.vmem [shape: f32[8,1], index: 7, kind: output, shape index: {}]  }
   0x1   :  { %13 = vsyncpa [#allocation5], 0  ;;  %s5751_s24 = smov [#allocation2]   ;;  %s5703_s28 = scalar_lea.hbm %s6234_s1, 32768 }
   0x2   :  { %s21_s25 = sshll.u32 %s5751_s24, 4  ;;  %p5704_p0 = scmp.ne.s32.totalorder %s6234_s1, %s5703_s28  ;;  %s22_s25 = int_to_ptr.vmem [resolvable:$true] %s21_s25 }
   0x3   :  { %p5707_p1 = scmp.lt.u32.totalorder %s5703_s28, %s6234_s1 }
   0x5   :  { %p5709_p2 = pnand %p5707_p1, %p5704_p0 }
   0x7   :  { %5712 = shalt.err (!%p5709_p2)
}
   0x8   :  { %s5713_s10 = scalar_lea.vmem %s22_s25, 32768  ;;  %p5718_p4 = scmp.lt.s32.totalorder %s22_s25, %s22_s25 }
   0x9   :  { %p5714_p3 = scmp.ne.s32.totalorder %s22_s25, %s5713_s10  ;;  %p5719_p5 = scmp.lt.s32.totalorder %s5713_s10, %s5713_s10 }
   0xb   :  { %p5720_p6 = por %p5719_p5, %p5718_p4 }
   0xd   :  { %p5721_p7 = pnand %p5720_p6, %p5714_p3 }
   0xf   :  { %5724 = shalt.err (!%p5721_p7)
}
  0x10   :  { %s5752_s11 = smov 512   ;;  %s5753_s12 = smov 32  }
  0x11   :  { %27 = dma.hbm_to_vmem [thread:$0]  %s6234_s1, 32768, %s22_s25, [#allocation3], %s5752_s11, %s5752_s11, %s5753_s12  }
  0x12   :  { %s5754_s15 = smov [#allocation4]   ;;  %s5725_s19 = scalar_lea.hbm %s6236_s3, 32768 }
  0x13   :  { %s35_s16 = sshll.u32 %s5754_s15, 4  ;;  %p5726_p8 = scmp.ne.s32.totalorder %s6236_s3, %s5725_s19  ;;  %s36_s16 = int_to_ptr.vmem [resolvable:$true] %s35_s16 }
  0x14   :  { %p5729_p9 = scmp.lt.u32.totalorder %s5725_s19, %s6236_s3 }
  0x16   :  { %p5731_p10 = pnand %p5729_p9, %p5726_p8 }
  0x18   :  { %5734 = shalt.err (!%p5731_p10)
}
  0x19   :  { %s5735_s24 = scalar_lea.vmem %s36_s16, 32768  ;;  %p5740_p12 = scmp.lt.s32.totalorder %s36_s16, %s36_s16 }
  0x1a   :  { %p5736_p11 = scmp.ne.s32.totalorder %s36_s16, %s5735_s24  ;;  %p5741_p13 = scmp.lt.s32.totalorder %s5735_s24, %s5735_s24 }
  0x1c   :  { %p5742_p0 = por %p5741_p13, %p5740_p12 }
  0x1e   :  { %p5743_p1 = pnand %p5742_p0, %p5736_p11 }
  0x20   :  { %5746 = shalt.err (!%p5743_p1)
}
  0x21   :  { %s5755_s1 = smov 256   ;;  %s5756_s25 = smov 16  }
  0x22   :  { %41 = dma.hbm_to_vmem [thread:$0]  %s6236_s3, 32768, %s36_s16, [#allocation5], %s5755_s1, %s5755_s1, %s5756_s25  }
  0x23   :  { %5747 = dma.done.wait [#allocation3], 32768  }
  0x24   :  { %5748 = vsyncadd [#allocation3], 4294934528 }
  0x25   :  { %5749 = dma.done.wait [#allocation5], 32768  }
  0x26   :  { %5750 = vsyncadd [#allocation5], 4294934528  ;;  %v56_v0 = vld [vmem:[#allocation2] sm:$0xff]  ;;  %v57_v2 = vld [vmem:[#allocation2 + $0x8] sm:$0xff]  ;;  %vm4502_vm12 = vcmask 261120   ;;  %vm4558_vm14 = vcmask 7168  }
  0x27   :  { %v60_v1 = vld [vmem:[#allocation2 + $0x20] sm:$0xff]  ;;  %v61_v4 = vld [vmem:[#allocation2 + $0x28] sm:$0xff] }
  0x28   :  { %v4571_v3 = vcombine.high %v56_v0, %v60_v1  ;;  %v4570_v5 = vcombine.low %v56_v0, %v60_v1  ;;  %v64_v6 = vld [vmem:[#allocation2 + $0x40] sm:$0xff]  ;;  %v4573_v8 = vcombine.high %v57_v2, %v61_v4  ;;  %v4572_v9 = vcombine.low %v57_v2, %v61_v4  ;;  %v65_v11 = vld [vmem:[#allocation2 + $0x48] sm:$0xff] }
  0x29   :  { %v68_v7 = vld [vmem:[#allocation2 + $0x60] sm:$0xff]  ;;  %v69_v12 = vld [vmem:[#allocation2 + $0x68] sm:$0xff] }
  0x2a   :  { %v4579_v10 = vcombine.high %v64_v6, %v68_v7  ;;  %v72_v13 = vld [vmem:[#allocation2 + $0x80] sm:$0xff]  ;;  %1648 = vmatprep.subr.bf16.mxu0 %v4571_v3  ;;  %v4581_v14 = vcombine.high %v65_v11, %v69_v12  ;;  %v73_v16 = vld [vmem:[#allocation2 + $0x88] sm:$0xff]  ;;  %1730 = vmatprep.subr.bf16.mxu1 %v4573_v8  ;;  %v4578_v18 = vcombine.low %v64_v6, %v68_v7 }
  0x2b   :  { %v76_v15 = vld [vmem:[#allocation2 + $0xa0] sm:$0xff]  ;;  %v77_v17 = vld [vmem:[#allocation2 + $0xa8] sm:$0xff]  ;;  %1649 = vmatpush1.bf16.msra.mxu0 %v4570_v5  ;;  %1731 = vmatpush1.bf16.msra.mxu1 %v4572_v9  ;;  %v4580_v19 = vcombine.low %v65_v11, %v69_v12 }
  0x2c   :  { %1650 = vmatprep.subr.bf16.mxu0 %v4579_v10  ;;  %v4587_v20 = vcombine.high %v72_v13, %v76_v15  ;;  %1732 = vmatprep.subr.bf16.mxu1 %v4581_v14  ;;  %v4589_v21 = vcombine.high %v73_v16, %v77_v17  ;;  %v80_v22 = vld [vmem:[#allocation2 + $0xc0] sm:$0xff]  ;;  %v81_v24 = vld [vmem:[#allocation2 + $0xc8] sm:$0xff]  ;;  %v4586_v26 = vcombine.low %v72_v13, %v76_v15 }
  0x2d   :  { %v84_v23 = vld [vmem:[#allocation2 + $0xe0] sm:$0xff]  ;;  %v85_v25 = vld [vmem:[#allocation2 + $0xe8] sm:$0xff]  ;;  %v4588_v27 = vcombine.low %v73_v16, %v77_v17 }
  0x2e   :  { %v4595_v28 = vcombine.high %v80_v22, %v84_v23  ;;  %v4597_v29 = vcombine.high %v81_v24, %v85_v25  ;;  %v88_v30 = vld [vmem:[#allocation2 + $0x100] sm:$0xff]  ;;  %v89_v32 = vld [vmem:[#allocation2 + $0x108] sm:$0xff]  ;;  %v4594_v34 = vcombine.low %v80_v22, %v84_v23  ;;  %v4596_v35 = vcombine.low %v81_v24, %v85_v25 }
  0x2f   :  { %1651 = vmatpush1.bf16.msra.mxu0 %v4578_v18  ;;  %1733 = vmatpush1.bf16.msra.mxu1 %v4580_v19  ;;  %v92_v31 = vld [vmem:[#allocation2 + $0x120] sm:$0xff]  ;;  %v93_v33 = vld [vmem:[#allocation2 + $0x128] sm:$0xff] }
  0x30   :  { %1652 = vmatprep.subr.bf16.mxu0 %v4587_v20  ;;  %1734 = vmatprep.subr.bf16.mxu1 %v4589_v21  ;;  %v4603_v36 = vcombine.high %v88_v30, %v92_v31  ;;  %v4605_v37 = vcombine.high %v89_v32, %v93_v33  ;;  %v96_v38 = vld [vmem:[#allocation2 + $0x140] sm:$0xff]  ;;  %v97_v40 = vld [vmem:[#allocation2 + $0x148] sm:$0xff]  ;;  %v4602_v42 = vcombine.low %v88_v30, %v92_v31 }
  0x31   :  { %v100_v39 = vld [vmem:[#allocation2 + $0x160] sm:$0xff]  ;;  %v101_v41 = vld [vmem:[#allocation2 + $0x168] sm:$0xff]  ;;  %v4604_v43 = vcombine.low %v89_v32, %v93_v33 }
  0x32   :  { %v4611_v44 = vcombine.high %v96_v38, %v100_v39  ;;  %v4613_v45 = vcombine.high %v97_v40, %v101_v41  ;;  %v104_v46 = vld [vmem:[#allocation2 + $0x180] sm:$0xff]  ;;  %v105_v48 = vld [vmem:[#allocation2 + $0x188] sm:$0xff]  ;;  %v4610_v50 = vcombine.low %v96_v38, %v100_v39  ;;  %v4612_v51 = vcombine.low %v97_v40, %v101_v41 }
  0x33   :  { %1653 = vmatpush1.bf16.msra.mxu0 %v4586_v26  ;;  %1735 = vmatpush1.bf16.msra.mxu1 %v4588_v27  ;;  %v108_v47 = vld [vmem:[#allocation2 + $0x1a0] sm:$0xff]  ;;  %v109_v49 = vld [vmem:[#allocation2 + $0x1a8] sm:$0xff] }
  0x34   :  { %1654 = vmatprep.subr.bf16.mxu0 %v4595_v28  ;;  %1736 = vmatprep.subr.bf16.mxu1 %v4597_v29  ;;  %v4619_v52 = vcombine.high %v104_v46, %v108_v47  ;;  %v5824_v53 = vld [vmem:[%s6233_s0] sm:$0xff]  ;;  %v4621_v54 = vcombine.high %v105_v48, %v109_v49  ;;  %v113_v58 = vld [vmem:[#allocation2 + $0x1c8] sm:$0xff]  ;;  %v4618_v60 = vcombine.low %v104_v46, %v108_v47 }
  0x35   :  { %v112_v55 = vld [vmem:[#allocation2 + $0x1c0] sm:$0xff]  ;;  %v5828_v57 = vcombine.high %v5824_v53, %v5824_v53  ;;  %v117_v59 = vld [vmem:[#allocation2 + $0x1e8] sm:$0xff]  ;;  %v4620_v61 = vcombine.low %v105_v48, %v109_v49 }
  0x36   :  { %v116_v56 = vld [vmem:[#allocation2 + $0x1e0] sm:$0xff]  ;;  %v4629_v63 = vcombine.high %v113_v58, %v117_v59  ;;  %v121_v2 = vld [vmem:[#allocation2 + $0x208] sm:$0xff]  ;;  %v4628_v5 = vcombine.low %v113_v58, %v117_v59 }
  0x37   :  { %1655 = vmatpush1.bf16.msra.mxu0 %v4594_v34  ;;  %1737 = vmatpush1.bf16.msra.mxu1 %v4596_v35  ;;  %v4627_v62 = vcombine.high %v112_v55, %v116_v56  ;;  %v120_v0 = vld [vmem:[#allocation2 + $0x200] sm:$0xff]  ;;  %v125_v3 = vld [vmem:[#allocation2 + $0x228] sm:$0xff]  ;;  %v4626_v4 = vcombine.low %v112_v55, %v116_v56 }
  0x38   :  { %1656 = vmatprep.subr.bf16.mxu0 %v4603_v36  ;;  %1738 = vmatprep.subr.bf16.mxu1 %v4605_v37  ;;  %v124_v1 = vld [vmem:[#allocation2 + $0x220] sm:$0xff]  ;;  %v4637_v7 = vcombine.high %v121_v2, %v125_v3  ;;  %v129_v10 = vld [vmem:[#allocation2 + $0x248] sm:$0xff]  ;;  %v4636_v13 = vcombine.low %v121_v2, %v125_v3 }
  0x39   :  { %1680 = vmatprep.mubr.bf16.mxu0 %v5828_v57  ;;  %1762 = vmatprep.mubr.bf16.mxu1 %v5828_v57  ;;  %v4635_v6 = vcombine.high %v120_v0, %v124_v1  ;;  %v128_v8 = vld [vmem:[#allocation2 + $0x240] sm:$0xff]  ;;  %v133_v11 = vld [vmem:[#allocation2 + $0x268] sm:$0xff]  ;;  %v4634_v12 = vcombine.low %v120_v0, %v124_v1 }
  0x3a   :  { %v132_v9 = vld [vmem:[#allocation2 + $0x260] sm:$0xff]  ;;  %v4645_v15 = vcombine.high %v129_v10, %v133_v11  ;;  %v137_v18 = vld [vmem:[#allocation2 + $0x288] sm:$0xff]  ;;  %v4644_v21 = vcombine.low %v129_v10, %v133_v11 }
  0x3b   :  { %1657 = vmatpush1.bf16.msra.mxu0 %v4602_v42  ;;  %1739 = vmatpush1.bf16.msra.mxu1 %v4604_v43  ;;  %v4643_v14 = vcombine.high %v128_v8, %v132_v9  ;;  %v136_v16 = vld [vmem:[#allocation2 + $0x280] sm:$0xff]  ;;  %v141_v19 = vld [vmem:[#allocation2 + $0x2a8] sm:$0xff]  ;;  %v4642_v20 = vcombine.low %v128_v8, %v132_v9 }
  0x3c   :  { %1658 = vmatprep.subr.bf16.mxu0 %v4611_v44  ;;  %1740 = vmatprep.subr.bf16.mxu1 %v4613_v45  ;;  %v140_v17 = vld [vmem:[#allocation2 + $0x2a0] sm:$0xff]  ;;  %v4653_v23 = vcombine.high %v137_v18, %v141_v19  ;;  %v145_v26 = vld [vmem:[#allocation2 + $0x2c8] sm:$0xff]  ;;  %v4652_v29 = vcombine.low %v137_v18, %v141_v19 }
  0x3d   :  { %v4651_v22 = vcombine.high %v136_v16, %v140_v17  ;;  %v144_v24 = vld [vmem:[#allocation2 + $0x2c0] sm:$0xff]  ;;  %v149_v27 = vld [vmem:[#allocation2 + $0x2e8] sm:$0xff]  ;;  %v4650_v28 = vcombine.low %v136_v16, %v140_v17 }
  0x3e   :  { %v148_v25 = vld [vmem:[#allocation2 + $0x2e0] sm:$0xff]  ;;  %v4661_v31 = vcombine.high %v145_v26, %v149_v27  ;;  %v153_v34 = vld [vmem:[#allocation2 + $0x308] sm:$0xff]  ;;  %v4660_v37 = vcombine.low %v145_v26, %v149_v27 }
  0x3f   :  { %1659 = vmatpush1.bf16.msra.mxu0 %v4610_v50  ;;  %1741 = vmatpush1.bf16.msra.mxu1 %v4612_v51  ;;  %v4659_v30 = vcombine.high %v144_v24, %v148_v25  ;;  %v152_v32 = vld [vmem:[#allocation2 + $0x300] sm:$0xff]  ;;  %v157_v35 = vld [vmem:[#allocation2 + $0x328] sm:$0xff]  ;;  %v4658_v36 = vcombine.low %v144_v24, %v148_v25 }
  0x40   :  { %1660 = vmatprep.subr.bf16.mxu0 %v4619_v52  ;;  %1742 = vmatprep.subr.bf16.mxu1 %v4621_v54  ;;  %v156_v33 = vld [vmem:[#allocation2 + $0x320] sm:$0xff]  ;;  %v4669_v39 = vcombine.high %v153_v34, %v157_v35  ;;  %v161_v42 = vld [vmem:[#allocation2 + $0x348] sm:$0xff]  ;;  %v4668_v45 = vcombine.low %v153_v34, %v157_v35 }
  0x41   :  { %v4667_v38 = vcombine.high %v152_v32, %v156_v33  ;;  %v160_v40 = vld [vmem:[#allocation2 + $0x340] sm:$0xff]  ;;  %v165_v43 = vld [vmem:[#allocation2 + $0x368] sm:$0xff]  ;;  %v4666_v44 = vcombine.low %v152_v32, %v156_v33 }
  0x42   :  { %v164_v41 = vld [vmem:[#allocation2 + $0x360] sm:$0xff]  ;;  %v4677_v47 = vcombine.high %v161_v42, %v165_v43  ;;  %v169_v50 = vld [vmem:[#allocation2 + $0x388] sm:$0xff]  ;;  %v4676_v54 = vcombine.low %v161_v42, %v165_v43 }
  0x43   :  { %1661 = vmatpush1.bf16.msra.mxu0 %v4618_v60  ;;  %1743 = vmatpush1.bf16.msra.mxu1 %v4620_v61  ;;  %v4675_v46 = vcombine.high %v160_v40, %v164_v41  ;;  %v168_v48 = vld [vmem:[#allocation2 + $0x380] sm:$0xff]  ;;  %v173_v51 = vld [vmem:[#allocation2 + $0x3a8] sm:$0xff]  ;;  %v4674_v52 = vcombine.low %v160_v40, %v164_v41 }
  0x44   :  { %1662 = vmatprep.subr.bf16.mxu0 %v4627_v62  ;;  %1744 = vmatprep.subr.bf16.mxu1 %v4629_v63  ;;  %v172_v49 = vld [vmem:[#allocation2 + $0x3a0] sm:$0xff]  ;;  %v4685_v56 = vcombine.high %v169_v50, %v173_v51  ;;  %v177_v60 = vld [vmem:[#allocation2 + $0x3c8] sm:$0xff]  ;;  %v4684_v63 = vcombine.low %v169_v50, %v173_v51 }
  0x45   :  { %v4683_v55 = vcombine.high %v168_v48, %v172_v49  ;;  %v176_v58 = vld [vmem:[#allocation2 + $0x3c0] sm:$0xff]  ;;  %v181_v61 = vld [vmem:[#allocation2 + $0x3e8] sm:$0xff]  ;;  %v4682_v62 = vcombine.low %v168_v48, %v172_v49 }
  0x46   :  { %v180_v59 = vld [vmem:[#allocation2 + $0x3e0] sm:$0xff]  ;;  %v4693_v1 = vcombine.high %v177_v60, %v181_v61 }
  0x47   :  { %1663 = vmatpush1.bf16.msra.mxu0 %v4626_v4  ;;  %1745 = vmatpush1.bf16.msra.mxu1 %v4628_v5  ;;  %v4691_v0 = vcombine.high %v176_v58, %v180_v59  ;;  %v184_v2 = vld [vmem:[#allocation2 + $0x400] sm:$0xff]  ;;  %v185_v4 = vld [vmem:[#allocation2 + $0x408] sm:$0xff] }
  0x48   :  { %1664 = vmatprep.subr.bf16.mxu0 %v4635_v6  ;;  %1746 = vmatprep.subr.bf16.mxu1 %v4637_v7  ;;  %v188_v3 = vld [vmem:[#allocation2 + $0x420] sm:$0xff]  ;;  %v189_v5 = vld [vmem:[#allocation2 + $0x428] sm:$0xff]  ;;  %v4690_v6 = vcombine.low %v176_v58, %v180_v59  ;;  %v4692_v7 = vcombine.low %v177_v60, %v181_v61 }
  0x49   :  { %v4699_v8 = vcombine.high %v184_v2, %v188_v3  ;;  %v4701_v9 = vcombine.high %v185_v4, %v189_v5  ;;  %v192_v10 = vld [vmem:[#allocation2 + $0x440] sm:$0xff]  ;;  %v4698_v16 = vcombine.low %v184_v2, %v188_v3  ;;  %v4700_v17 = vcombine.low %v185_v4, %v189_v5 }
  0x4a   :  { %v196_v11 = vld [vmem:[#allocation2 + $0x460] sm:$0xff] }
  0x4b   :  { %1665 = vmatpush1.bf16.msra.mxu0 %v4634_v12  ;;  %1747 = vmatpush1.bf16.msra.mxu1 %v4636_v13  ;;  %v5834_v12 = vcombine.low %v5824_v53, %v5824_v53  ;;  %v193_v13 = vld [vmem:[#allocation2 + $0x448] sm:$0xff]  ;;  %v4707_v18 = vcombine.high %v192_v10, %v196_v11  ;;  %v200_v19 = vld [vmem:[#allocation2 + $0x480] sm:$0xff]  ;;  %v4706_v24 = vcombine.low %v192_v10, %v196_v11 }
  0x4c   :  { %1666 = vmatprep.subr.bf16.mxu0 %v4643_v14  ;;  %1748 = vmatprep.subr.bf16.mxu1 %v4645_v15  ;;  %v197_v14 = vld [vmem:[#allocation2 + $0x468] sm:$0xff]  ;;  %v208_v27 = vld [vmem:[#allocation2 + $0x4c0] sm:$0xff] }
  0x4d   :  { %v5839_v15 = vld [vmem:[%s6233_s0 + $0x8] sm:$0xff]  ;;  %v4708_v25 = vcombine.low %v193_v13, %v197_v14  ;;  %v216_v35 = vld [vmem:[#allocation2 + $0x500] sm:$0xff] }
  0x4e   :  { %v205_v53 = vld [vmem:[#allocation2 + $0x4a8] sm:$0xff]  ;;  %v224_v43 = vld [vmem:[#allocation2 + $0x540] sm:$0xff] }
  0x4f   :  { %1667 = vmatpush1.bf16.msra.mxu0 %v4642_v20  ;;  %1749 = vmatpush1.bf16.msra.mxu1 %v4644_v21  ;;  %v204_v20 = vld [vmem:[#allocation2 + $0x4a0] sm:$0xff]  ;;  %v201_v21 = vld [vmem:[#allocation2 + $0x488] sm:$0xff] }
  0x50   :  { %1668 = vmatprep.subr.bf16.mxu0 %v4651_v22  ;;  %1750 = vmatprep.subr.bf16.mxu1 %v4653_v23  ;;  %v4709_v22 = vcombine.high %v193_v13, %v197_v14  ;;  %v5843_v23 = vcombine.high %v5839_v15, %v5839_v15  ;;  %v4715_v26 = vcombine.high %v200_v19, %v204_v20  ;;  %v232_v51 = vld [vmem:[#allocation2 + $0x580] sm:$0xff] }
  0x51   :  { %v4714_v32 = vcombine.low %v200_v19, %v204_v20  ;;  %v4716_v33 = vcombine.low %v201_v21, %v205_v53  ;;  %v240_v61 = vld [vmem:[#allocation2 + $0x5c0] sm:$0xff]  ;;  %v261_v19 = vld [vmem:[#allocation2 + $0x668] sm:$0xff] }
  0x52   :  { %v248_v5 = vld [vmem:[#allocation2 + $0x600] sm:$0xff] }
  0x53   :  { %1669 = vmatpush1.bf16.msra.mxu0 %v4650_v28  ;;  %1751 = vmatpush1.bf16.msra.mxu1 %v4652_v29  ;;  %v212_v28 = vld [vmem:[#allocation2 + $0x4e0] sm:$0xff]  ;;  %v209_v29 = vld [vmem:[#allocation2 + $0x4c8] sm:$0xff] }
  0x54   :  { %1670 = vmatprep.subr.bf16.mxu0 %v4659_v30  ;;  %1752 = vmatprep.subr.bf16.mxu1 %v4661_v31  ;;  %v4717_v30 = vcombine.high %v201_v21, %v205_v53  ;;  %v213_v31 = vld [vmem:[#allocation2 + $0x4e8] sm:$0xff]  ;;  %v4723_v34 = vcombine.high %v208_v27, %v212_v28  ;;  %v4722_v40 = vcombine.low %v208_v27, %v212_v28  ;;  %v256_v14 = vld [vmem:[#allocation2 + $0x640] sm:$0xff] }
  0x55   :  { %v4724_v41 = vcombine.low %v209_v29, %v213_v31  ;;  %v264_v53 = vld [vmem:[#allocation2 + $0x680] sm:$0xff]  ;;  %v269_v27 = vld [vmem:[#allocation2 + $0x6a8] sm:$0xff] }
  0x57   :  { %1671 = vmatpush1.bf16.msra.mxu0 %v4658_v36  ;;  %1753 = vmatpush1.bf16.msra.mxu1 %v4660_v37  ;;  %v220_v36 = vld [vmem:[#allocation2 + $0x520] sm:$0xff]  ;;  %v217_v37 = vld [vmem:[#allocation2 + $0x508] sm:$0xff] }
  0x58   :  { %1672 = vmatprep.subr.bf16.mxu0 %v4667_v38  ;;  %1754 = vmatprep.subr.bf16.mxu1 %v4669_v39  ;;  %v4725_v38 = vcombine.high %v209_v29, %v213_v31  ;;  %v221_v39 = vld [vmem:[#allocation2 + $0x528] sm:$0xff]  ;;  %v4731_v42 = vcombine.high %v216_v35, %v220_v36  ;;  %v4730_v48 = vcombine.low %v216_v35, %v220_v36  ;;  %v272_v31 = vld [vmem:[#allocation2 + $0x6c0] sm:$0xff] }
  0x59   :  { %v4732_v49 = vcombine.low %v217_v37, %v221_v39  ;;  %v277_v35 = vld [vmem:[#allocation2 + $0x6e8] sm:$0xff] }
  0x5b   :  { %1673 = vmatpush1.bf16.msra.mxu0 %v4666_v44  ;;  %1755 = vmatpush1.bf16.msra.mxu1 %v4668_v45  ;;  %v228_v44 = vld [vmem:[#allocation2 + $0x560] sm:$0xff]  ;;  %v225_v45 = vld [vmem:[#allocation2 + $0x548] sm:$0xff] }
  0x5c   :  { %1674 = vmatprep.subr.bf16.mxu0 %v4675_v46  ;;  %1756 = vmatprep.subr.bf16.mxu1 %v4677_v47  ;;  %v4733_v46 = vcombine.high %v217_v37, %v221_v39  ;;  %v229_v47 = vld [vmem:[#allocation2 + $0x568] sm:$0xff]  ;;  %v4739_v50 = vcombine.high %v224_v43, %v228_v44  ;;  %v4738_v58 = vcombine.low %v224_v43, %v228_v44  ;;  %v280_v39 = vld [vmem:[#allocation2 + $0x700] sm:$0xff] }
  0x5d   :  { %v4740_v59 = vcombine.low %v225_v45, %v229_v47  ;;  %v285_v43 = vld [vmem:[#allocation2 + $0x728] sm:$0xff] }
  0x5f   :  { %1675 = vmatpush1.bf16.msra.mxu0 %v4674_v52  ;;  %1757 = vmatpush1.bf16.msra.mxu1 %v4676_v54  ;;  %v236_v52 = vld [vmem:[#allocation2 + $0x5a0] sm:$0xff]  ;;  %v233_v54 = vld [vmem:[#allocation2 + $0x588] sm:$0xff] }
  0x60   :  { %1676 = vmatprep.subr.bf16.mxu0 %v4683_v55  ;;  %1758 = vmatprep.subr.bf16.mxu1 %v4685_v56  ;;  %v4741_v55 = vcombine.high %v225_v45, %v229_v47  ;;  %v237_v56 = vld [vmem:[#allocation2 + $0x5a8] sm:$0xff]  ;;  %v4747_v60 = vcombine.high %v232_v51, %v236_v52  ;;  %v4746_v2 = vcombine.low %v232_v51, %v236_v52  ;;  %v288_v47 = vld [vmem:[#allocation2 + $0x740] sm:$0xff] }
  0x61   :  { %v4748_v3 = vcombine.low %v233_v54, %v237_v56  ;;  %v293_v51 = vld [vmem:[#allocation2 + $0x768] sm:$0xff] }
  0x63   :  { %1677 = vmatpush1.bf16.msra.mxu0 %v4682_v62  ;;  %1759 = vmatpush1.bf16.msra.mxu1 %v4684_v63  ;;  %v244_v62 = vld [vmem:[#allocation2 + $0x5e0] sm:$0xff]  ;;  %v241_v63 = vld [vmem:[#allocation2 + $0x5c8] sm:$0xff] }
  0x64   :  { %1678 = vmatprep.subr.bf16.mxu0 %v4691_v0  ;;  %1760 = vmatprep.subr.bf16.mxu1 %v4693_v1  ;;  %v4749_v0 = vcombine.high %v233_v54, %v237_v56  ;;  %v245_v1 = vld [vmem:[#allocation2 + $0x5e8] sm:$0xff]  ;;  %v4755_v4 = vcombine.high %v240_v61, %v244_v62  ;;  %v4754_v10 = vcombine.low %v240_v61, %v244_v62  ;;  %v296_v56 = vld [vmem:[#allocation2 + $0x780] sm:$0xff] }
  0x65   :  { %v4756_v11 = vcombine.low %v241_v63, %v245_v1  ;;  %v301_v61 = vld [vmem:[#allocation2 + $0x7a8] sm:$0xff] }
  0x67   :  { %1679 = vmatpush1.bf16.msra.mxu0 %v4690_v6  ;;  %1761 = vmatpush1.bf16.msra.mxu1 %v4692_v7  ;;  %v252_v6 = vld [vmem:[#allocation2 + $0x620] sm:$0xff]  ;;  %v249_v7 = vld [vmem:[#allocation2 + $0x608] sm:$0xff] }
  0x68   :  { %1689 = vmatprep.subr.bf16.mxu0 %v4699_v8  ;;  %1771 = vmatprep.subr.bf16.mxu1 %v4701_v9  ;;  %v4757_v8 = vcombine.high %v241_v63, %v245_v1  ;;  %v253_v9 = vld [vmem:[#allocation2 + $0x628] sm:$0xff]  ;;  %v4763_v13 = vcombine.high %v248_v5, %v252_v6  ;;  %v4762_v20 = vcombine.low %v248_v5, %v252_v6  ;;  %v304_v1 = vld [vmem:[#allocation2 + $0x7c0] sm:$0xff] }
  0x69   :  { %v4764_v21 = vcombine.low %v249_v7, %v253_v9  ;;  %v309_v5 = vld [vmem:[#allocation2 + $0x7e8] sm:$0xff] }
  0x6a   :  { %1681 = vmatmul.mubr.bf16.vlgmr.msra.gmra.mrb[0].mxu0 %v5834_v12  ;;  %1763 = vmatmul.mubr.bf16.vlgmr.msra.gmra.mrb[0].mxu1 %v5834_v12 }
  0x6b   :  { %1690 = vmatpush1.bf16.msra.mxu0 %v4698_v16  ;;  %1772 = vmatpush1.bf16.msra.mxu1 %v4700_v17  ;;  %v260_v16 = vld [vmem:[#allocation2 + $0x660] sm:$0xff]  ;;  %v257_v17 = vld [vmem:[#allocation2 + $0x648] sm:$0xff] }
  0x6c   :  { %1691 = vmatprep.subr.bf16.mxu0 %v4707_v18  ;;  %1773 = vmatprep.subr.bf16.mxu1 %v4709_v22  ;;  %v4765_v18 = vcombine.high %v249_v7, %v253_v9  ;;  %v4771_v22 = vcombine.high %v256_v14, %v260_v16  ;;  %v4770_v28 = vcombine.low %v256_v14, %v260_v16  ;;  %v58_v9 = vld [vmem:[#allocation2 + $0x10] sm:$0xff]  ;;  %v63_v14 = vld [vmem:[#allocation2 + $0x38] sm:$0xff] }
  0x6d   :  { %1721 = vmatprep.mubr.bf16.mxu0 %v5843_v23  ;;  %1803 = vmatprep.mubr.bf16.mxu1 %v5843_v23  ;;  %v4772_v29 = vcombine.low %v257_v17, %v261_v19 }
  0x6f   :  { %1692 = vmatpush1.bf16.msra.mxu0 %v4706_v24  ;;  %1774 = vmatpush1.bf16.msra.mxu1 %v4708_v25  ;;  %v268_v24 = vld [vmem:[#allocation2 + $0x6a0] sm:$0xff]  ;;  %v265_v25 = vld [vmem:[#allocation2 + $0x688] sm:$0xff] }
  0x70   :  { %1693 = vmatprep.subr.bf16.mxu0 %v4715_v26  ;;  %1775 = vmatprep.subr.bf16.mxu1 %v4717_v30  ;;  %v4773_v26 = vcombine.high %v257_v17, %v261_v19  ;;  %v4779_v30 = vcombine.high %v264_v53, %v268_v24  ;;  %v4778_v36 = vcombine.low %v264_v53, %v268_v24  ;;  %v66_v19 = vld [vmem:[#allocation2 + $0x50] sm:$0xff]  ;;  %v71_v53 = vld [vmem:[#allocation2 + $0x78] sm:$0xff] }
  0x71   :  { %v4780_v37 = vcombine.low %v265_v25, %v269_v27  ;;  %v5851_v24 = vcombine.low %v5839_v15, %v5839_v15  ;;  %v82_v15 = vld [vmem:[#allocation2 + $0xd0] sm:$0xff] }
  0x73   :  { %1694 = vmatpush1.bf16.msra.mxu0 %v4714_v32  ;;  %1776 = vmatpush1.bf16.msra.mxu1 %v4716_v33  ;;  %v276_v32 = vld [vmem:[#allocation2 + $0x6e0] sm:$0xff]  ;;  %v273_v33 = vld [vmem:[#allocation2 + $0x6c8] sm:$0xff] }
  0x74   :  { %1695 = vmatprep.subr.bf16.mxu0 %v4723_v34  ;;  %1777 = vmatprep.subr.bf16.mxu1 %v4725_v38  ;;  %v4781_v34 = vcombine.high %v265_v25, %v269_v27  ;;  %v4787_v38 = vcombine.high %v272_v31, %v276_v32  ;;  %v4786_v44 = vcombine.low %v272_v31, %v276_v32  ;;  %v78_v27 = vld [vmem:[#allocation2 + $0xb0] sm:$0xff]  ;;  %v79_v31 = vld [vmem:[#allocation2 + $0xb8] sm:$0xff] }
  0x75   :  { %v4788_v45 = vcombine.low %v273_v33, %v277_v35 }
  0x77   :  { %1696 = vmatpush1.bf16.msra.mxu0 %v4722_v40  ;;  %1778 = vmatpush1.bf16.msra.mxu1 %v4724_v41  ;;  %v284_v40 = vld [vmem:[#allocation2 + $0x720] sm:$0xff]  ;;  %v281_v41 = vld [vmem:[#allocation2 + $0x708] sm:$0xff] }
  0x78   :  { %1697 = vmatprep.subr.bf16.mxu0 %v4731_v42  ;;  %1779 = vmatprep.subr.bf16.mxu1 %v4733_v46  ;;  %v4789_v42 = vcombine.high %v273_v33, %v277_v35  ;;  %v4795_v46 = vcombine.high %v280_v39, %v284_v40  ;;  %v4794_v52 = vcombine.low %v280_v39, %v284_v40 }
  0x79   :  { %v4796_v54 = vcombine.low %v281_v41, %v285_v43 }
  0x7b   :  { %1698 = vmatpush1.bf16.msra.mxu0 %v4730_v48  ;;  %1780 = vmatpush1.bf16.msra.mxu1 %v4732_v49  ;;  %v292_v48 = vld [vmem:[#allocation2 + $0x760] sm:$0xff]  ;;  %v289_v49 = vld [vmem:[#allocation2 + $0x748] sm:$0xff] }
  0x7c   :  { %1699 = vmatprep.subr.bf16.mxu0 %v4739_v50  ;;  %1781 = vmatprep.subr.bf16.mxu1 %v4741_v55  ;;  %v4797_v50 = vcombine.high %v281_v41, %v285_v43  ;;  %v4803_v55 = vcombine.high %v288_v47, %v292_v48  ;;  %v4802_v62 = vcombine.low %v288_v47, %v292_v48  ;;  %v90_v41 = vld [vmem:[#allocation2 + $0x110] sm:$0xff] }
  0x7d   :  { %v4804_v63 = vcombine.low %v289_v49, %v293_v51 }
  0x7f   :  { %1700 = vmatpush1.bf16.msra.mxu0 %v4738_v58  ;;  %1782 = vmatpush1.bf16.msra.mxu1 %v4740_v59  ;;  %v300_v58 = vld [vmem:[#allocation2 + $0x7a0] sm:$0xff]  ;;  %v297_v59 = vld [vmem:[#allocation2 + $0x788] sm:$0xff] }
  0x80   :  { %1701 = vmatprep.subr.bf16.mxu0 %v4747_v60  ;;  %1783 = vmatprep.subr.bf16.mxu1 %v4749_v0  ;;  %v4805_v60 = vcombine.high %v289_v49, %v293_v51  ;;  %v4811_v0 = vcombine.high %v296_v56, %v300_v58  ;;  %v4810_v6 = vcombine.low %v296_v56, %v300_v58  ;;  %v98_v49 = vld [vmem:[#allocation2 + $0x150] sm:$0xff] }
  0x81   :  { %v4812_v7 = vcombine.low %v297_v59, %v301_v61  ;;  %v106_v58 = vld [vmem:[#allocation2 + $0x190] sm:$0xff] }
  0x83   :  { %1702 = vmatpush1.bf16.msra.mxu0 %v4746_v2  ;;  %1784 = vmatpush1.bf16.msra.mxu1 %v4748_v3  ;;  %v308_v2 = vld [vmem:[#allocation2 + $0x7e0] sm:$0xff]  ;;  %v305_v3 = vld [vmem:[#allocation2 + $0x7c8] sm:$0xff] }
  0x84   :  { %1703 = vmatprep.subr.bf16.mxu0 %v4755_v4  ;;  %1785 = vmatprep.subr.bf16.mxu1 %v4757_v8  ;;  %v4813_v4 = vcombine.high %v297_v59, %v301_v61  ;;  %v4819_v8 = vcombine.high %v304_v1, %v308_v2  ;;  %v4818_v16 = vcombine.low %v304_v1, %v308_v2  ;;  %v110_v59 = vld [vmem:[#allocation2 + $0x1b0] sm:$0xff] }
  0x85   :  { %v4820_v17 = vcombine.low %v305_v3, %v309_v5  ;;  %v114_v2 = vld [vmem:[#allocation2 + $0x1d0] sm:$0xff] }
  0x87   :  { %1704 = vmatpush1.bf16.msra.mxu0 %v4754_v10  ;;  %1786 = vmatpush1.bf16.msra.mxu1 %v4756_v11  ;;  %v62_v10 = vld [vmem:[#allocation2 + $0x30] sm:$0xff]  ;;  %v59_v11 = vld [vmem:[#allocation2 + $0x18] sm:$0xff] }
  0x88   :  { %1705 = vmatprep.subr.bf16.mxu0 %v4763_v13  ;;  %1787 = vmatprep.subr.bf16.mxu1 %v4765_v18  ;;  %v4821_v13 = vcombine.high %v305_v3, %v309_v5  ;;  %v4575_v18 = vcombine.high %v58_v9, %v62_v10  ;;  %v4574_v25 = vcombine.low %v58_v9, %v62_v10  ;;  %v118_v3 = vld [vmem:[#allocation2 + $0x1f0] sm:$0xff] }
  0x89   :  { %v4623_v5 = vcombine.high %v106_v58, %v110_v59  ;;  %v4622_v9 = vcombine.low %v106_v58, %v110_v59  ;;  %v122_v10 = vld [vmem:[#allocation2 + $0x210] sm:$0xff]  ;;  %v163_v58 = vld [vmem:[#allocation2 + $0x358] sm:$0xff] }
  0x8a   :  { %v167_v59 = vld [vmem:[#allocation2 + $0x378] sm:$0xff] }
  0x8b   :  { %1706 = vmatpush1.bf16.msra.mxu0 %v4762_v20  ;;  %1788 = vmatpush1.bf16.msra.mxu1 %v4764_v21  ;;  %v70_v20 = vld [vmem:[#allocation2 + $0x70] sm:$0xff]  ;;  %v67_v21 = vld [vmem:[#allocation2 + $0x58] sm:$0xff] }
  0x8c   :  { %1707 = vmatprep.subr.bf16.mxu0 %v4771_v22  ;;  %1789 = vmatprep.subr.bf16.mxu1 %v4773_v26  ;;  %v4577_v22 = vcombine.high %v59_v11, %v63_v14  ;;  %v74_v26 = vld [vmem:[#allocation2 + $0x90] sm:$0xff]  ;;  %v4585_v32 = vcombine.high %v67_v21, %v71_v53  ;;  %v4582_v33 = vcombine.low %v66_v19, %v70_v20 }
  0x8d   :  { %v4584_v35 = vcombine.low %v67_v21, %v71_v53  ;;  %v4590_v40 = vcombine.low %v74_v26, %v78_v27  ;;  %v134_v21 = vld [vmem:[#allocation2 + $0x270] sm:$0xff] }
  0x8f   :  { %1708 = vmatpush1.bf16.msra.mxu0 %v4770_v28  ;;  %1790 = vmatpush1.bf16.msra.mxu1 %v4772_v29  ;;  %v4576_v28 = vcombine.low %v59_v11, %v63_v14  ;;  %v4583_v29 = vcombine.high %v66_v19, %v70_v20  ;;  %v126_v11 = vld [vmem:[#allocation2 + $0x230] sm:$0xff]  ;;  %v4631_v14 = vcombine.high %v114_v2, %v118_v3 }
  0x90   :  { %1709 = vmatprep.subr.bf16.mxu0 %v4779_v30  ;;  %1791 = vmatprep.subr.bf16.mxu1 %v4781_v34  ;;  %v75_v30 = vld [vmem:[#allocation2 + $0x98] sm:$0xff]  ;;  %v86_v34 = vld [vmem:[#allocation2 + $0xf0] sm:$0xff]  ;;  %v4630_v19 = vcombine.low %v114_v2, %v118_v3  ;;  %v4639_v53 = vcombine.high %v122_v10, %v126_v11 }
  0x91   :  { %v4593_v39 = vcombine.high %v75_v30, %v79_v31  ;;  %v4592_v43 = vcombine.low %v75_v30, %v79_v31  ;;  %v4598_v48 = vcombine.low %v82_v15, %v86_v34  ;;  %v130_v20 = vld [vmem:[#allocation2 + $0x250] sm:$0xff]  ;;  %v171_v2 = vld [vmem:[#allocation2 + $0x398] sm:$0xff] }
  0x92   :  { %v142_v30 = vld [vmem:[#allocation2 + $0x2b0] sm:$0xff]  ;;  %v175_v3 = vld [vmem:[#allocation2 + $0x3b8] sm:$0xff] }
  0x93   :  { %1710 = vmatpush1.bf16.msra.mxu0 %v4778_v36  ;;  %1792 = vmatpush1.bf16.msra.mxu1 %v4780_v37  ;;  %v4591_v36 = vcombine.high %v74_v26, %v78_v27  ;;  %v83_v37 = vld [vmem:[#allocation2 + $0xd8] sm:$0xff] }
  0x94   :  { %1711 = vmatprep.subr.bf16.mxu0 %v4787_v38  ;;  %1793 = vmatprep.subr.bf16.mxu1 %v4789_v42  ;;  %v87_v38 = vld [vmem:[#allocation2 + $0xf8] sm:$0xff]  ;;  %v94_v42 = vld [vmem:[#allocation2 + $0x130] sm:$0xff] }
  0x95   :  { %v4601_v47 = vcombine.high %v83_v37, %v87_v38  ;;  %v4600_v51 = vcombine.low %v83_v37, %v87_v38  ;;  %v4606_v56 = vcombine.low %v90_v41, %v94_v42  ;;  %v135_v26 = vld [vmem:[#allocation2 + $0x278] sm:$0xff]  ;;  %v150_v37 = vld [vmem:[#allocation2 + $0x2f0] sm:$0xff] }
  0x97   :  { %1712 = vmatpush1.bf16.msra.mxu0 %v4786_v44  ;;  %1794 = vmatpush1.bf16.msra.mxu1 %v4788_v45  ;;  %v4599_v44 = vcombine.high %v82_v15, %v86_v34  ;;  %v91_v45 = vld [vmem:[#allocation2 + $0x118] sm:$0xff] }
  0x98   :  { %1713 = vmatprep.subr.bf16.mxu0 %v4795_v46  ;;  %1795 = vmatprep.subr.bf16.mxu1 %v4797_v50  ;;  %v95_v46 = vld [vmem:[#allocation2 + $0x138] sm:$0xff]  ;;  %v102_v50 = vld [vmem:[#allocation2 + $0x170] sm:$0xff] }
  0x99   :  { %v4615_v61 = vcombine.high %v98_v49, %v102_v50  ;;  %v4614_v1 = vcombine.low %v98_v49, %v102_v50  ;;  %v143_v15 = vld [vmem:[#allocation2 + $0x2b8] sm:$0xff] }
  0x9a   :  { %v159_v49 = vld [vmem:[#allocation2 + $0x338] sm:$0xff] }
  0x9b   :  { %1714 = vmatpush1.bf16.msra.mxu0 %v4794_v52  ;;  %1796 = vmatpush1.bf16.msra.mxu1 %v4796_v54  ;;  %v99_v52 = vld [vmem:[#allocation2 + $0x158] sm:$0xff] }
  0x9c   :  { %1715 = vmatprep.subr.bf16.mxu0 %v4803_v55  ;;  %1797 = vmatprep.subr.bf16.mxu1 %v4805_v60  ;;  %v103_v54 = vld [vmem:[#allocation2 + $0x178] sm:$0xff]  ;;  %v4609_v55 = vcombine.high %v91_v45, %v95_v46  ;;  %v4608_v60 = vcombine.low %v91_v45, %v95_v46  ;;  %v158_v45 = vld [vmem:[#allocation2 + $0x330] sm:$0xff] }
  0x9f   :  { %1716 = vmatpush1.bf16.msra.mxu0 %v4802_v62  ;;  %1798 = vmatpush1.bf16.msra.mxu1 %v4804_v63  ;;  %v107_v62 = vld [vmem:[#allocation2 + $0x198] sm:$0xff] }
  0xa0   :  { %1717 = vmatprep.subr.bf16.mxu0 %v4811_v0  ;;  %1799 = vmatprep.subr.bf16.mxu1 %v4813_v4  ;;  %v111_v63 = vld [vmem:[#allocation2 + $0x1b8] sm:$0xff]  ;;  %v4617_v0 = vcombine.high %v99_v52, %v103_v54  ;;  %v4616_v4 = vcombine.low %v99_v52, %v103_v54 }
  0xa3   :  { %1718 = vmatpush1.bf16.msra.mxu0 %v4810_v6  ;;  %1800 = vmatpush1.bf16.msra.mxu1 %v4812_v7  ;;  %v115_v6 = vld [vmem:[#allocation2 + $0x1d8] sm:$0xff] }
  0xa4   :  { %1719 = vmatprep.subr.bf16.mxu0 %v4819_v8  ;;  %1801 = vmatprep.subr.bf16.mxu1 %v4821_v13  ;;  %v119_v7 = vld [vmem:[#allocation2 + $0x1f8] sm:$0xff]  ;;  %v4625_v8 = vcombine.high %v107_v62, %v111_v63  ;;  %v4624_v13 = vcombine.low %v107_v62, %v111_v63  ;;  %v4681_v63 = vcombine.high %v163_v58, %v167_v59 }
  0xa7   :  { %1720 = vmatpush1.bf16.msra.mxu0 %v4818_v16  ;;  %1802 = vmatpush1.bf16.msra.mxu1 %v4820_v17  ;;  %v123_v16 = vld [vmem:[#allocation2 + $0x218] sm:$0xff] }
  0xa8   :  { %1812 = vmatprep.subr.bf16.mxu0 %v4575_v18  ;;  %1894 = vmatprep.subr.bf16.mxu1 %v4577_v22  ;;  %v127_v17 = vld [vmem:[#allocation2 + $0x238] sm:$0xff]  ;;  %v4633_v18 = vcombine.high %v115_v6, %v119_v7  ;;  %v4632_v22 = vcombine.low %v115_v6, %v119_v7  ;;  %v4689_v7 = vcombine.high %v171_v2, %v175_v3 }
  0xa9   :  { %v4641_v27 = vcombine.high %v123_v16, %v127_v17  ;;  %v4640_v31 = vcombine.low %v123_v16, %v127_v17 }
  0xaa   :  { %1722 = vmatmul.mubr.bf16.vlgmr.msra.gmra.mrb[0].mxu0 %v5851_v24  ;;  %1804 = vmatmul.mubr.bf16.vlgmr.msra.gmra.mrb[0].mxu1 %v5851_v24 }
  0xab   :  { %1813 = vmatpush1.bf16.msra.mxu0 %v4574_v25  ;;  %1895 = vmatpush1.bf16.msra.mxu1 %v4576_v28  ;;  %v131_v25 = vld [vmem:[#allocation2 + $0x258] sm:$0xff]  ;;  %v4638_v28 = vcombine.low %v122_v10, %v126_v11 }
  0xac   :  { %1814 = vmatprep.subr.bf16.mxu0 %v4583_v29  ;;  %1896 = vmatprep.subr.bf16.mxu1 %v4585_v32  ;;  %v138_v29 = vld [vmem:[#allocation2 + $0x290] sm:$0xff]  ;;  %v4647_v32 = vcombine.high %v130_v20, %v134_v21  ;;  %v4649_v34 = vcombine.high %v131_v25, %v135_v26  ;;  %v4648_v38 = vcombine.low %v131_v25, %v135_v26  ;;  %v179_v10 = vld [vmem:[#allocation2 + $0x3d8] sm:$0xff] }
  0xad   :  { %1844 = vmatprep.mubr.bf16.mxu0 %v5828_v57  ;;  %1926 = vmatprep.mubr.bf16.mxu1 %v5828_v57  ;;  %v4607_v57 = vcombine.high %v90_v41, %v94_v42  ;;  %v151_v41 = vld [vmem:[#allocation2 + $0x2f8] sm:$0xff] }
  0xae   :  { %v183_v11 = vld [vmem:[#allocation2 + $0x3f8] sm:$0xff] }
  0xaf   :  { %1815 = vmatpush1.bf16.msra.mxu0 %v4582_v33  ;;  %1897 = vmatpush1.bf16.msra.mxu1 %v4584_v35  ;;  %v139_v33 = vld [vmem:[#allocation2 + $0x298] sm:$0xff]  ;;  %v4646_v35 = vcombine.low %v130_v20, %v134_v21  ;;  %v4697_v17 = vcombine.high %v179_v10, %v183_v11 }
  0xb0   :  { %1816 = vmatprep.subr.bf16.mxu0 %v4591_v36  ;;  %1898 = vmatprep.subr.bf16.mxu1 %v4593_v39  ;;  %v146_v36 = vld [vmem:[#allocation2 + $0x2d0] sm:$0xff]  ;;  %v4655_v39 = vcombine.high %v138_v29, %v142_v30  ;;  %v4657_v42 = vcombine.high %v139_v33, %v143_v15  ;;  %v4656_v46 = vcombine.low %v139_v33, %v143_v15  ;;  %v187_v20 = vld [vmem:[#allocation2 + $0x418] sm:$0xff] }
  0xb1   :  { %v191_v21 = vld [vmem:[#allocation2 + $0x438] sm:$0xff] }
  0xb2   :  { %v4705_v26 = vcombine.high %v187_v20, %v191_v21 }
  0xb3   :  { %1817 = vmatpush1.bf16.msra.mxu0 %v4590_v40  ;;  %1899 = vmatpush1.bf16.msra.mxu1 %v4592_v43  ;;  %v147_v40 = vld [vmem:[#allocation2 + $0x2d8] sm:$0xff]  ;;  %v4654_v43 = vcombine.low %v138_v29, %v142_v30 }
  0xb4   :  { %1818 = vmatprep.subr.bf16.mxu0 %v4599_v44  ;;  %1900 = vmatprep.subr.bf16.mxu1 %v4601_v47  ;;  %v154_v44 = vld [vmem:[#allocation2 + $0x310] sm:$0xff]  ;;  %v4663_v47 = vcombine.high %v146_v36, %v150_v37  ;;  %v4665_v50 = vcombine.high %v147_v40, %v151_v41  ;;  %v195_v29 = vld [vmem:[#allocation2 + $0x458] sm:$0xff] }
  0xb5   :  { %v4671_v52 = vcombine.high %v154_v44, %v158_v45  ;;  %v199_v30 = vld [vmem:[#allocation2 + $0x478] sm:$0xff] }
  0xb6   :  { %v4713_v15 = vcombine.high %v195_v29, %v199_v30 }
  0xb7   :  { %1819 = vmatpush1.bf16.msra.mxu0 %v4598_v48  ;;  %1901 = vmatpush1.bf16.msra.mxu1 %v4600_v51  ;;  %v155_v48 = vld [vmem:[#allocation2 + $0x318] sm:$0xff]  ;;  %v4662_v51 = vcombine.low %v146_v36, %v150_v37 }
  0xb8   :  { %1820 = vmatprep.subr.bf16.mxu0 %v4607_v57  ;;  %1902 = vmatprep.subr.bf16.mxu1 %v4609_v55  ;;  %v4664_v57 = vcombine.low %v147_v40, %v151_v41  ;;  %v4673_v54 = vcombine.high %v155_v48, %v159_v49  ;;  %v162_v55 = vld [vmem:[#allocation2 + $0x350] sm:$0xff]  ;;  %v203_v36 = vld [vmem:[#allocation2 + $0x498] sm:$0xff] }
  0xb9   :  { %v207_v37 = vld [vmem:[#allocation2 + $0x4b8] sm:$0xff] }
  0xba   :  { %v4721_v41 = vcombine.high %v203_v36, %v207_v37 }
  0xbb   :  { %1821 = vmatpush1.bf16.msra.mxu0 %v4606_v56  ;;  %1903 = vmatpush1.bf16.msra.mxu1 %v4608_v60  ;;  %v166_v56 = vld [vmem:[#allocation2 + $0x370] sm:$0xff]  ;;  %v4670_v60 = vcombine.low %v154_v44, %v158_v45  ;;  %v211_v44 = vld [vmem:[#allocation2 + $0x4d8] sm:$0xff] }
  0xbc   :  { %1822 = vmatprep.subr.bf16.mxu0 %v4615_v61  ;;  %1904 = vmatprep.subr.bf16.mxu1 %v4617_v0  ;;  %v4672_v61 = vcombine.low %v155_v48, %v159_v49  ;;  %v4679_v62 = vcombine.high %v162_v55, %v166_v56  ;;  %v170_v0 = vld [vmem:[#allocation2 + $0x390] sm:$0xff]  ;;  %v215_v45 = vld [vmem:[#allocation2 + $0x4f8] sm:$0xff] }
  0xbd   :  { %v4729_v48 = vcombine.high %v211_v44, %v215_v45  ;;  %v218_v49 = vld [vmem:[#allocation2 + $0x510] sm:$0xff] }
  0xbf   :  { %1823 = vmatpush1.bf16.msra.mxu0 %v4614_v1  ;;  %1905 = vmatpush1.bf16.msra.mxu1 %v4616_v4  ;;  %v174_v1 = vld [vmem:[#allocation2 + $0x3b0] sm:$0xff]  ;;  %v4678_v4 = vcombine.low %v162_v55, %v166_v56 }
  0xc0   :  { %1824 = vmatprep.subr.bf16.mxu0 %v4623_v5  ;;  %1906 = vmatprep.subr.bf16.mxu1 %v4625_v8  ;;  %v4680_v5 = vcombine.low %v163_v58, %v167_v59  ;;  %v4687_v6 = vcombine.high %v170_v0, %v174_v1  ;;  %v178_v8 = vld [vmem:[#allocation2 + $0x3d0] sm:$0xff]  ;;  %v227_v59 = vld [vmem:[#allocation2 + $0x558] sm:$0xff] }
  0xc1   :  { %v226_v56 = vld [vmem:[#allocation2 + $0x550] sm:$0xff] }
  0xc2   :  { %v230_v58 = vld [vmem:[#allocation2 + $0x570] sm:$0xff] }
  0xc3   :  { %1825 = vmatpush1.bf16.msra.mxu0 %v4622_v9  ;;  %1907 = vmatpush1.bf16.msra.mxu1 %v4624_v13  ;;  %v182_v9 = vld [vmem:[#allocation2 + $0x3f0] sm:$0xff]  ;;  %v4686_v13 = vcombine.low %v170_v0, %v174_v1 }
  0xc4   :  { %1826 = vmatprep.subr.bf16.mxu0 %v4631_v14  ;;  %1908 = vmatprep.subr.bf16.mxu1 %v4633_v18  ;;  %v4688_v14 = vcombine.low %v171_v2, %v175_v3  ;;  %v4695_v16 = vcombine.high %v178_v8, %v182_v9  ;;  %v186_v18 = vld [vmem:[#allocation2 + $0x410] sm:$0xff]  ;;  %v235_v3 = vld [vmem:[#allocation2 + $0x598] sm:$0xff] }
  0xc5   :  { %v234_v1 = vld [vmem:[#allocation2 + $0x590] sm:$0xff] }
  0xc6   :  { %v238_v2 = vld [vmem:[#allocation2 + $0x5b0] sm:$0xff] }
  0xc7   :  { %1827 = vmatpush1.bf16.msra.mxu0 %v4630_v19  ;;  %1909 = vmatpush1.bf16.msra.mxu1 %v4632_v22  ;;  %v190_v19 = vld [vmem:[#allocation2 + $0x430] sm:$0xff]  ;;  %v4694_v22 = vcombine.low %v178_v8, %v182_v9 }
  0xc8   :  { %1828 = vmatprep.subr.bf16.mxu0 %v4639_v53  ;;  %1910 = vmatprep.subr.bf16.mxu1 %v4641_v27  ;;  %v4696_v53 = vcombine.low %v179_v10, %v183_v11  ;;  %v4703_v25 = vcombine.high %v186_v18, %v190_v19  ;;  %v194_v27 = vld [vmem:[#allocation2 + $0x450] sm:$0xff]  ;;  %v243_v11 = vld [vmem:[#allocation2 + $0x5d8] sm:$0xff] }
  0xc9   :  { %v242_v9 = vld [vmem:[#allocation2 + $0x5d0] sm:$0xff] }
  0xca   :  { %v246_v10 = vld [vmem:[#allocation2 + $0x5f0] sm:$0xff] }
  0xcb   :  { %1829 = vmatpush1.bf16.msra.mxu0 %v4638_v28  ;;  %1911 = vmatpush1.bf16.msra.mxu1 %v4640_v31  ;;  %v198_v28 = vld [vmem:[#allocation2 + $0x470] sm:$0xff]  ;;  %v4702_v31 = vcombine.low %v186_v18, %v190_v19 }
  0xcc   :  { %1830 = vmatprep.subr.bf16.mxu0 %v4647_v32  ;;  %1912 = vmatprep.subr.bf16.mxu1 %v4649_v34  ;;  %v4704_v32 = vcombine.low %v187_v20, %v191_v21  ;;  %v4711_v33 = vcombine.high %v194_v27, %v198_v28  ;;  %v202_v34 = vld [vmem:[#allocation2 + $0x490] sm:$0xff]  ;;  %v251_v21 = vld [vmem:[#allocation2 + $0x618] sm:$0xff] }
  0xcd   :  { %v250_v19 = vld [vmem:[#allocation2 + $0x610] sm:$0xff] }
  0xce   :  { %v254_v20 = vld [vmem:[#allocation2 + $0x630] sm:$0xff] }
  0xcf   :  { %1831 = vmatpush1.bf16.msra.mxu0 %v4646_v35  ;;  %1913 = vmatpush1.bf16.msra.mxu1 %v4648_v38  ;;  %v206_v35 = vld [vmem:[#allocation2 + $0x4b0] sm:$0xff]  ;;  %v4710_v38 = vcombine.low %v194_v27, %v198_v28 }
  0xd0   :  { %1832 = vmatprep.subr.bf16.mxu0 %v4655_v39  ;;  %1914 = vmatprep.subr.bf16.mxu1 %v4657_v42  ;;  %v4712_v39 = vcombine.low %v195_v29, %v199_v30  ;;  %v4719_v40 = vcombine.high %v202_v34, %v206_v35  ;;  %v210_v42 = vld [vmem:[#allocation2 + $0x4d0] sm:$0xff]  ;;  %v259_v30 = vld [vmem:[#allocation2 + $0x658] sm:$0xff] }
  0xd1   :  { %v258_v28 = vld [vmem:[#allocation2 + $0x650] sm:$0xff] }
  0xd2   :  { %v262_v29 = vld [vmem:[#allocation2 + $0x670] sm:$0xff] }
  0xd3   :  { %1833 = vmatpush1.bf16.msra.mxu0 %v4654_v43  ;;  %1915 = vmatpush1.bf16.msra.mxu1 %v4656_v46  ;;  %v214_v43 = vld [vmem:[#allocation2 + $0x4f0] sm:$0xff]  ;;  %v4718_v46 = vcombine.low %v202_v34, %v206_v35 }
  0xd4   :  { %1834 = vmatprep.subr.bf16.mxu0 %v4663_v47  ;;  %1916 = vmatprep.subr.bf16.mxu1 %v4665_v50  ;;  %v4727_v47 = vcombine.high %v210_v42, %v214_v43  ;;  %v222_v50 = vld [vmem:[#allocation2 + $0x530] sm:$0xff] }
  0xd5   :  { %v4735_v55 = vcombine.high %v218_v49, %v222_v50  ;;  %v266_v35 = vld [vmem:[#allocation2 + $0x690] sm:$0xff] }
  0xd7   :  { %1835 = vmatpush1.bf16.msra.mxu0 %v4662_v51  ;;  %1917 = vmatpush1.bf16.msra.mxu1 %v4664_v57  ;;  %v219_v51 = vld [vmem:[#allocation2 + $0x518] sm:$0xff] }
  0xd8   :  { %1836 = vmatprep.subr.bf16.mxu0 %v4671_v52  ;;  %1918 = vmatprep.subr.bf16.mxu1 %v4673_v54  ;;  %v223_v57 = vld [vmem:[#allocation2 + $0x538] sm:$0xff]  ;;  %v4726_v52 = vcombine.low %v210_v42, %v214_v43  ;;  %v4728_v54 = vcombine.low %v211_v44, %v215_v45  ;;  %v274_v43 = vld [vmem:[#allocation2 + $0x6d0] sm:$0xff] }
  0xd9   :  { %v278_v44 = vld [vmem:[#allocation2 + $0x6f0] sm:$0xff]  ;;  %v275_v45 = vld [vmem:[#allocation2 + $0x6d8] sm:$0xff] }
  0xdb   :  { %1837 = vmatpush1.bf16.msra.mxu0 %v4670_v60  ;;  %1919 = vmatpush1.bf16.msra.mxu1 %v4672_v61  ;;  %v231_v60 = vld [vmem:[#allocation2 + $0x578] sm:$0xff]  ;;  %v4734_v61 = vcombine.low %v218_v49, %v222_v50  ;;  %v282_v50 = vld [vmem:[#allocation2 + $0x710] sm:$0xff] }
  0xdc   :  { %1838 = vmatprep.subr.bf16.mxu0 %v4679_v62  ;;  %1920 = vmatprep.subr.bf16.mxu1 %v4681_v63  ;;  %v4736_v62 = vcombine.low %v219_v51, %v223_v57  ;;  %v4743_v63 = vcombine.high %v226_v56, %v230_v58  ;;  %v4745_v0 = vcombine.high %v227_v59, %v231_v60 }
  0xdf   :  { %1839 = vmatpush1.bf16.msra.mxu0 %v4678_v4  ;;  %1921 = vmatpush1.bf16.msra.mxu1 %v4680_v5  ;;  %v239_v4 = vld [vmem:[#allocation2 + $0x5b8] sm:$0xff]  ;;  %v4742_v5 = vcombine.low %v226_v56, %v230_v58  ;;  %v290_v58 = vld [vmem:[#allocation2 + $0x750] sm:$0xff] }
  0xe0   :  { %1840 = vmatprep.subr.bf16.mxu0 %v4687_v6  ;;  %1922 = vmatprep.subr.bf16.mxu1 %v4689_v7  ;;  %v4744_v6 = vcombine.low %v227_v59, %v231_v60  ;;  %v4751_v7 = vcombine.high %v234_v1, %v238_v2  ;;  %v4753_v8 = vcombine.high %v235_v3, %v239_v4  ;;  %v294_v59 = vld [vmem:[#allocation2 + $0x770] sm:$0xff]  ;;  %v291_v60 = vld [vmem:[#allocation2 + $0x758] sm:$0xff] }
  0xe3   :  { %1841 = vmatpush1.bf16.msra.mxu0 %v4686_v13  ;;  %1923 = vmatpush1.bf16.msra.mxu1 %v4688_v14  ;;  %v247_v13 = vld [vmem:[#allocation2 + $0x5f8] sm:$0xff]  ;;  %v4750_v14 = vcombine.low %v234_v1, %v238_v2  ;;  %v298_v2 = vld [vmem:[#allocation2 + $0x790] sm:$0xff] }
  0xe4   :  { %1842 = vmatprep.subr.bf16.mxu0 %v4695_v16  ;;  %1924 = vmatprep.subr.bf16.mxu1 %v4697_v17  ;;  %v4752_v16 = vcombine.low %v235_v3, %v239_v4  ;;  %v4759_v17 = vcombine.high %v242_v9, %v246_v10  ;;  %v4761_v18 = vcombine.high %v243_v11, %v247_v13  ;;  %v302_v3 = vld [vmem:[#allocation2 + $0x7b0] sm:$0xff]  ;;  %v299_v4 = vld [vmem:[#allocation2 + $0x798] sm:$0xff] }
  0xe7   :  { %1843 = vmatpush1.bf16.msra.mxu0 %v4694_v22  ;;  %1925 = vmatpush1.bf16.msra.mxu1 %v4696_v53  ;;  %v255_v22 = vld [vmem:[#allocation2 + $0x638] sm:$0xff]  ;;  %v4758_v53 = vcombine.low %v242_v9, %v246_v10  ;;  %v306_v10 = vld [vmem:[#allocation2 + $0x7d0] sm:$0xff] }
  0xe8   :  { %1853 = vmatprep.subr.bf16.mxu0 %v4703_v25  ;;  %1935 = vmatprep.subr.bf16.mxu1 %v4705_v26  ;;  %v4760_v25 = vcombine.low %v243_v11, %v247_v13  ;;  %v4767_v26 = vcombine.high %v250_v19, %v254_v20  ;;  %v4769_v27 = vcombine.high %v251_v21, %v255_v22  ;;  %v310_v11 = vld [vmem:[#allocation2 + $0x7f0] sm:$0xff]  ;;  %v307_v13 = vld [vmem:[#allocation2 + $0x7d8] sm:$0xff] }
  0xea   :  { %1845 = vmatmul.mubr.bf16.vlgmr.msra.gmra.mrb[4].mxu0 %v5834_v12  ;;  %1927 = vmatmul.mubr.bf16.vlgmr.msra.gmra.mrb[4].mxu1 %v5834_v12  ;;  %v4720_v12 = vcombine.low %v203_v36, %v207_v37  ;;  %v270_v36 = vld [vmem:[#allocation2 + $0x6b0] sm:$0xff]  ;;  %v267_v37 = vld [vmem:[#allocation2 + $0x698] sm:$0xff] }
  0xeb   :  { %1854 = vmatpush1.bf16.msra.mxu0 %v4702_v31  ;;  %1936 = vmatpush1.bf16.msra.mxu1 %v4704_v32  ;;  %v263_v31 = vld [vmem:[#allocation2 + $0x678] sm:$0xff]  ;;  %v4766_v32 = vcombine.low %v250_v19, %v254_v20  ;;  %v4822_v20 = vcombine.low %v306_v10, %v310_v11 }
  0xec   :  { %1855 = vmatprep.subr.bf16.mxu0 %v4711_v33  ;;  %1937 = vmatprep.subr.bf16.mxu1 %v4713_v15  ;;  %v4768_v33 = vcombine.low %v251_v21, %v255_v22  ;;  %v4775_v15 = vcombine.high %v258_v28, %v262_v29  ;;  %v4777_v34 = vcombine.high %v259_v30, %v263_v31  ;;  %v5289_v22 = vld [vmem:[#allocation4 + $0x4] ss:$16 sps:$4 sm:$0xff]  }
  0xed   :  { %1885 = vmatprep.mubr.bf16.mxu0 %v5843_v23  ;;  %1967 = vmatprep.mubr.bf16.mxu1 %v5843_v23  ;;  %v4737_v23 = vcombine.high %v219_v51, %v223_v57  ;;  %v286_v51 = vld [vmem:[#allocation2 + $0x730] sm:$0xff]  ;;  %v283_v57 = vld [vmem:[#allocation2 + $0x718] sm:$0xff] }
  0xef   :  { %1856 = vmatpush1.bf16.msra.mxu0 %v4710_v38  ;;  %1938 = vmatpush1.bf16.msra.mxu1 %v4712_v39  ;;  %v271_v38 = vld [vmem:[#allocation2 + $0x6b8] sm:$0xff]  ;;  %v4774_v39 = vcombine.low %v258_v28, %v262_v29  ;;  %v5293_v29 = vld [vmem:[#allocation4 + $0x20] ss:$16 sps:$4 sm:$0xff]  }
  0xf0   :  { %1857 = vmatprep.subr.bf16.mxu0 %v4719_v40  ;;  %1939 = vmatprep.subr.bf16.mxu1 %v4721_v41  ;;  %v4776_v40 = vcombine.low %v259_v30, %v263_v31  ;;  %v4783_v41 = vcombine.high %v266_v35, %v270_v36  ;;  %v4785_v42 = vcombine.high %v267_v37, %v271_v38  ;;  %v5298_v28 = vld [vmem:[#allocation4 + $0x2c] ss:$16 sps:$4 sm:$0xff]   ;;  %v5296_v30 = vld [vmem:[#allocation4 + $0x28] ss:$16 sps:$4 sm:$0xff]   ;;  %v5301_v31 = vld [vmem:[#allocation4 + $0x44] ss:$16 sps:$4 sm:$0xff]  }
  0xf3   :  { %1858 = vmatpush1.bf16.msra.mxu0 %v4718_v46  ;;  %1940 = vmatpush1.bf16.msra.mxu1 %v4720_v12  ;;  %v279_v46 = vld [vmem:[#allocation2 + $0x6f8] sm:$0xff]  ;;  %v4782_v12 = vcombine.low %v266_v35, %v270_v36  ;;  %v5305_v36 = vld [vmem:[#allocation4 + $0x60] ss:$16 sps:$4 sm:$0xff]  }
  0xf4   :  { %1859 = vmatprep.subr.bf16.mxu0 %v4727_v47  ;;  %1941 = vmatprep.subr.bf16.mxu1 %v4729_v48  ;;  %v4784_v47 = vcombine.low %v267_v37, %v271_v38  ;;  %v4791_v48 = vcombine.high %v274_v43, %v278_v44  ;;  %v4793_v49 = vcombine.high %v275_v45, %v279_v46  ;;  %v5310_v35 = vld [vmem:[#allocation4 + $0x6c] ss:$16 sps:$4 sm:$0xff]   ;;  %v5313_v37 = vld [vmem:[#allocation4 + $0x84] ss:$16 sps:$4 sm:$0xff]  }
  0xf5   :  { %v5316_v38 = vld [vmem:[#allocation4 + $0x8c] ss:$16 sps:$4 sm:$0xff]  }
  0xf7   :  { %1860 = vmatpush1.bf16.msra.mxu0 %v4726_v52  ;;  %1942 = vmatpush1.bf16.msra.mxu1 %v4728_v54  ;;  %v287_v52 = vld [vmem:[#allocation2 + $0x738] sm:$0xff]  ;;  %v4790_v54 = vcombine.low %v274_v43, %v278_v44  ;;  %v5317_v43 = vld [vmem:[#allocation4 + $0xa0] ss:$16 sps:$4 sm:$0xff]  }
  0xf8   :  { %1861 = vmatprep.subr.bf16.mxu0 %v4735_v55  ;;  %1943 = vmatprep.subr.bf16.mxu1 %v4737_v23  ;;  %v4792_v55 = vcombine.low %v275_v45, %v279_v46  ;;  %v4799_v23 = vcombine.high %v282_v50, %v286_v51  ;;  %v4801_v56 = vcombine.high %v283_v57, %v287_v52  ;;  %v5320_v44 = vld [vmem:[#allocation4 + $0xa8] ss:$16 sps:$4 sm:$0xff]   ;;  %v5325_v45 = vld [vmem:[#allocation4 + $0xc4] ss:$16 sps:$4 sm:$0xff]   ;;  %v5328_v46 = vld [vmem:[#allocation4 + $0xcc] ss:$16 sps:$4 sm:$0xff]  }
  0xfb   :  { %1862 = vmatpush1.bf16.msra.mxu0 %v4734_v61  ;;  %1944 = vmatpush1.bf16.msra.mxu1 %v4736_v62  ;;  %v295_v61 = vld [vmem:[#allocation2 + $0x778] sm:$0xff]  ;;  %v4798_v62 = vcombine.low %v282_v50, %v286_v51  ;;  %v5329_v50 = vld [vmem:[#allocation4 + $0xe0] ss:$16 sps:$4 sm:$0xff]  }
  0xfc   :  { %1863 = vmatprep.subr.bf16.mxu0 %v4743_v63  ;;  %1945 = vmatprep.subr.bf16.mxu1 %v4745_v0  ;;  %v4800_v63 = vcombine.low %v283_v57, %v287_v52  ;;  %v4807_v0 = vcombine.high %v290_v58, %v294_v59  ;;  %v4809_v1 = vcombine.high %v291_v60, %v295_v61  ;;  %v5332_v51 = vld [vmem:[#allocation4 + $0xe8] ss:$16 sps:$4 sm:$0xff]   ;;  %v5337_v57 = vld [vmem:[#allocation4 + $0x104] ss:$16 sps:$4 sm:$0xff]   ;;  %v5340_v52 = vld [vmem:[#allocation4 + $0x10c] ss:$16 sps:$4 sm:$0xff]  }
  0xff   :  { %1864 = vmatpush1.bf16.msra.mxu0 %v4742_v5  ;;  %1946 = vmatpush1.bf16.msra.mxu1 %v4744_v6  ;;  %v303_v5 = vld [vmem:[#allocation2 + $0x7b8] sm:$0xff]  ;;  %v4806_v6 = vcombine.low %v290_v58, %v294_v59  ;;  %v5341_v58 = vld [vmem:[#allocation4 + $0x120] ss:$16 sps:$4 sm:$0xff]  }
 0x100   :  { %1865 = vmatprep.subr.bf16.mxu0 %v4751_v7  ;;  %1947 = vmatprep.subr.bf16.mxu1 %v4753_v8  ;;  %v4808_v7 = vcombine.low %v291_v60, %v295_v61  ;;  %v4815_v8 = vcombine.high %v298_v2, %v302_v3  ;;  %v4817_v9 = vcombine.high %v299_v4, %v303_v5  ;;  %v5344_v59 = vld [vmem:[#allocation4 + $0x128] ss:$16 sps:$4 sm:$0xff]   ;;  %v5349_v60 = vld [vmem:[#allocation4 + $0x144] ss:$16 sps:$4 sm:$0xff]   ;;  %v5352_v61 = vld [vmem:[#allocation4 + $0x14c] ss:$16 sps:$4 sm:$0xff]  }
 0x103   :  { %1866 = vmatpush1.bf16.msra.mxu0 %v4750_v14  ;;  %1948 = vmatpush1.bf16.msra.mxu1 %v4752_v16  ;;  %v311_v14 = vld [vmem:[#allocation2 + $0x7f8] sm:$0xff]  ;;  %v4814_v16 = vcombine.low %v298_v2, %v302_v3  ;;  %v5353_v2 = vld [vmem:[#allocation4 + $0x160] ss:$16 sps:$4 sm:$0xff]  }
 0x104   :  { %1867 = vmatprep.subr.bf16.mxu0 %v4759_v17  ;;  %1949 = vmatprep.subr.bf16.mxu1 %v4761_v18  ;;  %v4816_v17 = vcombine.low %v299_v4, %v303_v5  ;;  %v4823_v18 = vcombine.high %v306_v10, %v310_v11  ;;  %v4825_v19 = vcombine.high %v307_v13, %v311_v14  ;;  %v5356_v3 = vld [vmem:[#allocation4 + $0x168] ss:$16 sps:$4 sm:$0xff]   ;;  %v5361_v4 = vld [vmem:[#allocation4 + $0x184] ss:$16 sps:$4 sm:$0xff]   ;;  %v5364_v5 = vld [vmem:[#allocation4 + $0x18c] ss:$16 sps:$4 sm:$0xff]  }
 0x105   :  { %v4824_v21 = vcombine.low %v307_v13, %v311_v14  ;;  %v5365_v10 = vld [vmem:[#allocation4 + $0x1a0] ss:$16 sps:$4 sm:$0xff]   ;;  %v5368_v11 = vld [vmem:[#allocation4 + $0x1a8] ss:$16 sps:$4 sm:$0xff]   ;;  %v5373_v13 = vld [vmem:[#allocation4 + $0x1c4] ss:$16 sps:$4 sm:$0xff]  }
 0x106   :  { %v5376_v14 = vld [vmem:[#allocation4 + $0x1cc] ss:$16 sps:$4 sm:$0xff]  }
 0x107   :  { %1868 = vmatpush1.bf16.msra.mxu0 %v4758_v53  ;;  %1950 = vmatpush1.bf16.msra.mxu1 %v4760_v25  ;;  %v5292_v53 = vld [vmem:[#allocation4 + $0xc] ss:$16 sps:$4 sm:$0xff]   ;;  %v5287_v25 = vld [vmem:[#allocation4] ss:$16 sps:$4 sm:$0xff]  }
 0x108   :  { %1869 = vmatprep.subr.bf16.mxu0 %v4767_v26  ;;  %1951 = vmatprep.subr.bf16.mxu1 %v4769_v27  ;;  %v5290_v26 = vld [vmem:[#allocation4 + $0x8] ss:$16 sps:$4 sm:$0xff]   ;;  %v5295_v27 = vld [vmem:[#allocation4 + $0x24] ss:$16 sps:$4 sm:$0xff]  }
 0x10b   :  { %1870 = vmatpush1.bf16.msra.mxu0 %v4766_v32  ;;  %1952 = vmatpush1.bf16.msra.mxu1 %v4768_v33  ;;  %v5304_v32 = vld [vmem:[#allocation4 + $0x4c] ss:$16 sps:$4 sm:$0xff]   ;;  %v5299_v33 = vld [vmem:[#allocation4 + $0x40] ss:$16 sps:$4 sm:$0xff]  }
 0x10c   :  { %1871 = vmatprep.subr.bf16.mxu0 %v4775_v15  ;;  %1953 = vmatprep.subr.bf16.mxu1 %v4777_v34  ;;  %v5302_v15 = vld [vmem:[#allocation4 + $0x48] ss:$16 sps:$4 sm:$0xff]   ;;  %v5307_v34 = vld [vmem:[#allocation4 + $0x64] ss:$16 sps:$4 sm:$0xff]  }
 0x10f   :  { %1872 = vmatpush1.bf16.msra.mxu0 %v4774_v39  ;;  %1954 = vmatpush1.bf16.msra.mxu1 %v4776_v40  ;;  %v5311_v39 = vld [vmem:[#allocation4 + $0x80] ss:$16 sps:$4 sm:$0xff]   ;;  %v5314_v40 = vld [vmem:[#allocation4 + $0x88] ss:$16 sps:$4 sm:$0xff]  }
 0x110   :  { %1873 = vmatprep.subr.bf16.mxu0 %v4783_v41  ;;  %1955 = vmatprep.subr.bf16.mxu1 %v4785_v42  ;;  %v5319_v41 = vld [vmem:[#allocation4 + $0xa4] ss:$16 sps:$4 sm:$0xff]   ;;  %v5322_v42 = vld [vmem:[#allocation4 + $0xac] ss:$16 sps:$4 sm:$0xff]  }
 0x113   :  { %1874 = vmatpush1.bf16.msra.mxu0 %v4782_v12  ;;  %1956 = vmatpush1.bf16.msra.mxu1 %v4784_v47  ;;  %v5323_v12 = vld [vmem:[#allocation4 + $0xc0] ss:$16 sps:$4 sm:$0xff]   ;;  %v5326_v47 = vld [vmem:[#allocation4 + $0xc8] ss:$16 sps:$4 sm:$0xff]  }
 0x114   :  { %1875 = vmatprep.subr.bf16.mxu0 %v4791_v48  ;;  %1957 = vmatprep.subr.bf16.mxu1 %v4793_v49  ;;  %v5331_v48 = vld [vmem:[#allocation4 + $0xe4] ss:$16 sps:$4 sm:$0xff]   ;;  %v5334_v49 = vld [vmem:[#allocation4 + $0xec] ss:$16 sps:$4 sm:$0xff]  }
 0x117   :  { %1876 = vmatpush1.bf16.msra.mxu0 %v4790_v54  ;;  %1958 = vmatpush1.bf16.msra.mxu1 %v4792_v55  ;;  %v5335_v54 = vld [vmem:[#allocation4 + $0x100] ss:$16 sps:$4 sm:$0xff]   ;;  %v5338_v55 = vld [vmem:[#allocation4 + $0x108] ss:$16 sps:$4 sm:$0xff]  }
 0x118   :  { %1877 = vmatprep.subr.bf16.mxu0 %v4799_v23  ;;  %1959 = vmatprep.subr.bf16.mxu1 %v4801_v56  ;;  %v5343_v23 = vld [vmem:[#allocation4 + $0x124] ss:$16 sps:$4 sm:$0xff]   ;;  %v5346_v56 = vld [vmem:[#allocation4 + $0x12c] ss:$16 sps:$4 sm:$0xff]  }
 0x11b   :  { %1878 = vmatpush1.bf16.msra.mxu0 %v4798_v62  ;;  %1960 = vmatpush1.bf16.msra.mxu1 %v4800_v63  ;;  %v5347_v62 = vld [vmem:[#allocation4 + $0x140] ss:$16 sps:$4 sm:$0xff]   ;;  %v5350_v63 = vld [vmem:[#allocation4 + $0x148] ss:$16 sps:$4 sm:$0xff]  }
 0x11c   :  { %1879 = vmatprep.subr.bf16.mxu0 %v4807_v0  ;;  %1961 = vmatprep.subr.bf16.mxu1 %v4809_v1  ;;  %v5355_v0 = vld [vmem:[#allocation4 + $0x164] ss:$16 sps:$4 sm:$0xff]   ;;  %v5358_v1 = vld [vmem:[#allocation4 + $0x16c] ss:$16 sps:$4 sm:$0xff]  }
 0x11f   :  { %1880 = vmatpush1.bf16.msra.mxu0 %v4806_v6  ;;  %1962 = vmatpush1.bf16.msra.mxu1 %v4808_v7  ;;  %v5359_v6 = vld [vmem:[#allocation4 + $0x180] ss:$16 sps:$4 sm:$0xff]   ;;  %v5362_v7 = vld [vmem:[#allocation4 + $0x188] ss:$16 sps:$4 sm:$0xff]  }
 0x120   :  { %1881 = vmatprep.subr.bf16.mxu0 %v4815_v8  ;;  %1963 = vmatprep.subr.bf16.mxu1 %v4817_v9  ;;  %v5367_v8 = vld [vmem:[#allocation4 + $0x1a4] ss:$16 sps:$4 sm:$0xff]   ;;  %v5370_v9 = vld [vmem:[#allocation4 + $0x1ac] ss:$16 sps:$4 sm:$0xff]  }
 0x123   :  { %1882 = vmatpush1.bf16.msra.mxu0 %v4814_v16  ;;  %1964 = vmatpush1.bf16.msra.mxu1 %v4816_v17  ;;  %v5371_v16 = vld [vmem:[#allocation4 + $0x1c0] ss:$16 sps:$4 sm:$0xff]   ;;  %v5374_v17 = vld [vmem:[#allocation4 + $0x1c8] ss:$16 sps:$4 sm:$0xff]  }
 0x124   :  { %1883 = vmatprep.subr.bf16.mxu0 %v4823_v18  ;;  %1965 = vmatprep.subr.bf16.mxu1 %v4825_v19  ;;  %v5379_v18 = vld [vmem:[#allocation4 + $0x1e4] ss:$16 sps:$4 sm:$0xff]   ;;  %v5382_v19 = vld [vmem:[#allocation4 + $0x1ec] ss:$16 sps:$4 sm:$0xff]  }
 0x127   :  { %1884 = vmatpush1.bf16.msra.mxu0 %v4822_v20  ;;  %1966 = vmatpush1.bf16.msra.mxu1 %v4824_v21  ;;  %v5377_v20 = vld [vmem:[#allocation4 + $0x1e0] ss:$16 sps:$4 sm:$0xff]   ;;  %v5380_v21 = vld [vmem:[#allocation4 + $0x1e8] ss:$16 sps:$4 sm:$0xff]  }
 0x128   :  { %3821 = vmatprep.subr.bf16.mxu0 %v5289_v22  ;;  %3985 = vmatprep.subr.bf16.mxu1 %v5292_v53  ;;  %v5385_v22 = vld [vmem:[#allocation4 + $0x204] ss:$16 sps:$4 sm:$0xff]   ;;  %v5388_v53 = vld [vmem:[#allocation4 + $0x20c] ss:$16 sps:$4 sm:$0xff]  }
 0x12a   :  { %1886 = vmatmul.mubr.bf16.vlgmr.msra.gmra.mrb[4].mxu0 %v5851_v24  ;;  %1968 = vmatmul.mubr.bf16.vlgmr.msra.gmra.mrb[4].mxu1 %v5851_v24  ;;  %v5308_v24 = vld [vmem:[#allocation4 + $0x68] ss:$16 sps:$4 sm:$0xff]  }
 0x12b   :  { %3822 = vmatpush1.bf16.msra.mxu0 %v5287_v25  ;;  %3986 = vmatpush1.bf16.msra.mxu1 %v5290_v26  ;;  %v314_v25 = vlaneseq }
 0x12c   :  { %3823 = vmatprep.subr.bf16.mxu0 %v5295_v27  ;;  %3987 = vmatprep.subr.bf16.mxu1 %v5298_v28  ;;  %v5871_v28 = vld [vmem:[%s6235_s2] ss:$4 sm:$0xff] }
 0x12d   :  { %v5863_v26 = vshrl.u32 %v314_v25, 7 }
 0x12f   :  { %3824 = vmatpush1.bf16.msra.mxu0 %v5293_v29  ;;  %3988 = vmatpush1.bf16.msra.mxu1 %v5296_v30  ;;  %v5866_v27 = vsub.s32 0, %v5863_v26  ;;  %v5874_v29 = vsub.s32 1, %v5863_v26  ;;  %v5877_v30 = vsub.s32 3, %v5863_v26 }
 0x130   :  { %3825 = vmatprep.subr.bf16.mxu0 %v5301_v31  ;;  %3989 = vmatprep.subr.bf16.mxu1 %v5304_v32 }
 0x131   :  { %v317_v31 = vrot.slane %v5871_v28, %v5866_v27  ;;  %v321_v32 = vrot.slane %v5871_v28, %v5874_v29 }
 0x133   :  { %3826 = vmatpush1.bf16.msra.mxu0 %v5299_v33  ;;  %3990 = vmatpush1.bf16.msra.mxu1 %v5302_v15  ;;  %v329_v33 = vrot.slane %v5871_v28, %v5877_v30 }
 0x134   :  { %3827 = vmatprep.subr.bf16.mxu0 %v5307_v34  ;;  %3991 = vmatprep.subr.bf16.mxu1 %v5310_v35 }
 0x137   :  { %3828 = vmatpush1.bf16.msra.mxu0 %v5305_v36  ;;  %3992 = vmatpush1.bf16.msra.mxu1 %v5308_v24 }
 0x138   :  { %3829 = vmatprep.subr.bf16.mxu0 %v5313_v37  ;;  %3993 = vmatprep.subr.bf16.mxu1 %v5316_v38 }
 0x13b   :  { %3830 = vmatpush1.bf16.msra.mxu0 %v5311_v39  ;;  %3994 = vmatpush1.bf16.msra.mxu1 %v5314_v40 }
 0x13c   :  { %3831 = vmatprep.subr.bf16.mxu0 %v5319_v41  ;;  %3995 = vmatprep.subr.bf16.mxu1 %v5322_v42 }
 0x13f   :  { %3832 = vmatpush1.bf16.msra.mxu0 %v5317_v43  ;;  %3996 = vmatpush1.bf16.msra.mxu1 %v5320_v44 }
 0x140   :  { %3833 = vmatprep.subr.bf16.mxu0 %v5325_v45  ;;  %3997 = vmatprep.subr.bf16.mxu1 %v5328_v46 }
 0x143   :  { %3834 = vmatpush1.bf16.msra.mxu0 %v5323_v12  ;;  %3998 = vmatpush1.bf16.msra.mxu1 %v5326_v47 }
 0x144   :  { %3835 = vmatprep.subr.bf16.mxu0 %v5331_v48  ;;  %3999 = vmatprep.subr.bf16.mxu1 %v5334_v49 }
 0x147   :  { %3836 = vmatpush1.bf16.msra.mxu0 %v5329_v50  ;;  %4000 = vmatpush1.bf16.msra.mxu1 %v5332_v51 }
 0x148   :  { %3837 = vmatprep.subr.bf16.mxu0 %v5337_v57  ;;  %4001 = vmatprep.subr.bf16.mxu1 %v5340_v52 }
 0x14b   :  { %3838 = vmatpush1.bf16.msra.mxu0 %v5335_v54  ;;  %4002 = vmatpush1.bf16.msra.mxu1 %v5338_v55  ;;  %v5886_v55 = vsub.s32 2, %v5863_v26 }
 0x14c   :  { %3839 = vmatprep.subr.bf16.mxu0 %v5343_v23  ;;  %4003 = vmatprep.subr.bf16.mxu1 %v5346_v56 }
 0x14f   :  { %3840 = vmatpush1.bf16.msra.mxu0 %v5341_v58  ;;  %4004 = vmatpush1.bf16.msra.mxu1 %v5344_v59 }
 0x150   :  { %3841 = vmatprep.subr.bf16.mxu0 %v5349_v60  ;;  %4005 = vmatprep.subr.bf16.mxu1 %v5352_v61 }
 0x153   :  { %3842 = vmatpush1.bf16.msra.mxu0 %v5347_v62  ;;  %4006 = vmatpush1.bf16.msra.mxu1 %v5350_v63  ;;  %v325_v62 = vrot.slane %v5871_v28, %v5886_v55 }
 0x154   :  { %3843 = vmatprep.subr.bf16.mxu0 %v5355_v0  ;;  %4007 = vmatprep.subr.bf16.mxu1 %v5358_v1 }
 0x157   :  { %3844 = vmatpush1.bf16.msra.mxu0 %v5353_v2  ;;  %4008 = vmatpush1.bf16.msra.mxu1 %v5356_v3 }
 0x158   :  { %3845 = vmatprep.subr.bf16.mxu0 %v5361_v4  ;;  %4009 = vmatprep.subr.bf16.mxu1 %v5364_v5 }
 0x15b   :  { %3846 = vmatpush1.bf16.msra.mxu0 %v5359_v6  ;;  %4010 = vmatpush1.bf16.msra.mxu1 %v5362_v7 }
 0x15c   :  { %3847 = vmatprep.subr.bf16.mxu0 %v5367_v8  ;;  %4011 = vmatprep.subr.bf16.mxu1 %v5370_v9 }
 0x15f   :  { %3848 = vmatpush1.bf16.msra.mxu0 %v5365_v10  ;;  %4012 = vmatpush1.bf16.msra.mxu1 %v5368_v11 }
 0x160   :  { %3849 = vmatprep.subr.bf16.mxu0 %v5373_v13  ;;  %4013 = vmatprep.subr.bf16.mxu1 %v5376_v14 }
 0x163   :  { %3850 = vmatpush1.bf16.msra.mxu0 %v5371_v16  ;;  %4014 = vmatpush1.bf16.msra.mxu1 %v5374_v17 }
 0x164   :  { %3851 = vmatprep.subr.bf16.mxu0 %v5379_v18  ;;  %4015 = vmatprep.subr.bf16.mxu1 %v5382_v19 }
 0x167   :  { %3852 = vmatpush1.bf16.msra.mxu0 %v5377_v20  ;;  %4016 = vmatpush1.bf16.msra.mxu1 %v5380_v21 }
 0x168   :  { %3862 = vmatprep.subr.bf16.mxu0 %v5385_v22  ;;  %4026 = vmatprep.subr.bf16.mxu1 %v5388_v53 }
 0x17d   :  { %v1723_v15 = vpop.f32.mrb[0].mxu0  ;;  %v1805_v35 = vpop.f32.mrb[0].mxu1 }
 0x17e   :  { %v5225_v34 = vadd.f32 %v1723_v15, %v317_v31  ;;  %v1725_v36 = vpop.f32.mrb[1].mxu0  ;;  %v1807_v37 = vpop.f32.mrb[1].mxu1  ;;  %v5227_v5 = vadd.f32 %v1805_v35, %v325_v62 }
 0x17f   :  { %v5226_v24 = vadd.f32 %v1725_v36, %v321_v32  ;;  %v1727_v38 = vpop.f32.mrb[2].mxu0  ;;  %v5228_v40 = vadd.f32 %v1807_v37, %v329_v33  ;;  %v1809_v41 = vpop.f32.mrb[2].mxu1 }
 0x180   :  { %v1980_v39 = vrot.slane %v5225_v34, 4  ;;  %v1728_v42 = vpop.f32.mrb[3].mxu0  ;;  %v1810_v44 = vpop.f32.mrb[3].mxu1  ;;  %v1992_v13 = vrot.slane %v5227_v5, 4 }
 0x181   :  { %v1986_v43 = vrot.slane %v5226_v24, 4  ;;  %v1998_v46 = vrot.slane %v5228_v40, 4 }
 0x182   :  { %v1981_v45 = vadd.f32 %v5225_v34, %v1980_v39  ;;  %v1993_v21 = vadd.f32 %v5227_v5, %v1992_v13 }
 0x183   :  { %v1987_v12 = vadd.f32 %v5226_v24, %v1986_v43  ;;  %v1999_v48 = vadd.f32 %v5228_v40, %v1998_v46  ;;  %v5893_v43 = vld [vmem:[%s6235_s2 + $0x1] ss:$4 sm:$0xff] }
 0x184   :  { %v1982_v47 = vrot.slane %v1981_v45, 2  ;;  %v1994_v15 = vrot.slane %v1993_v21, 2  ;;  %v2137_v46 = vrot.slane %v5893_v43, %v5866_v27 }
 0x185   :  { %v1988_v49 = vrot.slane %v1987_v12, 2  ;;  %v2000_v51 = vrot.slane %v1999_v48, 2 }
 0x186   :  { %v1983_v50 = vadd.f32 %v1982_v47, %v1981_v45  ;;  %v1995_v39 = vadd.f32 %v1994_v15, %v1993_v21  ;;  %v5898_v45 = vld [vmem:[%s6235_s2 + $0x2] ss:$4 sm:$0xff] }
 0x187   :  { %v1989_v57 = vadd.f32 %v1988_v49, %v1987_v12  ;;  %v2001_v54 = vadd.f32 %v2000_v51, %v1999_v48  ;;  %v2186_v48 = vrot.slane %v5898_v45, %v5866_v27  ;;  %v5406_v15 = vld [vmem:[#allocation4 + $0x26c] ss:$16 sps:$4 sm:$0xff]  }
 0x188   :  { %v1984_v52 = vrot.slane %v1983_v50, 1  ;;  %v1996_v42 = vrot.slane %v1995_v39, 1 }
 0x189   :  { %v1990_v23 = vrot.slane %v1989_v57, 1  ;;  %v2002_v58 = vrot.slane %v2001_v54, 1 }
 0x18a   :  { %v1985_v56 = vadd.f32 %v1984_v52, %v1983_v50  ;;  %v1997_v44 = vadd.f32 %v1996_v42, %v1995_v39  ;;  %v2141_v50 = vrot.slane %v5893_v43, %v5874_v29  ;;  %v5410_v39 = vld [vmem:[#allocation4 + $0x288] ss:$16 sps:$4 sm:$0xff]   ;;  %v5418_v42 = vld [vmem:[#allocation4 + $0x2ac] ss:$16 sps:$4 sm:$0xff]  }
 0x18b   :  { %v1991_v59 = vadd.f32 %v1990_v23, %v1989_v57  ;;  %v2003_v61 = vadd.f32 %v2002_v58, %v2001_v54  ;;  %v2149_v57 = vrot.slane %v5893_v43, %v5877_v30 }
 0x18c   :  { %v2029_v60 = vmul.f32 0.125, %v1985_v56  ;;  %v2031_v49 = vmul.f32 0.125, %v1997_v44  ;;  %v2190_v56 = vrot.slane %v5898_v45, %v5874_v29  ;;  %v5413_v44 = vld [vmem:[#allocation4 + $0x2a0] ss:$16 sps:$4 sm:$0xff]  }
 0x18d   :  { %v2030_v63 = vmul.f32 0.125, %v1991_v59  ;;  %v2032_v1 = vmul.f32 0.125, %v2003_v61  ;;  %v2198_v59 = vrot.slane %v5898_v45, %v5877_v30 }
 0x18e   :  { %v2037_v0 = vsub.f32 %v5225_v34, %v2029_v60  ;;  %v5912_v61 = vsub.f32 %v5227_v5, %v2031_v49  ;;  %v5419_v49 = vld [vmem:[#allocation4 + $0x2c0] ss:$16 sps:$4 sm:$0xff]  }
 0x18f   :  { %v2038_v2 = vsub.f32 %v5226_v24, %v2030_v63  ;;  %v2040_v4 = vsub.f32 %v5228_v40, %v2032_v1 }
 0x190   :  { %v2045_v3 = vmul.f32 %v2037_v0, %v2037_v0 }
 0x191   :  { %v2046_v6 = vmul.f32 %v2038_v2, %v2038_v2  ;;  %v2048_v8 = vmul.f32 %v2040_v4, %v2040_v4 }
 0x192   :  { %v2053_v7 = vrot.slane %v2045_v3, 4 }
 0x193   :  { %v2059_v9 = vrot.slane %v2046_v6, 4  ;;  %v2071_v11 = vrot.slane %v2048_v8, 4 }
 0x194   :  { %v2054_v10 = vadd.f32 %v2053_v7, %v2045_v3 }
 0x195   :  { %v2060_v14 = vadd.f32 %v2059_v9, %v2046_v6  ;;  %v2072_v17 = vadd.f32 %v2071_v11, %v2048_v8  ;;  %v2047_v6 = vmul.f32 %v5912_v61, %v5912_v61  ;;  %v5386_v11 = vld [vmem:[#allocation4 + $0x208] ss:$16 sps:$4 sm:$0xff]  }
 0x196   :  { %v2055_v16 = vrot.slane %v2054_v10, 2 }
 0x197   :  { %v2061_v18 = vrot.slane %v2060_v14, 2  ;;  %v2073_v20 = vrot.slane %v2072_v17, 2  ;;  %v2065_v13 = vrot.slane %v2047_v6, 4 }
 0x198   :  { %v2056_v19 = vadd.f32 %v2055_v16, %v2054_v10  ;;  %v5383_v10 = vld [vmem:[#allocation4 + $0x200] ss:$16 sps:$4 sm:$0xff]   ;;  %v5391_v16 = vld [vmem:[#allocation4 + $0x224] ss:$16 sps:$4 sm:$0xff]  }
 0x199   :  { %v2062_v22 = vadd.f32 %v2061_v18, %v2060_v14  ;;  %v2074_v25 = vadd.f32 %v2073_v20, %v2072_v17  ;;  %v5394_v17 = vld [vmem:[#allocation4 + $0x22c] ss:$16 sps:$4 sm:$0xff]   ;;  %v5392_v20 = vld [vmem:[#allocation4 + $0x228] ss:$16 sps:$4 sm:$0xff]   ;;  %v2066_v21 = vadd.f32 %v2065_v13, %v2047_v6  ;;  %v5445_v6 = vld [vmem:[#allocation4 + $0x344] ss:$16 sps:$4 sm:$0xff]  }
 0x19a   :  { %v2057_v53 = vrot.slane %v2056_v19, 1  ;;  %v5457_v13 = vld [vmem:[#allocation4 + $0x384] ss:$16 sps:$4 sm:$0xff]  }
 0x19b   :  { %v2063_v31 = vrot.slane %v2062_v22, 1  ;;  %v2075_v33 = vrot.slane %v2074_v25, 1 }
 0x19c   :  { %v2058_v32 = vadd.f32 %v2057_v53, %v2056_v19  ;;  %v5389_v19 = vld [vmem:[#allocation4 + $0x220] ss:$16 sps:$4 sm:$0xff]   ;;  %v5400_v53 = vld [vmem:[#allocation4 + $0x24c] ss:$16 sps:$4 sm:$0xff]  }
 0x19d   :  { %v2064_v34 = vadd.f32 %v2063_v31, %v2062_v22  ;;  %v2076_v36 = vadd.f32 %v2075_v33, %v2074_v25  ;;  %v5397_v22 = vld [vmem:[#allocation4 + $0x244] ss:$16 sps:$4 sm:$0xff]   ;;  %v5395_v25 = vld [vmem:[#allocation4 + $0x240] ss:$16 sps:$4 sm:$0xff]   ;;  %v5398_v31 = vld [vmem:[#allocation4 + $0x248] ss:$16 sps:$4 sm:$0xff]  }
 0x19e   :  { %v2101_v35 = vmul.f32 0.125, %v2058_v32  ;;  %v2067_v32 = vrot.slane %v2066_v21, 2  ;;  %v5403_v33 = vld [vmem:[#allocation4 + $0x264] ss:$16 sps:$4 sm:$0xff]  }
 0x19f   :  { %v2102_v24 = vmul.f32 0.125, %v2064_v34  ;;  %v2104_v38 = vmul.f32 0.125, %v2076_v36  ;;  %v5401_v34 = vld [vmem:[#allocation4 + $0x260] ss:$16 sps:$4 sm:$0xff]  }
 0x1a0   :  { %v2109_v37 = vadd.f32 1e-05, %v2101_v35  ;;  %v5404_v35 = vld [vmem:[#allocation4 + $0x268] ss:$16 sps:$4 sm:$0xff]   ;;  %v2068_v36 = vadd.f32 %v2067_v32, %v2066_v21  ;;  %v5466_v21 = vld [vmem:[#allocation4 + $0x3ac] ss:$16 sps:$4 sm:$0xff]  }
 0x1a1   :  { %v2110_v40 = vadd.f32 1e-05, %v2102_v24  ;;  %v2112_v41 = vadd.f32 1e-05, %v2104_v38  ;;  %v5409_v24 = vld [vmem:[#allocation4 + $0x284] ss:$16 sps:$4 sm:$0xff]  }
 0x1a2   :  { %5671 = vrsqrt.f32 %v2109_v37  ;;  %v5412_v37 = vld [vmem:[#allocation4 + $0x28c] ss:$16 sps:$4 sm:$0xff]   ;;  %v5407_v38 = vld [vmem:[#allocation4 + $0x280] ss:$16 sps:$4 sm:$0xff]  }
 0x1a3   :  { %5673 = vrsqrt.f32 %v2110_v40  ;;  %v2069_v40 = vrot.slane %v2068_v36, 1  ;;  %v5472_v32 = vld [vmem:[#allocation4 + $0x3cc] ss:$16 sps:$4 sm:$0xff]  }
 0x1a4   :  { %5675 = vrsqrt.f32 %v2112_v41  ;;  %v5415_v41 = vld [vmem:[#allocation4 + $0x2a4] ss:$16 sps:$4 sm:$0xff]  }
 0x1ac   :  { %v5672_v12 = vpop.eup %5671 }
 0x1ad   :  { %v2125_v47 = vmul.f32 %v5672_v12, %v2037_v0  ;;  %v5674_v51 = vpop.eup %5673  ;;  %v2070_v12 = vadd.f32 %v2069_v40, %v2068_v36  ;;  %v5478_v36 = vld [vmem:[#allocation4 + $0x3ec] ss:$16 sps:$4 sm:$0xff]  }
 0x1ae   :  { %v5676_v52 = vpop.eup %5675  ;;  %v2126_v23 = vmul.f32 %v5674_v51, %v2038_v2  ;;  %v5484_v40 = vld [vmem:[#allocation4 + $0x40c] ss:$16 sps:$4 sm:$0xff]  }
 0x1af   :  { %v2174_v54 = vmul.f32 %v2137_v46, %v2125_v47  ;;  %v2128_v58 = vmul.f32 %v5676_v52, %v2040_v4  ;;  %v5416_v46 = vld [vmem:[#allocation4 + $0x2a8] ss:$16 sps:$4 sm:$0xff]   ;;  %v5421_v47 = vld [vmem:[#allocation4 + $0x2c4] ss:$16 sps:$4 sm:$0xff]   ;;  %v2103_v51 = vmul.f32 0.125, %v2070_v12 }
 0x1b0   :  { %v2175_v62 = vmul.f32 %v2141_v50, %v2126_v23  ;;  %v5422_v50 = vld [vmem:[#allocation4 + $0x2c8] ss:$16 sps:$4 sm:$0xff]   ;;  %v5430_v52 = vld [vmem:[#allocation4 + $0x2ec] ss:$16 sps:$4 sm:$0xff]  }
 0x1b1   :  { %v2223_v60 = vadd.f32 %v2186_v48, %v2174_v54  ;;  %v2177_v63 = vmul.f32 %v2149_v57, %v2128_v58  ;;  %v5424_v48 = vld [vmem:[#allocation4 + $0x2cc] ss:$16 sps:$4 sm:$0xff]   ;;  %v5427_v57 = vld [vmem:[#allocation4 + $0x2e4] ss:$16 sps:$4 sm:$0xff]   ;;  %v5425_v54 = vld [vmem:[#allocation4 + $0x2e0] ss:$16 sps:$4 sm:$0xff]  }
 0x1b2   :  { %v2224_v0 = vadd.f32 %v2190_v56, %v2175_v62  ;;  %v5428_v23 = vld [vmem:[#allocation4 + $0x2e8] ss:$16 sps:$4 sm:$0xff]   ;;  %v2111_v56 = vadd.f32 1e-05, %v2103_v51  ;;  %v5433_v58 = vld [vmem:[#allocation4 + $0x304] ss:$16 sps:$4 sm:$0xff]  }
 0x1b3   :  { %vm2231_vm0 = vcmp.ge.f32.partialorder %v2223_v60, 0.0  ;;  %v2239_v1 = vmul.f32 0.01, %v2223_v60  ;;  %v2226_v3 = vadd.f32 %v2198_v59, %v2177_v63  ;;  %v5436_v59 = vld [vmem:[#allocation4 + $0x30c] ss:$16 sps:$4 sm:$0xff]  }
 0x1b4   :  { %vm2232_vm1 = vcmp.ge.f32.partialorder %v2224_v0, 0.0  ;;  %v2240_v2 = vmul.f32 0.01, %v2224_v0  ;;  %v5434_v62 = vld [vmem:[#allocation4 + $0x308] ss:$16 sps:$4 sm:$0xff]   ;;  %5677 = vrsqrt.f32 %v2111_v56 }
 0x1b5   :  { %v2247_v7 = vsel %vm2231_vm0, %v2223_v60, %v2239_v1  ;;  %vm2234_vm2 = vcmp.ge.f32.partialorder %v2226_v3, 0.0  ;;  %v2242_v4 = vmul.f32 0.01, %v2226_v3  ;;  %v5431_v60 = vld [vmem:[#allocation4 + $0x300] ss:$16 sps:$4 sm:$0xff]  }
 0x1b6   :  { %v2248_v8 = vsel %vm2232_vm1, %v2224_v0, %v2240_v2  ;;  %v2255_v14 = vpack.c.bf16 %v2247_v7, %v2247_v7  ;;  %v5439_v63 = vld [vmem:[#allocation4 + $0x324] ss:$16 sps:$4 sm:$0xff]   ;;  %v5442_v0 = vld [vmem:[#allocation4 + $0x32c] ss:$16 sps:$4 sm:$0xff]   ;;  %v5437_v1 = vld [vmem:[#allocation4 + $0x320] ss:$16 sps:$4 sm:$0xff]  }
 0x1b7   :  { %v2256_v9 = vpack.c.bf16 %v2248_v8, %v2248_v8  ;;  %v2250_v5 = vsel %vm2234_vm2, %v2226_v3, %v2242_v4  ;;  %v5440_v3 = vld [vmem:[#allocation4 + $0x328] ss:$16 sps:$4 sm:$0xff]   ;;  %v5448_v2 = vld [vmem:[#allocation4 + $0x34c] ss:$16 sps:$4 sm:$0xff]   ;;  %v5443_v7 = vld [vmem:[#allocation4 + $0x340] ss:$16 sps:$4 sm:$0xff]  }
 0x1b8   :  { %v2258_v18 = vpack.c.bf16 %v2250_v5, %v2250_v5  ;;  %v5446_v4 = vld [vmem:[#allocation4 + $0x348] ss:$16 sps:$4 sm:$0xff]   ;;  %v5451_v8 = vld [vmem:[#allocation4 + $0x364] ss:$16 sps:$4 sm:$0xff]  }
 0x1b9   :  { %3853 = vmatprep.mubr.bf16.mxu0 %v2256_v9  ;;  %4017 = vmatprep.mubr.bf16.mxu1 %v2256_v9  ;;  %v5454_v9 = vld [vmem:[#allocation4 + $0x36c] ss:$16 sps:$4 sm:$0xff]   ;;  %v5452_v5 = vld [vmem:[#allocation4 + $0x368] ss:$16 sps:$4 sm:$0xff]  }
 0x1ba   :  { %3854 = vmatmul.mubr.bf16.vlgmr.msra.gmra.mrb[8].mxu0 %v2255_v14  ;;  %4018 = vmatmul.mubr.bf16.vlgmr.msra.gmra.mrb[8].mxu1 %v2255_v14  ;;  %v5460_v14 = vld [vmem:[#allocation4 + $0x38c] ss:$16 sps:$4 sm:$0xff]   ;;  %v5482_v12 = vld [vmem:[#allocation4 + $0x408] ss:$16 sps:$4 sm:$0xff]  }
 0x1bb   :  { %3863 = vmatpush1.bf16.msra.mxu0 %v5383_v10  ;;  %4027 = vmatpush1.bf16.msra.mxu1 %v5386_v11  ;;  %v5449_v11 = vld [vmem:[#allocation4 + $0x360] ss:$16 sps:$4 sm:$0xff]  }
 0x1bc   :  { %3894 = vmatprep.mubr.bf16.mxu0 %v2258_v18  ;;  %4058 = vmatprep.mubr.bf16.mxu1 %v2258_v18  ;;  %v5455_v18 = vld [vmem:[#allocation4 + $0x380] ss:$16 sps:$4 sm:$0xff]  }
 0x1bd   :  { %3864 = vmatprep.subr.bf16.mxu0 %v5391_v16  ;;  %4028 = vmatprep.subr.bf16.mxu1 %v5394_v17  ;;  %v2145_v17 = vrot.slane %v5893_v43, %v5886_v55 }
 0x1be   :  { %v5678_v10 = vpop.eup %5677 }
 0x1bf   :  { %3865 = vmatpush1.bf16.msra.mxu0 %v5389_v19  ;;  %4029 = vmatpush1.bf16.msra.mxu1 %v5392_v20  ;;  %v2127_v16 = vmul.f32 %v5678_v10, %v5912_v61  ;;  %v5458_v19 = vld [vmem:[#allocation4 + $0x388] ss:$16 sps:$4 sm:$0xff]   ;;  %v5463_v20 = vld [vmem:[#allocation4 + $0x3a4] ss:$16 sps:$4 sm:$0xff]  }
 0x1c0   :  { %3866 = vmatprep.subr.bf16.mxu0 %v5397_v22  ;;  %4030 = vmatprep.subr.bf16.mxu1 %v5400_v53  ;;  %v2194_v53 = vrot.slane %v5898_v45, %v5886_v55  ;;  %v5469_v61 = vld [vmem:[#allocation4 + $0x3c4] ss:$16 sps:$4 sm:$0xff]  }
 0x1c1   :  { %v2176_v22 = vmul.f32 %v2145_v17, %v2127_v16 }
 0x1c3   :  { %3867 = vmatpush1.bf16.msra.mxu0 %v5395_v25  ;;  %4031 = vmatpush1.bf16.msra.mxu1 %v5398_v31  ;;  %v5461_v25 = vld [vmem:[#allocation4 + $0x3a0] ss:$16 sps:$4 sm:$0xff]   ;;  %v5464_v31 = vld [vmem:[#allocation4 + $0x3a8] ss:$16 sps:$4 sm:$0xff]  }
 0x1c4   :  { %3868 = vmatprep.subr.bf16.mxu0 %v5403_v33  ;;  %4032 = vmatprep.subr.bf16.mxu1 %v5406_v15  ;;  %v2225_v33 = vadd.f32 %v2194_v53, %v2176_v22  ;;  %v5467_v15 = vld [vmem:[#allocation4 + $0x3c0] ss:$16 sps:$4 sm:$0xff]   ;;  %v5505_v53 = vld [vmem:[#allocation4 + $0x484] ss:$16 sps:$4 sm:$0xff]  }
 0x1c6   :  { %vm2233_vm3 = vcmp.ge.f32.partialorder %v2225_v33, 0.0 }
 0x1c7   :  { %3869 = vmatpush1.bf16.msra.mxu0 %v5401_v34  ;;  %4033 = vmatpush1.bf16.msra.mxu1 %v5404_v35  ;;  %v5470_v34 = vld [vmem:[#allocation4 + $0x3c8] ss:$16 sps:$4 sm:$0xff]   ;;  %v5475_v35 = vld [vmem:[#allocation4 + $0x3e4] ss:$16 sps:$4 sm:$0xff]  }
 0x1c8   :  { %3870 = vmatprep.subr.bf16.mxu0 %v5409_v24  ;;  %4034 = vmatprep.subr.bf16.mxu1 %v5412_v37  ;;  %v2241_v24 = vmul.f32 0.01, %v2225_v33  ;;  %v5473_v37 = vld [vmem:[#allocation4 + $0x3e0] ss:$16 sps:$4 sm:$0xff]  }
 0x1cb   :  { %3871 = vmatpush1.bf16.msra.mxu0 %v5407_v38  ;;  %4035 = vmatpush1.bf16.msra.mxu1 %v5410_v39  ;;  %v5476_v38 = vld [vmem:[#allocation4 + $0x3e8] ss:$16 sps:$4 sm:$0xff]   ;;  %v5481_v39 = vld [vmem:[#allocation4 + $0x404] ss:$16 sps:$4 sm:$0xff]  }
 0x1cc   :  { %3872 = vmatprep.subr.bf16.mxu0 %v5415_v41  ;;  %4036 = vmatprep.subr.bf16.mxu1 %v5418_v42  ;;  %v2249_v41 = vsel %vm2233_vm3, %v2225_v33, %v2241_v24  ;;  %v5922_v42 = vsub.s32 4, %v5863_v26 }
 0x1ce   :  { %v333_v51 = vrot.slane %v5871_v28, %v5922_v42 }
 0x1cf   :  { %3873 = vmatpush1.bf16.msra.mxu0 %v5413_v44  ;;  %4037 = vmatpush1.bf16.msra.mxu1 %v5416_v46  ;;  %v5925_v44 = vsub.s32 5, %v5863_v26  ;;  %v5479_v46 = vld [vmem:[#allocation4 + $0x400] ss:$16 sps:$4 sm:$0xff]  }
 0x1d0   :  { %3874 = vmatprep.subr.bf16.mxu0 %v5421_v47  ;;  %4038 = vmatprep.subr.bf16.mxu1 %v5424_v48  ;;  %v5928_v47 = vsub.s32 7, %v5863_v26  ;;  %v2257_v48 = vpack.c.bf16 %v2249_v41, %v2249_v41 }
 0x1d3   :  { %3875 = vmatpush1.bf16.msra.mxu0 %v5419_v49  ;;  %4039 = vmatpush1.bf16.msra.mxu1 %v5422_v50  ;;  %v5487_v49 = vld [vmem:[#allocation4 + $0x424] ss:$16 sps:$4 sm:$0xff]   ;;  %v5490_v50 = vld [vmem:[#allocation4 + $0x42c] ss:$16 sps:$4 sm:$0xff]  }
 0x1d4   :  { %3876 = vmatprep.subr.bf16.mxu0 %v5427_v57  ;;  %4040 = vmatprep.subr.bf16.mxu1 %v5430_v52  ;;  %v337_v57 = vrot.slane %v5871_v28, %v5925_v44  ;;  %v5485_v52 = vld [vmem:[#allocation4 + $0x420] ss:$16 sps:$4 sm:$0xff]  }
 0x1d7   :  { %3877 = vmatpush1.bf16.msra.mxu0 %v5425_v54  ;;  %4041 = vmatpush1.bf16.msra.mxu1 %v5428_v23  ;;  %v5488_v54 = vld [vmem:[#allocation4 + $0x428] ss:$16 sps:$4 sm:$0xff]   ;;  %v345_v23 = vrot.slane %v5871_v28, %v5928_v47 }
 0x1d8   :  { %3878 = vmatprep.subr.bf16.mxu0 %v5433_v58  ;;  %4042 = vmatprep.subr.bf16.mxu1 %v5436_v59  ;;  %v5493_v58 = vld [vmem:[#allocation4 + $0x444] ss:$16 sps:$4 sm:$0xff]   ;;  %v5496_v59 = vld [vmem:[#allocation4 + $0x44c] ss:$16 sps:$4 sm:$0xff]  }
 0x1db   :  { %3879 = vmatpush1.bf16.msra.mxu0 %v5431_v60  ;;  %4043 = vmatpush1.bf16.msra.mxu1 %v5434_v62 }
 0x1dc   :  { %3880 = vmatprep.subr.bf16.mxu0 %v5439_v63  ;;  %4044 = vmatprep.subr.bf16.mxu1 %v5442_v0 }
 0x1df   :  { %3881 = vmatpush1.bf16.msra.mxu0 %v5437_v1  ;;  %4045 = vmatpush1.bf16.msra.mxu1 %v5440_v3 }
 0x1e0   :  { %3882 = vmatprep.subr.bf16.mxu0 %v5445_v6  ;;  %4046 = vmatprep.subr.bf16.mxu1 %v5448_v2  ;;  %v5491_v6 = vld [vmem:[#allocation4 + $0x440] ss:$16 sps:$4 sm:$0xff]  }
 0x1e3   :  { %3883 = vmatpush1.bf16.msra.mxu0 %v5443_v7  ;;  %4047 = vmatpush1.bf16.msra.mxu1 %v5446_v4 }
 0x1e4   :  { %3884 = vmatprep.subr.bf16.mxu0 %v5451_v8  ;;  %4048 = vmatprep.subr.bf16.mxu1 %v5454_v9  ;;  %v5494_v9 = vld [vmem:[#allocation4 + $0x448] ss:$16 sps:$4 sm:$0xff]  }
 0x1e7   :  { %3885 = vmatpush1.bf16.msra.mxu0 %v5449_v11  ;;  %4049 = vmatpush1.bf16.msra.mxu1 %v5452_v5  ;;  %v5499_v5 = vld [vmem:[#allocation4 + $0x464] ss:$16 sps:$4 sm:$0xff]  }
 0x1e8   :  { %3886 = vmatprep.subr.bf16.mxu0 %v5457_v13  ;;  %4050 = vmatprep.subr.bf16.mxu1 %v5460_v14  ;;  %v5502_v13 = vld [vmem:[#allocation4 + $0x46c] ss:$16 sps:$4 sm:$0xff]  }
 0x1eb   :  { %3887 = vmatpush1.bf16.msra.mxu0 %v5455_v18  ;;  %4051 = vmatpush1.bf16.msra.mxu1 %v5458_v19 }
 0x1ec   :  { %3888 = vmatprep.subr.bf16.mxu0 %v5463_v20  ;;  %4052 = vmatprep.subr.bf16.mxu1 %v5466_v21  ;;  %v5497_v20 = vld [vmem:[#allocation4 + $0x460] ss:$16 sps:$4 sm:$0xff]   ;;  %v5500_v21 = vld [vmem:[#allocation4 + $0x468] ss:$16 sps:$4 sm:$0xff]  }
 0x1ef   :  { %3889 = vmatpush1.bf16.msra.mxu0 %v5461_v25  ;;  %4053 = vmatpush1.bf16.msra.mxu1 %v5464_v31  ;;  %v5508_v25 = vld [vmem:[#allocation4 + $0x48c] ss:$16 sps:$4 sm:$0xff]  }
 0x1f0   :  { %3890 = vmatprep.subr.bf16.mxu0 %v5469_v61  ;;  %4054 = vmatprep.subr.bf16.mxu1 %v5472_v32 }
 0x1f3   :  { %3891 = vmatpush1.bf16.msra.mxu0 %v5467_v15  ;;  %4055 = vmatpush1.bf16.msra.mxu1 %v5470_v34  ;;  %v5503_v34 = vld [vmem:[#allocation4 + $0x480] ss:$16 sps:$4 sm:$0xff]  }
 0x1f4   :  { %3892 = vmatprep.subr.bf16.mxu0 %v5475_v35  ;;  %4056 = vmatprep.subr.bf16.mxu1 %v5478_v36  ;;  %v5506_v35 = vld [vmem:[#allocation4 + $0x488] ss:$16 sps:$4 sm:$0xff]   ;;  %v5947_v36 = vsub.s32 6, %v5863_v26  ;;  %v5517_v26 = vld [vmem:[#allocation4 + $0x4c4] ss:$16 sps:$4 sm:$0xff]  }
 0x1f7   :  { %3893 = vmatpush1.bf16.msra.mxu0 %v5473_v37  ;;  %4057 = vmatpush1.bf16.msra.mxu1 %v5476_v38  ;;  %v5511_v37 = vld [vmem:[#allocation4 + $0x4a4] ss:$16 sps:$4 sm:$0xff]   ;;  %v5514_v38 = vld [vmem:[#allocation4 + $0x4ac] ss:$16 sps:$4 sm:$0xff]  }
 0x1f8   :  { %3903 = vmatprep.subr.bf16.mxu0 %v5481_v39  ;;  %4067 = vmatprep.subr.bf16.mxu1 %v5484_v40 }
 0x1fa   :  { %3895 = vmatmul.mubr.bf16.vlgmr.msra.gmra.mrb[8].mxu0 %v2257_v48  ;;  %4059 = vmatmul.mubr.bf16.vlgmr.msra.gmra.mrb[8].mxu1 %v2257_v48  ;;  %v5509_v48 = vld [vmem:[#allocation4 + $0x4a0] ss:$16 sps:$4 sm:$0xff]  }
 0x1fb   :  { %3904 = vmatpush1.bf16.msra.mxu0 %v5479_v46  ;;  %4068 = vmatpush1.bf16.msra.mxu1 %v5482_v12 }
 0x1fc   :  { %3905 = vmatprep.subr.bf16.mxu0 %v5487_v49  ;;  %4069 = vmatprep.subr.bf16.mxu1 %v5490_v50  ;;  %v5512_v49 = vld [vmem:[#allocation4 + $0x4a8] ss:$16 sps:$4 sm:$0xff]   ;;  %v341_v50 = vrot.slane %v5871_v28, %v5947_v36  ;;  %v5515_v28 = vld [vmem:[#allocation4 + $0x4c0] ss:$16 sps:$4 sm:$0xff]  }
 0x1fd   :  { %v1887_v56 = vpop.f32.mrb[4].mxu0  ;;  %v5938_v62 = vpop.f32.mrb[4].mxu1 }
 0x1fe   :  { %v5936_v60 = vadd.f32 %v1887_v56, %v333_v51  ;;  %v1889_v63 = vpop.f32.mrb[5].mxu0  ;;  %v1971_v1 = vpop.f32.mrb[5].mxu1 }
 0x1ff   :  { %v5940_v0 = vadd.f32 %v1889_v63, %v337_v57  ;;  %v1891_v3 = vpop.f32.mrb[6].mxu0  ;;  %v5232_v7 = vadd.f32 %v1971_v1, %v345_v23  ;;  %3906 = vmatpush1.bf16.msra.mxu0 %v5485_v52  ;;  %4070 = vmatpush1.bf16.msra.mxu1 %v5488_v54  ;;  %v1973_v4 = vpop.f32.mrb[6].mxu1  ;;  %v5520_v57 = vld [vmem:[#allocation4 + $0x4cc] ss:$16 sps:$4 sm:$0xff]   ;;  %v5962_v63 = vadd.f32 %v5938_v62, %v341_v50  ;;  %v5523_v1 = vld [vmem:[#allocation4 + $0x4e4] ss:$16 sps:$4 sm:$0xff]  }
 0x200   :  { %v2004_v2 = vrot.slane %v5936_v60, 4  ;;  %v1892_v8 = vpop.f32.mrb[7].mxu0  ;;  %v1974_v11 = vpop.f32.mrb[7].mxu1  ;;  %3907 = vmatprep.subr.bf16.mxu0 %v5493_v58  ;;  %4071 = vmatprep.subr.bf16.mxu1 %v5496_v59  ;;  %v5518_v59 = vld [vmem:[#allocation4 + $0x4c8] ss:$16 sps:$4 sm:$0xff]  }
 0x201   :  { %v2010_v10 = vrot.slane %v5940_v0, 4  ;;  %v2022_v16 = vrot.slane %v5232_v7, 4  ;;  %v5521_v8 = vld [vmem:[#allocation4 + $0x4e0] ss:$16 sps:$4 sm:$0xff]   ;;  %v2016_v62 = vrot.slane %v5962_v63, 4 }
 0x202   :  { %v2005_v14 = vadd.f32 %v5936_v60, %v2004_v2  ;;  %v5529_v11 = vld [vmem:[#allocation4 + $0x504] ss:$16 sps:$4 sm:$0xff]   ;;  %v5542_v50 = vld [vmem:[#allocation4 + $0x548] ss:$16 sps:$4 sm:$0xff]  }
 0x203   :  { %v2011_v17 = vadd.f32 %v5940_v0, %v2010_v10  ;;  %v2023_v19 = vadd.f32 %v5232_v7, %v2022_v16  ;;  %3908 = vmatpush1.bf16.msra.mxu0 %v5491_v6  ;;  %4072 = vmatpush1.bf16.msra.mxu1 %v5494_v9  ;;  %v5524_v9 = vld [vmem:[#allocation4 + $0x4e8] ss:$16 sps:$4 sm:$0xff]  }
 0x204   :  { %v2006_v18 = vrot.slane %v2005_v14, 2  ;;  %3909 = vmatprep.subr.bf16.mxu0 %v5499_v5  ;;  %4073 = vmatprep.subr.bf16.mxu1 %v5502_v13  ;;  %v5532_v5 = vld [vmem:[#allocation4 + $0x50c] ss:$16 sps:$4 sm:$0xff]  }
 0x205   :  { %v2012_v22 = vrot.slane %v2011_v17, 2  ;;  %v2024_v61 = vrot.slane %v2023_v19, 2 }
 0x206   :  { %v2007_v31 = vadd.f32 %v2006_v18, %v2005_v14 }
 0x207   :  { %v2013_v32 = vadd.f32 %v2012_v22, %v2011_v17  ;;  %v2025_v15 = vadd.f32 %v2024_v61, %v2023_v19  ;;  %3910 = vmatpush1.bf16.msra.mxu0 %v5497_v20  ;;  %4074 = vmatpush1.bf16.msra.mxu1 %v5500_v21  ;;  %v5527_v19 = vld [vmem:[#allocation4 + $0x500] ss:$16 sps:$4 sm:$0xff]   ;;  %v5530_v20 = vld [vmem:[#allocation4 + $0x508] ss:$16 sps:$4 sm:$0xff]   ;;  %v2017_v21 = vadd.f32 %v5962_v63, %v2016_v62 }
 0x208   :  { %v2008_v33 = vrot.slane %v2007_v31, 1  ;;  %3911 = vmatprep.subr.bf16.mxu0 %v5505_v53  ;;  %4075 = vmatprep.subr.bf16.mxu1 %v5508_v25  ;;  %v5535_v53 = vld [vmem:[#allocation4 + $0x524] ss:$16 sps:$4 sm:$0xff]   ;;  %v5538_v25 = vld [vmem:[#allocation4 + $0x52c] ss:$16 sps:$4 sm:$0xff]  }
 0x209   :  { %v2014_v24 = vrot.slane %v2013_v32, 1  ;;  %v2026_v40 = vrot.slane %v2025_v15, 1  ;;  %v5557_v62 = vld [vmem:[#allocation4 + $0x5a0] ss:$16 sps:$4 sm:$0xff]  }
 0x20a   :  { %v2009_v39 = vadd.f32 %v2008_v33, %v2007_v31 }
 0x20b   :  { %v2015_v41 = vadd.f32 %v2014_v24, %v2013_v32  ;;  %v2027_v12 = vadd.f32 %v2026_v40, %v2025_v15  ;;  %3912 = vmatpush1.bf16.msra.mxu0 %v5503_v34  ;;  %4076 = vmatpush1.bf16.msra.mxu1 %v5506_v35  ;;  %v5533_v34 = vld [vmem:[#allocation4 + $0x520] ss:$16 sps:$4 sm:$0xff]   ;;  %v5536_v35 = vld [vmem:[#allocation4 + $0x528] ss:$16 sps:$4 sm:$0xff]   ;;  %v2018_v24 = vrot.slane %v2017_v21, 2 }
 0x20c   :  { %v2033_v46 = vmul.f32 0.125, %v2009_v39  ;;  %3913 = vmatprep.subr.bf16.mxu0 %v5511_v37  ;;  %4077 = vmatprep.subr.bf16.mxu1 %v5514_v38  ;;  %v5541_v38 = vld [vmem:[#allocation4 + $0x544] ss:$16 sps:$4 sm:$0xff]   ;;  %v5544_v39 = vld [vmem:[#allocation4 + $0x54c] ss:$16 sps:$4 sm:$0xff]  }
 0x20d   :  { %v2034_v51 = vmul.f32 0.125, %v2015_v41  ;;  %v2036_v54 = vmul.f32 0.125, %v2027_v12  ;;  %v5539_v12 = vld [vmem:[#allocation4 + $0x540] ss:$16 sps:$4 sm:$0xff]  }
 0x20e   :  { %v5952_v52 = vsub.f32 %v5936_v60, %v2033_v46 }
 0x20f   :  { %v5955_v23 = vsub.f32 %v5940_v0, %v2034_v51  ;;  %v5959_v58 = vsub.f32 %v5232_v7, %v2036_v54  ;;  %3914 = vmatpush1.bf16.msra.mxu0 %v5509_v48  ;;  %4078 = vmatpush1.bf16.msra.mxu1 %v5512_v49  ;;  %v5526_v0 = vld [vmem:[#allocation4 + $0x4ec] ss:$16 sps:$4 sm:$0xff]   ;;  %v2019_v51 = vadd.f32 %v2018_v24, %v2017_v21  ;;  %v5577_v24 = vld [vmem:[#allocation4 + $0x604] ss:$16 sps:$4 sm:$0xff]  }
 0x210   :  { %v2049_v56 = vmul.f32 %v5952_v52, %v5952_v52  ;;  %3915 = vmatprep.subr.bf16.mxu0 %v5517_v26  ;;  %4079 = vmatprep.subr.bf16.mxu1 %v5520_v57  ;;  %v5547_v57 = vld [vmem:[#allocation4 + $0x564] ss:$16 sps:$4 sm:$0xff]   ;;  %v5550_v54 = vld [vmem:[#allocation4 + $0x56c] ss:$16 sps:$4 sm:$0xff]  }
 0x211   :  { %v2050_v60 = vmul.f32 %v5955_v23, %v5955_v23  ;;  %v2052_v6 = vmul.f32 %v5959_v58, %v5959_v58 }
 0x212   :  { %v2077_v3 = vrot.slane %v2049_v56, 4 }
 0x213   :  { %v2083_v2 = vrot.slane %v2050_v60, 4  ;;  %v2095_v4 = vrot.slane %v2052_v6, 4  ;;  %3916 = vmatpush1.bf16.msra.mxu0 %v5515_v28  ;;  %4080 = vmatpush1.bf16.msra.mxu1 %v5518_v59  ;;  %v5545_v28 = vld [vmem:[#allocation4 + $0x560] ss:$16 sps:$4 sm:$0xff]   ;;  %v5548_v59 = vld [vmem:[#allocation4 + $0x568] ss:$16 sps:$4 sm:$0xff]  }
 0x214   :  { %v2078_v7 = vadd.f32 %v2077_v3, %v2049_v56  ;;  %3917 = vmatprep.subr.bf16.mxu0 %v5523_v1  ;;  %4081 = vmatprep.subr.bf16.mxu1 %v5526_v0  ;;  %v5553_v1 = vld [vmem:[#allocation4 + $0x584] ss:$16 sps:$4 sm:$0xff]   ;;  %v5556_v0 = vld [vmem:[#allocation4 + $0x58c] ss:$16 sps:$4 sm:$0xff]   ;;  %v5551_v3 = vld [vmem:[#allocation4 + $0x580] ss:$16 sps:$4 sm:$0xff]  }
 0x215   :  { %v2084_v10 = vadd.f32 %v2083_v2, %v2050_v60  ;;  %v2096_v14 = vadd.f32 %v2095_v4, %v2052_v6  ;;  %v2020_v60 = vrot.slane %v2019_v51, 1  ;;  %v5554_v6 = vld [vmem:[#allocation4 + $0x588] ss:$16 sps:$4 sm:$0xff]   ;;  %v5562_v4 = vld [vmem:[#allocation4 + $0x5ac] ss:$16 sps:$4 sm:$0xff]  }
 0x216   :  { %v2079_v13 = vrot.slane %v2078_v7, 2 }
 0x217   :  { %v2085_v16 = vrot.slane %v2084_v10, 2  ;;  %v2097_v18 = vrot.slane %v2096_v14, 2  ;;  %3918 = vmatpush1.bf16.msra.mxu0 %v5521_v8  ;;  %4082 = vmatpush1.bf16.msra.mxu1 %v5524_v9  ;;  %v2021_v2 = vadd.f32 %v2020_v60, %v2019_v51  ;;  %v2153_v8 = vrot.slane %v5893_v43, %v5922_v42  ;;  %v5583_v51 = vld [vmem:[#allocation4 + $0x624] ss:$16 sps:$4 sm:$0xff]   ;;  %v5592_v60 = vld [vmem:[#allocation4 + $0x64c] ss:$16 sps:$4 sm:$0xff]  }
 0x218   :  { %v2080_v17 = vadd.f32 %v2079_v13, %v2078_v7  ;;  %3919 = vmatprep.subr.bf16.mxu0 %v5529_v11  ;;  %4083 = vmatprep.subr.bf16.mxu1 %v5532_v5  ;;  %v5559_v7 = vld [vmem:[#allocation4 + $0x5a4] ss:$16 sps:$4 sm:$0xff]   ;;  %v2202_v5 = vrot.slane %v5898_v45, %v5922_v42 }
 0x219   :  { %v2086_v22 = vadd.f32 %v2085_v16, %v2084_v10  ;;  %v2098_v61 = vadd.f32 %v2097_v18, %v2096_v14  ;;  %v5560_v10 = vld [vmem:[#allocation4 + $0x5a8] ss:$16 sps:$4 sm:$0xff]   ;;  %v2035_v13 = vmul.f32 0.125, %v2021_v2  ;;  %v2157_v14 = vrot.slane %v5893_v43, %v5925_v44  ;;  %v5565_v16 = vld [vmem:[#allocation4 + $0x5c4] ss:$16 sps:$4 sm:$0xff]  }
 0x21a   :  { %v2081_v31 = vrot.slane %v2080_v17, 1  ;;  %v5598_v2 = vld [vmem:[#allocation4 + $0x66c] ss:$16 sps:$4 sm:$0xff]  }
 0x21b   :  { %v2087_v32 = vrot.slane %v2086_v22, 1  ;;  %v2099_v15 = vrot.slane %v2098_v61, 1  ;;  %3920 = vmatpush1.bf16.msra.mxu0 %v5527_v19  ;;  %4084 = vmatpush1.bf16.msra.mxu1 %v5530_v20  ;;  %v2165_v19 = vrot.slane %v5893_v43, %v5928_v47 }
 0x21c   :  { %v2082_v33 = vadd.f32 %v2081_v31, %v2080_v17  ;;  %3921 = vmatprep.subr.bf16.mxu0 %v5535_v53  ;;  %4085 = vmatprep.subr.bf16.mxu1 %v5538_v25  ;;  %v5568_v17 = vld [vmem:[#allocation4 + $0x5cc] ss:$16 sps:$4 sm:$0xff]   ;;  %v5563_v53 = vld [vmem:[#allocation4 + $0x5c0] ss:$16 sps:$4 sm:$0xff]   ;;  %v5566_v25 = vld [vmem:[#allocation4 + $0x5c8] ss:$16 sps:$4 sm:$0xff]   ;;  %v2214_v31 = vrot.slane %v5898_v45, %v5928_v47 }
 0x21d   :  { %v2088_v37 = vadd.f32 %v2087_v32, %v2086_v22  ;;  %v2100_v41 = vadd.f32 %v2099_v15, %v2098_v61  ;;  %v5986_v32 = vsub.f32 %v5962_v63, %v2035_v13  ;;  %v5580_v63 = vld [vmem:[#allocation4 + $0x60c] ss:$16 sps:$4 sm:$0xff]   ;;  %v5607_v13 = vld [vmem:[#allocation4 + $0x6a4] ss:$16 sps:$4 sm:$0xff]  }
 0x21e   :  { %v2105_v40 = vmul.f32 0.125, %v2082_v33  ;;  %v5574_v33 = vld [vmem:[#allocation4 + $0x5ec] ss:$16 sps:$4 sm:$0xff]  }
 0x21f   :  { %v2106_v46 = vmul.f32 0.125, %v2088_v37  ;;  %v2108_v49 = vmul.f32 0.125, %v2100_v41  ;;  %3922 = vmatpush1.bf16.msra.mxu0 %v5533_v34  ;;  %4086 = vmatpush1.bf16.msra.mxu1 %v5536_v35  ;;  %v5569_v34 = vld [vmem:[#allocation4 + $0x5e0] ss:$16 sps:$4 sm:$0xff]   ;;  %v5572_v35 = vld [vmem:[#allocation4 + $0x5e8] ss:$16 sps:$4 sm:$0xff]  }
 0x220   :  { %v2113_v48 = vadd.f32 1e-05, %v2105_v40  ;;  %3923 = vmatprep.subr.bf16.mxu0 %v5541_v38  ;;  %4087 = vmatprep.subr.bf16.mxu1 %v5544_v39 }
 0x221   :  { %v2114_v26 = vadd.f32 1e-05, %v2106_v46  ;;  %v2116_v56 = vadd.f32 1e-05, %v2108_v49  ;;  %v5575_v46 = vld [vmem:[#allocation4 + $0x600] ss:$16 sps:$4 sm:$0xff]  }
 0x222   :  { %5679 = vrsqrt.f32 %v2113_v48 }
 0x223   :  { %5681 = vrsqrt.f32 %v2114_v26  ;;  %3924 = vmatpush1.bf16.msra.mxu0 %v5539_v12  ;;  %4088 = vmatpush1.bf16.msra.mxu1 %v5542_v50  ;;  %v5578_v12 = vld [vmem:[#allocation4 + $0x608] ss:$16 sps:$4 sm:$0xff]   ;;  %v5586_v26 = vld [vmem:[#allocation4 + $0x62c] ss:$16 sps:$4 sm:$0xff]  }
 0x224   :  { %5683 = vrsqrt.f32 %v2116_v56  ;;  %3925 = vmatprep.subr.bf16.mxu0 %v5547_v57  ;;  %4089 = vmatprep.subr.bf16.mxu1 %v5550_v54  ;;  %v5581_v54 = vld [vmem:[#allocation4 + $0x620] ss:$16 sps:$4 sm:$0xff]   ;;  %v5584_v56 = vld [vmem:[#allocation4 + $0x628] ss:$16 sps:$4 sm:$0xff]  }
 0x227   :  { %3926 = vmatpush1.bf16.msra.mxu0 %v5545_v28  ;;  %4090 = vmatpush1.bf16.msra.mxu1 %v5548_v59  ;;  %v5589_v59 = vld [vmem:[#allocation4 + $0x644] ss:$16 sps:$4 sm:$0xff]  }
 0x228   :  { %3927 = vmatprep.subr.bf16.mxu0 %v5553_v1  ;;  %4091 = vmatprep.subr.bf16.mxu1 %v5556_v0  ;;  %v5587_v1 = vld [vmem:[#allocation4 + $0x640] ss:$16 sps:$4 sm:$0xff]   ;;  %v5590_v0 = vld [vmem:[#allocation4 + $0x648] ss:$16 sps:$4 sm:$0xff]  }
 0x22b   :  { %3928 = vmatpush1.bf16.msra.mxu0 %v5551_v3  ;;  %4092 = vmatpush1.bf16.msra.mxu1 %v5554_v6  ;;  %v5595_v6 = vld [vmem:[#allocation4 + $0x664] ss:$16 sps:$4 sm:$0xff]  }
 0x22c   :  { %v5680_v9 = vpop.eup %5679  ;;  %3929 = vmatprep.subr.bf16.mxu0 %v5559_v7  ;;  %4093 = vmatprep.subr.bf16.mxu1 %v5562_v4  ;;  %v5593_v7 = vld [vmem:[#allocation4 + $0x660] ss:$16 sps:$4 sm:$0xff]   ;;  %v5596_v4 = vld [vmem:[#allocation4 + $0x668] ss:$16 sps:$4 sm:$0xff]  }
 0x22d   :  { %v2129_v11 = vmul.f32 %v5680_v9, %v5952_v52  ;;  %v5682_v18 = vpop.eup %5681  ;;  %v2206_v52 = vrot.slane %v5898_v45, %v5925_v44  ;;  %v2051_v45 = vmul.f32 %v5986_v32, %v5986_v32  ;;  %v5601_v9 = vld [vmem:[#allocation4 + $0x684] ss:$16 sps:$4 sm:$0xff]  }
 0x22e   :  { %v5684_v20 = vpop.eup %5683  ;;  %v2130_v22 = vmul.f32 %v5682_v18, %v5955_v23  ;;  %v5571_v23 = vld [vmem:[#allocation4 + $0x5e4] ss:$16 sps:$4 sm:$0xff]  }
 0x22f   :  { %v2178_v21 = vmul.f32 %v2153_v8, %v2129_v11  ;;  %v2132_v42 = vmul.f32 %v5684_v20, %v5959_v58  ;;  %3930 = vmatpush1.bf16.msra.mxu0 %v5557_v62  ;;  %4094 = vmatpush1.bf16.msra.mxu1 %v5560_v10  ;;  %v2089_v49 = vrot.slane %v2051_v45, 4  ;;  %v5604_v62 = vld [vmem:[#allocation4 + $0x68c] ss:$16 sps:$4 sm:$0xff]   ;;  %v5599_v10 = vld [vmem:[#allocation4 + $0x680] ss:$16 sps:$4 sm:$0xff]  }
 0x230   :  { %v2179_v43 = vmul.f32 %v2157_v14, %v2130_v22  ;;  %3931 = vmatprep.subr.bf16.mxu0 %v5565_v16  ;;  %4095 = vmatprep.subr.bf16.mxu1 %v5568_v17  ;;  %v5602_v11 = vld [vmem:[#allocation4 + $0x688] ss:$16 sps:$4 sm:$0xff]   ;;  %v5610_v14 = vld [vmem:[#allocation4 + $0x6ac] ss:$16 sps:$4 sm:$0xff]   ;;  %v5605_v16 = vld [vmem:[#allocation4 + $0x6a0] ss:$16 sps:$4 sm:$0xff]  }
 0x231   :  { %v2227_v61 = vadd.f32 %v2202_v5, %v2178_v21  ;;  %v2181_v15 = vmul.f32 %v2165_v19, %v2132_v42  ;;  %v2090_v28 = vadd.f32 %v2089_v49, %v2051_v45  ;;  %v5608_v17 = vld [vmem:[#allocation4 + $0x6a8] ss:$16 sps:$4 sm:$0xff]   ;;  %v5613_v19 = vld [vmem:[#allocation4 + $0x6c4] ss:$16 sps:$4 sm:$0xff]   ;;  %v5616_v20 = vld [vmem:[#allocation4 + $0x6cc] ss:$16 sps:$4 sm:$0xff]  }
 0x232   :  { %v2228_v44 = vadd.f32 %v2206_v52, %v2179_v43  ;;  %v5611_v21 = vld [vmem:[#allocation4 + $0x6c0] ss:$16 sps:$4 sm:$0xff]   ;;  %v5614_v22 = vld [vmem:[#allocation4 + $0x6c8] ss:$16 sps:$4 sm:$0xff]   ;;  %v5619_v42 = vld [vmem:[#allocation4 + $0x6e4] ss:$16 sps:$4 sm:$0xff]  }
 0x233   :  { %vm2235_vm4 = vcmp.ge.f32.partialorder %v2227_v61, 0.0  ;;  %v2243_v58 = vmul.f32 0.01, %v2227_v61  ;;  %3932 = vmatpush1.bf16.msra.mxu0 %v5563_v53  ;;  %4096 = vmatpush1.bf16.msra.mxu1 %v5566_v25  ;;  %v2230_v37 = vadd.f32 %v2214_v31, %v2181_v15  ;;  %v2091_v3 = vrot.slane %v2090_v28, 2  ;;  %v5622_v53 = vld [vmem:[#allocation4 + $0x6ec] ss:$16 sps:$4 sm:$0xff]  }
 0x234   :  { %3933 = vmatprep.subr.bf16.mxu0 %v5571_v23  ;;  %4097 = vmatprep.subr.bf16.mxu1 %v5574_v33  ;;  %vm2236_vm5 = vcmp.ge.f32.partialorder %v2228_v44, 0.0  ;;  %v2244_v47 = vmul.f32 0.01, %v2228_v44  ;;  %v5617_v25 = vld [vmem:[#allocation4 + $0x6e0] ss:$16 sps:$4 sm:$0xff]  }
 0x235   :  { %v2251_v38 = vsel %vm2235_vm4, %v2227_v61, %v2243_v58  ;;  %vm2238_vm6 = vcmp.ge.f32.partialorder %v2230_v37, 0.0  ;;  %v2246_v39 = vmul.f32 0.01, %v2230_v37  ;;  %v2092_v8 = vadd.f32 %v2091_v3, %v2090_v28  ;;  %v5620_v31 = vld [vmem:[#allocation4 + $0x6e8] ss:$16 sps:$4 sm:$0xff]  }
 0x236   :  { %v2252_v40 = vsel %vm2236_vm5, %v2228_v44, %v2244_v47  ;;  %v2259_v50 = vpack.c.bf16 %v2251_v38, %v2251_v38  ;;  %v5625_v43 = vld [vmem:[#allocation4 + $0x704] ss:$16 sps:$4 sm:$0xff]   ;;  %v5628_v23 = vld [vmem:[#allocation4 + $0x70c] ss:$16 sps:$4 sm:$0xff]   ;;  %v5623_v33 = vld [vmem:[#allocation4 + $0x700] ss:$16 sps:$4 sm:$0xff]  }
 0x237   :  { %3934 = vmatpush1.bf16.msra.mxu0 %v5569_v34  ;;  %4098 = vmatpush1.bf16.msra.mxu1 %v5572_v35  ;;  %v2260_v41 = vpack.c.bf16 %v2252_v40, %v2252_v40  ;;  %v2254_v48 = vsel %vm2238_vm6, %v2230_v37, %v2246_v39  ;;  %v2093_v5 = vrot.slane %v2092_v8, 1  ;;  %v5626_v15 = vld [vmem:[#allocation4 + $0x708] ss:$16 sps:$4 sm:$0xff]   ;;  %v5631_v44 = vld [vmem:[#allocation4 + $0x724] ss:$16 sps:$4 sm:$0xff]  }
 0x238   :  { %3944 = vmatprep.subr.bf16.mxu0 %v5577_v24  ;;  %4108 = vmatprep.subr.bf16.mxu1 %v5580_v63  ;;  %v2262_v57 = vpack.c.bf16 %v2254_v48, %v2254_v48  ;;  %v5634_v58 = vld [vmem:[#allocation4 + $0x72c] ss:$16 sps:$4 sm:$0xff]   ;;  %v5629_v34 = vld [vmem:[#allocation4 + $0x720] ss:$16 sps:$4 sm:$0xff]   ;;  %v5632_v35 = vld [vmem:[#allocation4 + $0x728] ss:$16 sps:$4 sm:$0xff]  }
 0x239   :  { %3935 = vmatprep.mubr.bf16.mxu0 %v2260_v41  ;;  %4099 = vmatprep.mubr.bf16.mxu1 %v2260_v41  ;;  %v2094_v18 = vadd.f32 %v2093_v5, %v2092_v8  ;;  %v5637_v24 = vld [vmem:[#allocation4 + $0x744] ss:$16 sps:$4 sm:$0xff]   ;;  %v5640_v37 = vld [vmem:[#allocation4 + $0x74c] ss:$16 sps:$4 sm:$0xff]   ;;  %v5635_v45 = vld [vmem:[#allocation4 + $0x740] ss:$16 sps:$4 sm:$0xff]  }
 0x23a   :  { %3936 = vmatmul.mubr.bf16.vlgmr.msra.gmra.mrb[8].mxu0 %v2259_v50  ;;  %4100 = vmatmul.mubr.bf16.vlgmr.msra.gmra.mrb[8].mxu1 %v2259_v50  ;;  %v5638_v47 = vld [vmem:[#allocation4 + $0x748] ss:$16 sps:$4 sm:$0xff]   ;;  %v5643_v63 = vld [vmem:[#allocation4 + $0x764] ss:$16 sps:$4 sm:$0xff]   ;;  %v5646_v38 = vld [vmem:[#allocation4 + $0x76c] ss:$16 sps:$4 sm:$0xff]  }
 0x23b   :  { %3945 = vmatpush1.bf16.msra.mxu0 %v5575_v46  ;;  %4109 = vmatpush1.bf16.msra.mxu1 %v5578_v12  ;;  %v2107_v52 = vmul.f32 0.125, %v2094_v18  ;;  %v5641_v40 = vld [vmem:[#allocation4 + $0x760] ss:$16 sps:$4 sm:$0xff]   ;;  %v5644_v41 = vld [vmem:[#allocation4 + $0x768] ss:$16 sps:$4 sm:$0xff]  }
 0x23c   :  { %3976 = vmatprep.mubr.bf16.mxu0 %v2262_v57  ;;  %4140 = vmatprep.mubr.bf16.mxu1 %v2262_v57  ;;  %v5649_v46 = vld [vmem:[#allocation4 + $0x784] ss:$16 sps:$4 sm:$0xff]   ;;  %v5652_v12 = vld [vmem:[#allocation4 + $0x78c] ss:$16 sps:$4 sm:$0xff]  }
 0x23d   :  { %3946 = vmatprep.subr.bf16.mxu0 %v5583_v51  ;;  %4110 = vmatprep.subr.bf16.mxu1 %v5586_v26  ;;  %v2115_v61 = vadd.f32 1e-05, %v2107_v52  ;;  %v5701_v49 = vld [vmem:[%s6235_s2 + $0x1] ss:$4 sm:$0xff]  ;;  %v5702_v28 = vld [vmem:[%s6235_s2 + $0x2] ss:$4 sm:$0xff] }
 0x23e   :  { %v2161_v50 = vrot.slane %v5701_v49, %v5947_v36  ;;  %v5647_v51 = vld [vmem:[#allocation4 + $0x780] ss:$16 sps:$4 sm:$0xff]   ;;  %v5650_v26 = vld [vmem:[#allocation4 + $0x788] ss:$16 sps:$4 sm:$0xff]   ;;  %v5655_v57 = vld [vmem:[#allocation4 + $0x7a4] ss:$16 sps:$4 sm:$0xff]  }
 0x23f   :  { %3947 = vmatpush1.bf16.msra.mxu0 %v5581_v54  ;;  %4111 = vmatpush1.bf16.msra.mxu1 %v5584_v56  ;;  %5685 = vrsqrt.f32 %v2115_v61  ;;  %v5658_v54 = vld [vmem:[#allocation4 + $0x7ac] ss:$16 sps:$4 sm:$0xff]  }
 0x240   :  { %3948 = vmatprep.subr.bf16.mxu0 %v5589_v59  ;;  %4112 = vmatprep.subr.bf16.mxu1 %v5592_v60  ;;  %v5653_v59 = vld [vmem:[#allocation4 + $0x7a0] ss:$16 sps:$4 sm:$0xff]   ;;  %v5656_v60 = vld [vmem:[#allocation4 + $0x7a8] ss:$16 sps:$4 sm:$0xff]  }
 0x241   :  { %v4308_v5 = vld [vmem:[%s6238_s5 + $0x88] sm:$0xff]  ;;  %v4342_v61 = vld [vmem:[%s6238_s5 + $0x198] sm:$0xff] }
 0x242   :  { %v4292_v18 = vld [vmem:[%s6238_s5 + $0x8] sm:$0xff]  ;;  %v4314_v49 = vld [vmem:[%s6238_s5 + $0xb8] sm:$0xff] }
 0x243   :  { %3949 = vmatpush1.bf16.msra.mxu0 %v5587_v1  ;;  %4113 = vmatpush1.bf16.msra.mxu1 %v5590_v0  ;;  %v5661_v1 = vld [vmem:[#allocation4 + $0x7c4] ss:$16 sps:$4 sm:$0xff]   ;;  %v5664_v0 = vld [vmem:[#allocation4 + $0x7cc] ss:$16 sps:$4 sm:$0xff]  }
 0x244   :  { %3950 = vmatprep.subr.bf16.mxu0 %v5595_v6  ;;  %4114 = vmatprep.subr.bf16.mxu1 %v5598_v2  ;;  %v5659_v6 = vld [vmem:[#allocation4 + $0x7c0] ss:$16 sps:$4 sm:$0xff]   ;;  %v5662_v2 = vld [vmem:[#allocation4 + $0x7c8] ss:$16 sps:$4 sm:$0xff]  }
 0x247   :  { %3951 = vmatpush1.bf16.msra.mxu0 %v5593_v7  ;;  %4115 = vmatpush1.bf16.msra.mxu1 %v5596_v4  ;;  %v5667_v7 = vld [vmem:[#allocation4 + $0x7e4] ss:$16 sps:$4 sm:$0xff]   ;;  %v5670_v4 = vld [vmem:[#allocation4 + $0x7ec] ss:$16 sps:$4 sm:$0xff]  }
 0x248   :  { %3952 = vmatprep.subr.bf16.mxu0 %v5601_v9  ;;  %4116 = vmatprep.subr.bf16.mxu1 %v5604_v62  ;;  %v5668_v9 = vld [vmem:[#allocation4 + $0x7e8] ss:$16 sps:$4 sm:$0xff]  }
 0x249   :  { %v5686_v39 = vpop.eup %5685 }
 0x24a   :  { %v2131_v48 = vmul.f32 %v5686_v39, %v5986_v32  ;;  %v2210_v32 = vrot.slane %v5702_v28, %v5947_v36  ;;  %v5665_v36 = vld [vmem:[#allocation4 + $0x7e0] ss:$16 sps:$4 sm:$0xff]  }
 0x24b   :  { %3953 = vmatpush1.bf16.msra.mxu0 %v5599_v10  ;;  %4117 = vmatpush1.bf16.msra.mxu1 %v5602_v11  ;;  %v4307_v11 = vld [vmem:[%s6238_s5 + $0x80] sm:$0xff] }
 0x24c   :  { %3954 = vmatprep.subr.bf16.mxu0 %v5607_v13  ;;  %4118 = vmatprep.subr.bf16.mxu1 %v5610_v14  ;;  %v2180_v56 = vmul.f32 %v2161_v50, %v2131_v48  ;;  %v4339_v13 = vld [vmem:[%s6238_s5 + $0x180] sm:$0xff]  ;;  %v5161_v14 = vpack.c.bf16 %v4308_v5, %v4307_v11  ;;  %v4313_v48 = vld [vmem:[%s6238_s5 + $0xb0] sm:$0xff]  ;;  %v4318_v5 = vld [vmem:[%s6238_s5 + $0xd8] sm:$0xff] }
 0x24d   :  { %v4345_v50 = vld [vmem:[%s6238_s5 + $0x1b0] sm:$0xff] }
 0x24e   :  { %v2229_v3 = vadd.f32 %v2210_v32, %v2180_v56  ;;  %v4329_v32 = vld [vmem:[%s6238_s5 + $0x130] sm:$0xff] }
 0x24f   :  { %3955 = vmatpush1.bf16.msra.mxu0 %v5605_v16  ;;  %4119 = vmatpush1.bf16.msra.mxu1 %v5608_v17  ;;  %v4340_v16 = vld [vmem:[%s6238_s5 + $0x188] sm:$0xff]  ;;  %v4291_v17 = vld [vmem:[%s6238_s5] sm:$0xff]  ;;  %v4317_v11 = vld [vmem:[%s6238_s5 + $0xd0] sm:$0xff] }
 0x250   :  { %3956 = vmatprep.subr.bf16.mxu0 %v5613_v19  ;;  %4120 = vmatprep.subr.bf16.mxu1 %v5616_v20  ;;  %v2245_v8 = vmul.f32 0.01, %v2229_v3  ;;  %vm2237_vm7 = vcmp.ge.f32.partialorder %v2229_v3, 0.0  ;;  %v5193_v19 = vpack.c.bf16 %v4340_v16, %v4339_v13  ;;  %v5163_v20 = vpack.c.bf16 %v4292_v18, %v4291_v17  ;;  %v4349_v13 = vld [vmem:[%s6238_s5 + $0x1d0] sm:$0xff]  ;;  %v4350_v16 = vld [vmem:[%s6238_s5 + $0x1d8] sm:$0xff] }
 0x251   :  { %v4301_v17 = vld [vmem:[%s6238_s5 + $0x50] sm:$0xff]  ;;  %v4302_v18 = vld [vmem:[%s6238_s5 + $0x58] sm:$0xff] }
 0x252   :  { %v2253_v62 = vsel %vm2237_vm7, %v2229_v3, %v2245_v8  ;;  %v4347_v3 = vld [vmem:[%s6238_s5 + $0x1c0] sm:$0xff] }
 0x253   :  { %3957 = vmatpush1.bf16.msra.mxu0 %v5611_v21  ;;  %4121 = vmatpush1.bf16.msra.mxu1 %v5614_v22  ;;  %v2261_v10 = vpack.c.bf16 %v2253_v62, %v2253_v62  ;;  %v4323_v21 = vld [vmem:[%s6238_s5 + $0x100] sm:$0xff]  ;;  %v4324_v22 = vld [vmem:[%s6238_s5 + $0x108] sm:$0xff] }
 0x254   :  { %3958 = vmatprep.subr.bf16.mxu0 %v5619_v42  ;;  %4122 = vmatprep.subr.bf16.mxu1 %v5622_v53  ;;  %v5195_v52 = vpack.c.bf16 %v4324_v22, %v4323_v21  ;;  %v4309_v42 = vld [vmem:[%s6238_s5 + $0x90] sm:$0xff]  ;;  %v4310_v53 = vld [vmem:[%s6238_s5 + $0x98] sm:$0xff]  ;;  %v4332_v62 = vld [vmem:[%s6238_s5 + $0x148] sm:$0xff] }
 0x255   :  { %v4333_v21 = vld [vmem:[%s6238_s5 + $0x150] sm:$0xff]  ;;  %v4334_v22 = vld [vmem:[%s6238_s5 + $0x158] sm:$0xff] }
 0x257   :  { %3959 = vmatpush1.bf16.msra.mxu0 %v5617_v25  ;;  %4123 = vmatpush1.bf16.msra.mxu1 %v5620_v31  ;;  %v4341_v25 = vld [vmem:[%s6238_s5 + $0x190] sm:$0xff]  ;;  %v5165_v31 = vpack.c.bf16 %v4310_v53, %v4309_v42  ;;  %v4319_v42 = vld [vmem:[%s6238_s5 + $0xe0] sm:$0xff]  ;;  %v4320_v53 = vld [vmem:[%s6238_s5 + $0xe8] sm:$0xff] }
 0x258   :  { %3960 = vmatprep.subr.bf16.mxu0 %v5625_v43  ;;  %4124 = vmatprep.subr.bf16.mxu1 %v5628_v23  ;;  %v4293_v43 = vld [vmem:[%s6238_s5 + $0x10] sm:$0xff]  ;;  %v4294_v23 = vld [vmem:[%s6238_s5 + $0x18] sm:$0xff] }
 0x25b   :  { %3961 = vmatpush1.bf16.msra.mxu0 %v5623_v33  ;;  %4125 = vmatpush1.bf16.msra.mxu1 %v5626_v15  ;;  %v5197_v33 = vpack.c.bf16 %v4342_v61, %v4341_v25  ;;  %v5167_v15 = vpack.c.bf16 %v4294_v23, %v4293_v43  ;;  %v4351_v25 = vld [vmem:[%s6238_s5 + $0x1e0] sm:$0xff]  ;;  %v4352_v61 = vld [vmem:[%s6238_s5 + $0x1e8] sm:$0xff] }
 0x25c   :  { %3962 = vmatprep.subr.bf16.mxu0 %v5631_v44  ;;  %4126 = vmatprep.subr.bf16.mxu1 %v5634_v58  ;;  %v4325_v44 = vld [vmem:[%s6238_s5 + $0x110] sm:$0xff]  ;;  %v4326_v58 = vld [vmem:[%s6238_s5 + $0x118] sm:$0xff]  ;;  %v4303_v43 = vld [vmem:[%s6238_s5 + $0x60] sm:$0xff] }
 0x25d   :  { %v4304_v23 = vld [vmem:[%s6238_s5 + $0x68] sm:$0xff] }
 0x25f   :  { %3963 = vmatpush1.bf16.msra.mxu0 %v5629_v34  ;;  %4127 = vmatpush1.bf16.msra.mxu1 %v5632_v35  ;;  %v5199_v34 = vpack.c.bf16 %v4326_v58, %v4325_v44  ;;  %v4311_v35 = vld [vmem:[%s6238_s5 + $0xa0] sm:$0xff]  ;;  %v4336_v58 = vld [vmem:[%s6238_s5 + $0x168] sm:$0xff] }
 0x260   :  { %3964 = vmatprep.subr.bf16.mxu0 %v5637_v24  ;;  %4128 = vmatprep.subr.bf16.mxu1 %v5640_v37  ;;  %v4312_v24 = vld [vmem:[%s6238_s5 + $0xa8] sm:$0xff]  ;;  %v4343_v37 = vld [vmem:[%s6238_s5 + $0x1a0] sm:$0xff] }
 0x261   :  { %v4335_v44 = vld [vmem:[%s6238_s5 + $0x160] sm:$0xff] }
 0x263   :  { %3965 = vmatpush1.bf16.msra.mxu0 %v5635_v45  ;;  %4129 = vmatpush1.bf16.msra.mxu1 %v5638_v47  ;;  %v5169_v45 = vpack.c.bf16 %v4312_v24, %v4311_v35  ;;  %v4344_v47 = vld [vmem:[%s6238_s5 + $0x1a8] sm:$0xff]  ;;  %v5219_v35 = vpack.c.bf16 %v4336_v58, %v4335_v44  ;;  %v4322_v24 = vld [vmem:[%s6238_s5 + $0xf8] sm:$0xff] }
 0x264   :  { %3966 = vmatprep.subr.bf16.mxu0 %v5643_v63  ;;  %4130 = vmatprep.subr.bf16.mxu1 %v5646_v38  ;;  %v4295_v63 = vld [vmem:[%s6238_s5 + $0x20] sm:$0xff]  ;;  %v4296_v38 = vld [vmem:[%s6238_s5 + $0x28] sm:$0xff]  ;;  %v5201_v39 = vpack.c.bf16 %v4344_v47, %v4343_v37  ;;  %v4353_v37 = vld [vmem:[%s6238_s5 + $0x1f0] sm:$0xff] }
 0x267   :  { %3967 = vmatpush1.bf16.msra.mxu0 %v5641_v40  ;;  %4131 = vmatpush1.bf16.msra.mxu1 %v5644_v41  ;;  %v5171_v40 = vpack.c.bf16 %v4296_v38, %v4295_v63  ;;  %v4327_v41 = vld [vmem:[%s6238_s5 + $0x120] sm:$0xff]  ;;  %v4305_v38 = vld [vmem:[%s6238_s5 + $0x70] sm:$0xff] }
 0x268   :  { %3968 = vmatprep.subr.bf16.mxu0 %v5649_v46  ;;  %4132 = vmatprep.subr.bf16.mxu1 %v5652_v12  ;;  %v4328_v46 = vld [vmem:[%s6238_s5 + $0x128] sm:$0xff] }
 0x269   :  { %v5203_v12 = vpack.c.bf16 %v4328_v46, %v4327_v41  ;;  %v4338_v46 = vld [vmem:[%s6238_s5 + $0x178] sm:$0xff] }
 0x26b   :  { %3969 = vmatpush1.bf16.msra.mxu0 %v5647_v51  ;;  %4133 = vmatpush1.bf16.msra.mxu1 %v5650_v26  ;;  %v5173_v51 = vpack.c.bf16 %v4314_v49, %v4313_v48  ;;  %v4346_v26 = vld [vmem:[%s6238_s5 + $0x1b8] sm:$0xff]  ;;  %v2519_v48 = vld [vmem:[%s6237_s4] ss:$4 sm:$0xf] }
 0x26c   :  { %3970 = vmatprep.subr.bf16.mxu0 %v5655_v57  ;;  %4134 = vmatprep.subr.bf16.mxu1 %v5658_v54  ;;  %v4297_v57 = vld [vmem:[%s6238_s5 + $0x30] sm:$0xff]  ;;  %v4298_v54 = vld [vmem:[%s6238_s5 + $0x38] sm:$0xff]  ;;  %v5205_v56 = vpack.c.bf16 %v4346_v26, %v4345_v50  ;;  %v2524_v49 = vrot.slane %v2519_v48, %v5866_v27  ;;  %v2532_v50 = vrot.slane %v2519_v48, %v5886_v55 }
 0x26d   :  { %v5175_v28 = vpack.c.bf16 %v4298_v54, %v4297_v57  ;;  %v2536_v26 = vrot.slane %v2519_v48, %v5877_v30 }
 0x26f   :  { %3971 = vmatpush1.bf16.msra.mxu0 %v5653_v59  ;;  %4135 = vmatpush1.bf16.msra.mxu1 %v5656_v60  ;;  %v4330_v59 = vld [vmem:[%s6238_s5 + $0x138] sm:$0xff] }
 0x270   :  { %3972 = vmatprep.subr.bf16.mxu0 %v5661_v1  ;;  %4136 = vmatprep.subr.bf16.mxu1 %v5664_v0  ;;  %v5207_v60 = vpack.c.bf16 %v4330_v59, %v4329_v32  ;;  %v4315_v1 = vld [vmem:[%s6238_s5 + $0xc0] sm:$0xff]  ;;  %v4316_v0 = vld [vmem:[%s6238_s5 + $0xc8] sm:$0xff] }
 0x273   :  { %3973 = vmatpush1.bf16.msra.mxu0 %v5659_v6  ;;  %4137 = vmatpush1.bf16.msra.mxu1 %v5662_v2  ;;  %v5177_v6 = vpack.c.bf16 %v4316_v0, %v4315_v1  ;;  %v4348_v2 = vld [vmem:[%s6238_s5 + $0x1c8] sm:$0xff] }
 0x274   :  { %3974 = vmatprep.subr.bf16.mxu0 %v5667_v7  ;;  %4138 = vmatprep.subr.bf16.mxu1 %v5670_v4  ;;  %v4299_v7 = vld [vmem:[%s6238_s5 + $0x40] sm:$0xff]  ;;  %v4300_v4 = vld [vmem:[%s6238_s5 + $0x48] sm:$0xff]  ;;  %v5209_v8 = vpack.c.bf16 %v4348_v2, %v4347_v3 }
 0x277   :  { %3975 = vmatpush1.bf16.msra.mxu0 %v5665_v36  ;;  %4139 = vmatpush1.bf16.msra.mxu1 %v5668_v9  ;;  %v5179_v36 = vpack.c.bf16 %v4300_v4, %v4299_v7  ;;  %v4331_v9 = vld [vmem:[%s6238_s5 + $0x140] sm:$0xff] }
 0x278   :  { %5162 = vmatprep.subr.bf16.mxu0 %v5161_v14  ;;  %5194 = vmatprep.subr.bf16.mxu1 %v5193_v19  ;;  %v5181_v14 = vpack.c.bf16 %v4318_v5, %v4317_v11  ;;  %v5213_v19 = vpack.c.bf16 %v4350_v16, %v4349_v13 }
 0x27a   :  { %3977 = vmatmul.mubr.bf16.vlgmr.msra.gmra.mrb[8].mxu0 %v2261_v10  ;;  %4141 = vmatmul.mubr.bf16.vlgmr.msra.gmra.mrb[8].mxu1 %v2261_v10  ;;  %v5211_v10 = vpack.c.bf16 %v4332_v62, %v4331_v9 }
 0x27b   :  { %5164 = vmatpush3.bf16.msra.mxu0 %v5163_v20  ;;  %5196 = vmatpush3.bf16.msra.mxu1 %v5195_v52  ;;  %v5183_v20 = vpack.c.bf16 %v4302_v18, %v4301_v17  ;;  %v5215_v52 = vpack.c.bf16 %v4334_v22, %v4333_v21 }
 0x27c   :  { %5166 = vmatprep.subr.bf16.mxu0 %v5165_v31  ;;  %5198 = vmatprep.subr.bf16.mxu1 %v5197_v33  ;;  %v5185_v31 = vpack.c.bf16 %v4320_v53, %v4319_v42  ;;  %v5217_v33 = vpack.c.bf16 %v4352_v61, %v4351_v25 }
 0x27f   :  { %5168 = vmatpush3.bf16.msra.mxu0 %v5167_v15  ;;  %5200 = vmatpush3.bf16.msra.mxu1 %v5199_v34  ;;  %v5187_v15 = vpack.c.bf16 %v4304_v23, %v4303_v43  ;;  %v4321_v34 = vld [vmem:[%s6238_s5 + $0xf0] sm:$0xff] }
 0x280   :  { %5170 = vmatprep.subr.bf16.mxu0 %v5169_v45  ;;  %5202 = vmatprep.subr.bf16.mxu1 %v5201_v39  ;;  %v4354_v45 = vld [vmem:[%s6238_s5 + $0x1f8] sm:$0xff]  ;;  %v5189_v47 = vpack.c.bf16 %v4322_v24, %v4321_v34 }
 0x281   :  { %v5221_v63 = vpack.c.bf16 %v4354_v45, %v4353_v37  ;;  %v4306_v39 = vld [vmem:[%s6238_s5 + $0x78] sm:$0xff] }
 0x282   :  { %v5191_v41 = vpack.c.bf16 %v4306_v39, %v4305_v38 }
 0x283   :  { %5172 = vmatpush3.bf16.msra.mxu0 %v5171_v40  ;;  %5204 = vmatpush3.bf16.msra.mxu1 %v5203_v12  ;;  %v4337_v40 = vld [vmem:[%s6238_s5 + $0x170] sm:$0xff] }
 0x284   :  { %5174 = vmatprep.subr.bf16.mxu0 %v5173_v51  ;;  %5206 = vmatprep.subr.bf16.mxu1 %v5205_v56  ;;  %v5223_v12 = vpack.c.bf16 %v4338_v46, %v4337_v40  ;;  %v2528_v51 = vrot.slane %v2519_v48, %v5874_v29 }
 0x287   :  { %5176 = vmatpush3.bf16.msra.mxu0 %v5175_v28  ;;  %5208 = vmatpush3.bf16.msra.mxu1 %v5207_v60 }
 0x288   :  { %5178 = vmatprep.subr.bf16.mxu0 %v5177_v6  ;;  %5210 = vmatprep.subr.bf16.mxu1 %v5209_v8 }
 0x28b   :  { %5180 = vmatpush3.bf16.msra.mxu0 %v5179_v36  ;;  %5212 = vmatpush3.bf16.msra.mxu1 %v5211_v10 }
 0x28c   :  { %5182 = vmatprep.subr.bf16.mxu0 %v5181_v14  ;;  %5214 = vmatprep.subr.bf16.mxu1 %v5213_v19 }
 0x28f   :  { %5184 = vmatpush3.bf16.msra.mxu0 %v5183_v20  ;;  %5216 = vmatpush3.bf16.msra.mxu1 %v5215_v52 }
 0x290   :  { %5186 = vmatprep.subr.bf16.mxu0 %v5185_v31  ;;  %5218 = vmatprep.subr.bf16.mxu1 %v5217_v33 }
 0x293   :  { %5188 = vmatpush3.bf16.msra.mxu0 %v5187_v15  ;;  %5220 = vmatpush3.bf16.msra.mxu1 %v5219_v35 }
 0x294   :  { %5190 = vmatprep.subr.bf16.mxu0 %v5189_v47  ;;  %5222 = vmatprep.subr.bf16.mxu1 %v5221_v63 }
 0x297   :  { %5192 = vmatpush3.bf16.msra.mxu0 %v5191_v41  ;;  %5224 = vmatpush3.bf16.msra.mxu1 %v5223_v12 }
 0x34d   :  { %v3978_v57 = vpop.f32.mrb[8].mxu0  ;;  %v4142_v54 = vpop.f32.mrb[8].mxu1 }
 0x34e   :  { %v5233_v56 = vadd.f32 %v3978_v57, %v2524_v49  ;;  %v5235_v28 = vadd.f32 %v4142_v54, %v2532_v50  ;;  %v3980_v32 = vpop.f32.mrb[9].mxu0  ;;  %v4144_v59 = vpop.f32.mrb[9].mxu1 }
 0x34f   :  { %v5234_v60 = vadd.f32 %v3980_v32, %v2528_v51  ;;  %v5236_v1 = vadd.f32 %v4144_v59, %v2536_v26  ;;  %v3982_v0 = vpop.f32.mrb[10].mxu0  ;;  %v4146_v3 = vpop.f32.mrb[10].mxu1 }
 0x350   :  { %v4153_v6 = vrot.slane %v5233_v56, 4  ;;  %v4165_v2 = vrot.slane %v5235_v28, 4  ;;  %v3983_v7 = vpop.f32.mrb[11].mxu0  ;;  %v4147_v4 = vpop.f32.mrb[11].mxu1 }
 0x351   :  { %v4159_v8 = vrot.slane %v5234_v60, 4  ;;  %v4171_v36 = vrot.slane %v5236_v1, 4 }
 0x352   :  { %v4154_v9 = vadd.f32 %v5233_v56, %v4153_v6  ;;  %v4166_v62 = vadd.f32 %v5235_v28, %v4165_v2 }
 0x353   :  { %v4160_v10 = vadd.f32 %v5234_v60, %v4159_v8  ;;  %v4172_v11 = vadd.f32 %v5236_v1, %v4171_v36 }
 0x354   :  { %v4155_v5 = vrot.slane %v4154_v9, 2  ;;  %v4167_v13 = vrot.slane %v4166_v62, 2 }
 0x355   :  { %v4161_v14 = vrot.slane %v4160_v10, 2  ;;  %v4173_v16 = vrot.slane %v4172_v11, 2 }
 0x356   :  { %v4156_v17 = vadd.f32 %v4155_v5, %v4154_v9  ;;  %v4168_v18 = vadd.f32 %v4167_v13, %v4166_v62  ;;  %v5084_v5 = vld [vmem:[%s6237_s4 + $0x1] ss:$4 sm:$0xf]  ;;  %v5085_v13 = vld [vmem:[%s6237_s4 + $0x2] ss:$4 sm:$0xf] }
 0x357   :  { %v4162_v19 = vadd.f32 %v4161_v14, %v4160_v10  ;;  %v4174_v20 = vadd.f32 %v4173_v16, %v4172_v11  ;;  %v4233_v14 = vrot.slane %v5084_v5, %v5866_v27 }
 0x358   :  { %v4157_v21 = vrot.slane %v4156_v17, 1  ;;  %v4169_v22 = vrot.slane %v4168_v18, 1 }
 0x359   :  { %v4163_v52 = vrot.slane %v4162_v19, 1  ;;  %v4175_v42 = vrot.slane %v4174_v20, 1 }
 0x35a   :  { %v4158_v53 = vadd.f32 %v4157_v21, %v4156_v17  ;;  %v4170_v25 = vadd.f32 %v4169_v22, %v4168_v18  ;;  %v4241_v17 = vrot.slane %v5084_v5, %v5886_v55  ;;  %v4258_v21 = vrot.slane %v5085_v13, %v5866_v27 }
 0x35b   :  { %v4164_v31 = vadd.f32 %v4163_v52, %v4162_v19  ;;  %v4176_v61 = vadd.f32 %v4175_v42, %v4174_v20  ;;  %v4237_v20 = vrot.slane %v5084_v5, %v5874_v29  ;;  %v4245_v42 = vrot.slane %v5084_v5, %v5877_v30 }
 0x35c   :  { %v4177_v43 = vmul.f32 0.125, %v4158_v53  ;;  %v4179_v23 = vmul.f32 0.125, %v4170_v25  ;;  %v4266_v53 = vrot.slane %v5085_v13, %v5886_v55 }
 0x35d   :  { %v4178_v33 = vmul.f32 0.125, %v4164_v31  ;;  %v4180_v15 = vmul.f32 0.125, %v4176_v61 }
 0x35e   :  { %v4181_v44 = vsub.f32 %v5233_v56, %v4177_v43  ;;  %v4183_v58 = vsub.f32 %v5235_v28, %v4179_v23  ;;  %v4262_v43 = vrot.slane %v5085_v13, %v5874_v29 }
 0x35f   :  { %v4182_v34 = vsub.f32 %v5234_v60, %v4178_v33  ;;  %v4184_v35 = vsub.f32 %v5236_v1, %v4180_v15  ;;  %v4270_v15 = vrot.slane %v5085_v13, %v5877_v30  ;;  %v5088_v13 = vld [vmem:[%s6239_s6 + $0x2] ss:$0 sm:$0xff] }
 0x360   :  { %v4185_v24 = vmul.f32 %v4181_v44, %v4181_v44  ;;  %v4187_v37 = vmul.f32 %v4183_v58, %v4183_v58 }
 0x361   :  { %v4186_v45 = vmul.f32 %v4182_v34, %v4182_v34  ;;  %v4188_v47 = vmul.f32 %v4184_v35, %v4184_v35 }
 0x362   :  { %v4189_v63 = vrot.slane %v4185_v24, 4  ;;  %v4201_v38 = vrot.slane %v4187_v37, 4 }
 0x363   :  { %v4195_v39 = vrot.slane %v4186_v45, 4  ;;  %v4207_v40 = vrot.slane %v4188_v47, 4 }
 0x364   :  { %v4190_v41 = vadd.f32 %v4189_v63, %v4185_v24  ;;  %v4202_v46 = vadd.f32 %v4201_v38, %v4187_v37 }
 0x365   :  { %v4196_v12 = vadd.f32 %v4195_v39, %v4186_v45  ;;  %v4208_v48 = vadd.f32 %v4207_v40, %v4188_v47 }
 0x366   :  { %v4191_v49 = vrot.slane %v4190_v41, 2  ;;  %v4203_v50 = vrot.slane %v4202_v46, 2 }
 0x367   :  { %v4197_v51 = vrot.slane %v4196_v12, 2  ;;  %v4209_v26 = vrot.slane %v4208_v48, 2 }
 0x368   :  { %v4192_v57 = vadd.f32 %v4191_v49, %v4190_v41  ;;  %v4204_v54 = vadd.f32 %v4203_v50, %v4202_v46  ;;  %v5086_v41 = vld [vmem:[%s6239_s6] ss:$0 sm:$0xff] }
 0x369   :  { %v4198_v56 = vadd.f32 %v4197_v51, %v4196_v12  ;;  %v4210_v28 = vadd.f32 %v4209_v26, %v4208_v48 }
 0x36a   :  { %v4193_v32 = vrot.slane %v4192_v57, 1  ;;  %v4205_v59 = vrot.slane %v4204_v54, 1 }
 0x36b   :  { %v4199_v60 = vrot.slane %v4198_v56, 1  ;;  %v4211_v1 = vrot.slane %v4210_v28, 1 }
 0x36c   :  { %v4194_v0 = vadd.f32 %v4193_v32, %v4192_v57  ;;  %v4206_v3 = vadd.f32 %v4205_v59, %v4204_v54 }
 0x36d   :  { %v4200_v6 = vadd.f32 %v4199_v60, %v4198_v56  ;;  %v4212_v2 = vadd.f32 %v4211_v1, %v4210_v28 }
 0x36e   :  { %v4213_v7 = vmul.f32 0.125, %v4194_v0  ;;  %v4215_v4 = vmul.f32 0.125, %v4206_v3 }
 0x36f   :  { %v4214_v8 = vmul.f32 0.125, %v4200_v6  ;;  %v4216_v36 = vmul.f32 0.125, %v4212_v2 }
 0x370   :  { %v4217_v9 = vadd.f32 1e-05, %v4213_v7  ;;  %v4219_v62 = vadd.f32 1e-05, %v4215_v4 }
 0x371   :  { %v4218_v10 = vadd.f32 1e-05, %v4214_v8  ;;  %v4220_v11 = vadd.f32 1e-05, %v4216_v36 }
 0x372   :  { %5687 = vrsqrt.f32 %v4217_v9 }
 0x373   :  { %5689 = vrsqrt.f32 %v4219_v62 }
 0x374   :  { %5691 = vrsqrt.f32 %v4218_v10 }
 0x375   :  { %5693 = vrsqrt.f32 %v4220_v11  ;;  %v5087_v11 = vld [vmem:[%s6239_s6 + $0x1] ss:$0 sm:$0xff] }
 0x37c   :  { %v5688_v16 = vpop.eup %5687 }
 0x37d   :  { %v5690_v18 = vpop.eup %5689  ;;  %v4225_v19 = vmul.f32 %v5688_v16, %v4181_v44 }
 0x37e   :  { %v5692_v22 = vpop.eup %5691  ;;  %v4227_v52 = vmul.f32 %v5690_v18, %v4183_v58  ;;  %v5089_v18 = vld [vmem:[%s6239_s6 + $0x3] ss:$0 sm:$0xff] }
 0x37f   :  { %v5694_v25 = vpop.eup %5693  ;;  %v4250_v31 = vmul.f32 %v4233_v14, %v4225_v19  ;;  %v4226_v61 = vmul.f32 %v5692_v22, %v4182_v34  ;;  %v5090_v22 = vld [vmem:[%s6239_s6 + $0x4] ss:$0 sm:$0xff] }
 0x380   :  { %v4252_v23 = vmul.f32 %v4241_v17, %v4227_v52  ;;  %v4228_v33 = vmul.f32 %v5694_v25, %v4184_v35 }
 0x381   :  { %v4251_v44 = vmul.f32 %v4237_v20, %v4226_v61  ;;  %v4275_v24 = vadd.f32 %v4258_v21, %v4250_v31 }
 0x382   :  { %v4253_v37 = vmul.f32 %v4245_v42, %v4228_v33  ;;  %v4277_v45 = vadd.f32 %v4266_v53, %v4252_v23 }
 0x383   :  { %v4276_v27 = vadd.f32 %v4262_v43, %v4251_v44  ;;  %v4283_v58 = vmul.f32 0.01, %v4275_v24  ;;  %vm4279_vm9 = vcmp.ge.f32.partialorder %v4275_v24, 0.0 }
 0x384   :  { %v4278_v47 = vadd.f32 %v4270_v15, %v4253_v37  ;;  %v4285_v55 = vmul.f32 0.01, %v4277_v45  ;;  %vm4281_vm11 = vcmp.ge.f32.partialorder %v4277_v45, 0.0 }
 0x385   :  { %vm4280_vm8 = vcmp.ge.f32.partialorder %v4276_v27, 0.0  ;;  %v4284_v63 = vmul.f32 0.01, %v4276_v27  ;;  %v4287_v35 = vsel %vm4279_vm9, %v4275_v24, %v4283_v58 }
 0x386   :  { %vm4282_vm10 = vcmp.ge.f32.partialorder %v4278_v47, 0.0  ;;  %v4286_v38 = vmul.f32 0.01, %v4278_v47  ;;  %v4289_v30 = vsel %vm4281_vm11, %v4277_v45, %v4285_v55 }
 0x387   :  { %v4288_v34 = vsel %vm4280_vm8, %v4276_v27, %v4284_v63 }
 0x388   :  { %4424 = vmatprep.mubr.f32.mxu0 %v4288_v34  ;;  %v4290_v29 = vsel %vm4282_vm10, %v4278_v47, %v4286_v38 }
 0x389   :  { %4494 = vmatprep.mubr.f32.mxu1 %v4290_v29  ;;  %4425 = vmatmul.mubr.f32.vlgmr.msra.gmra.mrb[12].mxu0 %v4287_v35 }
 0x38a   :  { %4495 = vmatmul.mubr.f32.vlgmr.msra.gmra.mrb[12].mxu1 %v4289_v30 }
 0x45c   :  { %v5123_v39 = vpop.f32.mrb[12].mxu0 }
 0x45d   :  { %v5158_v40 = vpop.f32.mrb[12].mxu1  ;;  %v5124_v46 = vpop.f32.mrb[13].mxu0 }
 0x45e   :  { %v5125_v12 = vadd.f32 %v5124_v46, %v5123_v39  ;;  %v5159_v48 = vpop.f32.mrb[13].mxu1 }
 0x45f   :  { %v5160_v49 = vadd.f32 %v5159_v48, %v5158_v40 }
 0x460   :  { %v4427_v50 = vadd.f32 %v5125_v12, %v5086_v41 }
 0x462   :  { %v4497_v51 = vadd.f32 %v5160_v49, %v4427_v50 }
 0x464   :  { %v4503_v26 = vsel %vm4502_vm12, %v4497_v51, 0.0 }
 0x465   :  { %v4504_v57 = vrot.slane %v4503_v26, 4 }
 0x467   :  { %v4505_v54 = vadd.f32 %v4504_v57, %v4503_v26 }
 0x469   :  { %v4506_v56 = vrot.slane %v4505_v54, 2 }
 0x46b   :  { %v4507_v28 = vadd.f32 %v4506_v56, %v4505_v54 }
 0x46d   :  { %v4508_v32 = vrot.slane %v4507_v28, 1 }
 0x46f   :  { %v4509_v59 = vadd.f32 %v4508_v32, %v4507_v28 }
 0x471   :  { %v4510_v60 = vmul.f32 0.125, %v4509_v59 }
 0x473   :  { %v4511_v1 = vsub.f32 %v4497_v51, %v4510_v60 }
 0x475   :  { %v4512_v0 = vmul.f32 %v4511_v1, %v4511_v1 }
 0x477   :  { %v4513_v3 = vsel %vm4502_vm12, %v4512_v0, 0.0 }
 0x478   :  { %v4514_v6 = vrot.slane %v4513_v3, 4 }
 0x47a   :  { %v4515_v2 = vadd.f32 %v4514_v6, %v4513_v3 }
 0x47c   :  { %v4516_v7 = vrot.slane %v4515_v2, 2 }
 0x47e   :  { %v4517_v4 = vadd.f32 %v4516_v7, %v4515_v2 }
 0x480   :  { %v4518_v8 = vrot.slane %v4517_v4, 1 }
 0x482   :  { %v4519_v36 = vadd.f32 %v4518_v8, %v4517_v4 }
 0x484   :  { %v4520_v9 = vmul.f32 0.125, %v4519_v36 }
 0x486   :  { %v4521_v62 = vadd.f32 1e-05, %v4520_v9 }
 0x488   :  { %5695 = vrsqrt.f32 %v4521_v62 }
 0x492   :  { %v5696_v10 = vpop.eup %5695 }
 0x493   :  { %v4523_v5 = vmul.f32 %v5696_v10, %v4511_v1 }
 0x495   :  { %v4528_v14 = vmul.f32 %v5087_v11, %v4523_v5 }
 0x497   :  { %v4533_v16 = vadd.f32 %v5088_v13, %v4528_v14 }
 0x499   :  { %vm4534_vm13 = vcmp.ge.f32.partialorder %v4533_v16, 0.0  ;;  %v4535_v17 = vmul.f32 0.01, %v4533_v16 }
 0x49b   :  { %v4536_v19 = vsel %vm4534_vm13, %v4533_v16, %v4535_v17 }
 0x49c   :  { %v4543_v20 = vmul.f32 %v5089_v18, %v4536_v19 }
 0x49e   :  { %v4544_v21 = vsel %vm4502_vm12, %v4543_v20, 0.0 }
 0x49f   :  { %4545 = vadd.xlane.f32.xlu0 %v4544_v21 }
 0x52c   :  { %v4546_v52 = vpop.xlane.xlu0 %4545 }
 0x52d   :  { %v4551_v42 = vadd.f32 %v5090_v22, %v4546_v52 }
 0x52f   :  { %v4552_v53 = vsub.f32 0.0, %v4551_v42 }
 0x531   :  { %v4553_v25 = vmul.f32 1.442695, %v4552_v53 }
 0x533   :  { %5697 = vpow2.f32 %v4553_v25 }
 0x53d   :  { %v5698_v31 = vpop.eup %5697 }
 0x53e   :  { %v4555_v61 = vadd.f32 1.0, %v5698_v31 }
 0x540   :  { %5699 = vrcp.f32 %v4555_v61 }
 0x54a   :  { %v5700_v43 = vpop.eup %5699 }
 0x54b   :  { %4559 = vst.msk [vmem:[%s6240_s7] sm:$0xff] %vm4558_vm14, %v5700_v43 }
 0x54c   :  { %4564 = vsyncpa [#allocation3], 1 }
 0x54d   :  { %4565 = vsyncpa [#allocation5], 1 }

</bundles_post_ra>
